<compile_context>
chip_gen: v7x
topology: tpu7x:2x2x1
jax: 0.10.0
libtpu: 0.0.40
codegen_flags: <defaults>
</compile_context>

<pallas_src>
import jax
import jax.numpy as jnp
from jax.experimental import pallas as pl
from jax.experimental.pallas import tpu as pltpu

IN_DIM = 794          # 784 pixels + 10-dim label embedding
IN_PAD = 896          # 794 rounded up to a lane multiple (7 * 128)
H1, H2, H3 = 1024, 512, 256
OUT_PAD = 128         # final layer padded to a lane-dense 128-wide store
MAX_TILE_B = 512      # large-batch tile (amortizes per-grid-step overhead)


def _round_up(n, m):
    return (n + m - 1) // m * m


# ----------------------------- Pallas kernel --------------------------------
def _discriminator_kernel(x_ref,
                          w1_ref, b1_ref,
                          w2_ref, b2_ref,
                          w3_ref, b3_ref,
                          w4_ref, b4_ref,
                          out_ref):
    """One batch tile of the MLP: 4 MXU matmuls + LeakyReLU(0.2) + Sigmoid.

    Matmul inputs are bf16 (native MXU dtype, half the DMA bytes); every dot
    accumulates in f32 via preferred_element_type. The bias-add / LeakyReLU
    epilogue runs in the dtype of the biases: bf16 on v6e/v7x (packed VALU),
    f32 on v5e.
    """
    cdt = w1_ref.dtype   # bf16 matmul-input dtype
    edt = b1_ref.dtype   # epilogue dtype (bf16 on v6e/v7x, f32 on v5e)

    def hidden_layer(h, w_ref, b_ref):
        acc = jnp.dot(h, w_ref[...], preferred_element_type=jnp.float32)
        a = acc.astype(edt) + b_ref[...]
        return jnp.where(a > 0, a, 0.2 * a).astype(cdt)

    h = hidden_layer(x_ref[...], w1_ref, b1_ref)    # (Bt, 1024)
    # TODO(synk): Dropout(0.3) is identity in eval mode; training-mode RNG mask
    # (pltpu.prng_seed + prng_random_bits) not implemented.
    h = hidden_layer(h, w2_ref, b2_ref)             # (Bt, 512)
    h = hidden_layer(h, w3_ref, b3_ref)             # (Bt, 256)

    logits = jnp.dot(h, w4_ref[...], preferred_element_type=jnp.float32) + b4_ref[...]
    out_ref[...] = jax.nn.sigmoid(logits)           # (Bt, 128); column 0 is the real output


# ------------------------------- wrapper -------------------------------------
def _default_epilogue_dtype():
    """bf16 epilogue on chips with a bf16 VALU (v6e/v7x); f32 on v5e."""
    try:
        kind = jax.devices()[0].device_kind.lower()
    except Exception:
        kind = ""
    if "v5 lite" in kind or "v5e" in kind or "v5litepod" in kind:
        return jnp.float32
    return jnp.bfloat16


def prepare_params(params, compute_dtype=jnp.bfloat16, epilogue_dtype=None):
    """One-time (out of the hot path) padding + dtype cast of the weights.

    Weights are stored (in_features, out_features) so the kernel computes
    h = x @ W + b on the MXU. w1 is padded 794->896, w4/b4 padded 1->128.
    Hidden-layer biases are stored in the epilogue dtype; b4 stays f32.
    """
    if epilogue_dtype is None:
        epilogue_dtype = _default_epilogue_dtype()

    w1 = jnp.zeros((IN_PAD, H1), compute_dtype).at[:IN_DIM, :].set(
        params["w1"].astype(compute_dtype))
    w2 = params["w2"].astype(compute_dtype)                     # (1024, 512)
    w3 = params["w3"].astype(compute_dtype)                     # (512, 256)
    w4 = jnp.zeros((H3, OUT_PAD), compute_dtype).at[:, :1].set(
        params["w4"].astype(compute_dtype))
    b1 = params["b1"].reshape(1, H1).astype(epilogue_dtype)
    b2 = params["b2"].reshape(1, H2).astype(epilogue_dtype)
    b3 = params["b3"].reshape(1, H3).astype(epilogue_dtype)
    b4 = jnp.zeros((1, OUT_PAD), jnp.float32).at[:, :1].set(
        params["b4"].reshape(1, 1).astype(jnp.float32))
    return dict(emb=params["emb"].astype(compute_dtype),        # bf16 gather table
                w1=w1, b1=b1, w2=w2, b2=b2, w3=w3, b3=b3, w4=w4, b4=b4)


def _batch_tile(batch):
    """Batch tile selection (generation-independent).

    * Small batches (<=32): one tile, rounded up to 16 rows (bf16 sublane pack).
    * Larger batches: split into at least two tiles so the 'parallel' grid axis
      can shard across v7x's two TensorCores, capped at MAX_TILE_B rows so the
      per-grid-step overhead (~0.35 us) stays well amortized.
    """
    if batch <= 32:
        return _round_up(batch, 16)
    half = _round_up(pl.cdiv(batch, 2), 16)
    return min(half, MAX_TILE_B)


def discriminator_forward(x, labels, prepared):
    """x: (B, 1, 28, 28) or (B, 784) float; labels: (B,) int32.
    `prepared` comes from prepare_params(). Returns (B,) float32 probabilities
    (matches out.squeeze() for B > 1; for B == 1 PyTorch would return a 0-d
    scalar, here it is shape (1,))."""
    B = x.shape[0]
    cdt = prepared["w1"].dtype

    # Cast straight to the bf16 compute dtype (no f32 (B,794) intermediate),
    # gather the bf16 embedding rows, and fuse concat + lane padding.
    x_bf = x.reshape(B, 784).astype(cdt)
    c = prepared["emb"][labels]                                  # (B, 10) bf16
    x_cat = jnp.concatenate(
        [x_bf, c, jnp.zeros((B, IN_PAD - IN_DIM), cdt)], axis=1)  # (B, 896)
    # TODO(synk): at very large B the gather+concat could be folded into the
    # kernel via scalar-prefetched labels; negligible for typical batches.

    tile_b = _batch_tile(B)
    b_pad = _round_up(B, tile_b)
    if b_pad != B:
        x_cat = jnp.pad(x_cat, ((0, b_pad - B), (0, 0)))

    resident = lambda i: (0, 0)   # weights/biases stay VMEM-resident across batch tiles

    weight_elems = IN_PAD * H1 + H1 * H2 + H2 * H3 + H3 * OUT_PAD
    cost = pl.CostEstimate(
        flops=2 * b_pad * weight_elems,
        transcendentals=b_pad * OUT_PAD,                          # sigmoid
        bytes_accessed=2 * weight_elems + b_pad * IN_PAD * 2 + b_pad * OUT_PAD * 4,
    )

    out_pad = pl.pallas_call(
        _discriminator_kernel,
        out_shape=jax.ShapeDtypeStruct((b_pad, OUT_PAD), jnp.float32),
        grid=(b_pad // tile_b,),
        in_specs=[
            pl.BlockSpec((tile_b, IN_PAD), lambda i: (i, 0)),    # x batch tile
            pl.BlockSpec((IN_PAD, H1), resident),                # w1
            pl.BlockSpec((1, H1), resident),                     # b1
            pl.BlockSpec((H1, H2), resident),                    # w2
            pl.BlockSpec((1, H2), resident),                     # b2
            pl.BlockSpec((H2, H3), resident),                    # w3
            pl.BlockSpec((1, H3), resident),                     # b3
            pl.BlockSpec((H3, OUT_PAD), resident),               # w4 (padded to 128 cols)
            pl.BlockSpec((1, OUT_PAD), resident),                # b4
        ],
        out_specs=pl.BlockSpec((tile_b, OUT_PAD), lambda i: (i, 0)),
        compiler_params=pltpu.CompilerParams(
            dimension_semantics=("parallel",),   # shard batch tiles across v7x's 2 TCs
            vmem_limit_bytes=32 << 20,           # <10 MiB actual footprint; fits v7x's 64 MiB
        ),
        cost_estimate=cost,
    )(x_cat, prepared["w1"], prepared["b1"], prepared["w2"], prepared["b2"],
      prepared["w3"], prepared["b3"], prepared["w4"], prepared["b4"])

    return out_pad[:B, 0]                                        # (B,)  == out.squeeze()


# --------------------------- deterministic params ----------------------------
def init_params(key):
    ks = jax.random.split(key, 9)

    def linear(kw, kb, fan_in, fan_out):
        # PyTorch nn.Linear default init: U(-1/sqrt(fan_in), 1/sqrt(fan_in))
        bound = 1.0 / jnp.sqrt(fan_in)
        w = jax.random.uniform(kw, (fan_in, fan_out), jnp.float32, -bound, bound)
        b = jax.random.uniform(kb, (fan_out,), jnp.float32, -bound, bound)
        return w, b

    emb = jax.random.normal(ks[0], (10, 10), jnp.float32)   # nn.Embedding default: N(0,1)
    w1, b1 = linear(ks[1], ks[2], 794, 1024)
    w2, b2 = linear(ks[3], ks[4], 1024, 512)
    w3, b3 = linear(ks[5], ks[6], 512, 256)
    w4, b4 = linear(ks[7], ks[8], 256, 1)
    return dict(emb=emb, w1=w1, b1=b1, w2=w2, b2=b2, w3=w3, b3=b3, w4=w4, b4=b4)


def _reference_forward(x, labels, p):
    B = x.shape[0]
    xf = x.reshape(B, 784).astype(jnp.float32)
    h = jnp.concatenate([xf, p["emb"][labels]], axis=1)
    for w, b in [(p["w1"], p["b1"]), (p["w2"], p["b2"]), (p["w3"], p["b3"])]:
        h = h @ w + b
        h = jnp.where(h > 0, h, 0.2 * h)
    h = h @ p["w4"] + p["b4"]
    return jax.nn.sigmoid(h)[:, 0]


if __name__ == "__main__":
    key = jax.random.PRNGKey(0)
    k_param, k_x, k_lab = jax.random.split(key, 3)

    params = init_params(k_param)
    prepared = prepare_params(params)          # one-time padding/cast (hoisted)

    # Small-batch check (single tile).
    B = 2
    x = jax.random.normal(k_x, (B, 1, 28, 28), jnp.float32)   # MNIST-shaped input
    labels = jax.random.randint(k_lab, (B,), 0, 10, jnp.int32)

    out = jax.block_until_ready(discriminator_forward(x, labels, prepared))
    ref = _reference_forward(x, labels, params)               # f32 reference
    assert out.shape == (B,)
    # bf16 matmul inputs / bf16 epilogue with f32 accumulation: loose tolerance.
    assert jnp.allclose(out, ref, atol=4e-2, rtol=0.0), (out, ref)

    # Mid-size-batch check (exercises the >=2-tile megacore path + row padding).
    B2 = 48
    k_x2, k_lab2 = jax.random.split(k_x)
    x2 = jax.random.normal(k_x2, (B2, 1, 28, 28), jnp.float32)
    labels2 = jax.random.randint(k_lab2, (B2,), 0, 10, jnp.int32)
    out2 = jax.block_until_ready(discriminator_forward(x2, labels2, prepared))
    ref2 = _reference_forward(x2, labels2, params)
    assert out2.shape == (B2,)
    assert jnp.allclose(out2, ref2, atol=4e-2, rtol=0.0), (out2, ref2)

    print("KERNEL_OK")
</pallas_src>

<mosaic_0001>
module attributes {stable_mosaic.version = 11 : i64} {
  func.func @_discriminator_kernel(%arg0: i32, %arg1: memref<16x896xbf16, #tpu.memory_space<vmem>>, %arg2: memref<896x1024xbf16, #tpu.memory_space<vmem>>, %arg3: memref<1x1024xbf16, #tpu.memory_space<vmem>>, %arg4: memref<1024x512xbf16, #tpu.memory_space<vmem>>, %arg5: memref<1x512xbf16, #tpu.memory_space<vmem>>, %arg6: memref<512x256xbf16, #tpu.memory_space<vmem>>, %arg7: memref<1x256xbf16, #tpu.memory_space<vmem>>, %arg8: memref<256x128xbf16, #tpu.memory_space<vmem>>, %arg9: memref<1x128xf32, #tpu.memory_space<vmem>>, %arg10: memref<16x128xf32, #tpu.memory_space<vmem>>) attributes {dimension_semantics = [#tpu.dimension_semantics<parallel>], iteration_bounds = array<i64: 1>, scalar_prefetch = 0 : i64, scratch_operands = 0 : i64, tpu.core_type = #tpu.core_type<tc>, window_params = [{transform_indices = @transform_0, window_bounds = array<i64: 16, 896>}, {pipeline_mode = #tpu.pipeline_mode<synchronous>, transform_indices = @transform_1, window_bounds = array<i64: 896, 1024>}, {pipeline_mode = #tpu.pipeline_mode<synchronous>, transform_indices = @transform_2, window_bounds = array<i64: 1, 1024>}, {pipeline_mode = #tpu.pipeline_mode<synchronous>, transform_indices = @transform_3, window_bounds = array<i64: 1024, 512>}, {pipeline_mode = #tpu.pipeline_mode<synchronous>, transform_indices = @transform_4, window_bounds = array<i64: 1, 512>}, {pipeline_mode = #tpu.pipeline_mode<synchronous>, transform_indices = @transform_5, window_bounds = array<i64: 512, 256>}, {pipeline_mode = #tpu.pipeline_mode<synchronous>, transform_indices = @transform_6, window_bounds = array<i64: 1, 256>}, {pipeline_mode = #tpu.pipeline_mode<synchronous>, transform_indices = @transform_7, window_bounds = array<i64: 256, 128>}, {pipeline_mode = #tpu.pipeline_mode<synchronous>, transform_indices = @transform_8, window_bounds = array<i64: 1, 128>}, {transform_indices = @transform_9, window_bounds = array<i64: 16, 128>}]} {
    %c0 = arith.constant 0 : index
    %c0_0 = arith.constant 0 : index
    %0 = vector.load %arg1[%c0, %c0_0] : memref<16x896xbf16, #tpu.memory_space<vmem>>, vector<16x896xbf16>
    %c0_1 = arith.constant 0 : index
    %c0_2 = arith.constant 0 : index
    %1 = vector.load %arg2[%c0_1, %c0_2] : memref<896x1024xbf16, #tpu.memory_space<vmem>>, vector<896x1024xbf16>
    %cst = arith.constant dense<0.000000e+00> : vector<16x1024xf32>
    %2 = tpu.matmul %0, %1, %cst {dimension_numbers = #tpu.dot_dimension_numbers<[1], [0], [0], [1], [0, 0, 1, 1], [], []>} : vector<16x896xbf16>, vector<896x1024xbf16>, vector<16x1024xf32> -> vector<16x1024xf32>
    %3 = arith.truncf %2 : vector<16x1024xf32> to vector<16x1024xbf16>
    %c0_3 = arith.constant 0 : index
    %c0_4 = arith.constant 0 : index
    %4 = vector.load %arg3[%c0_3, %c0_4] : memref<1x1024xbf16, #tpu.memory_space<vmem>>, vector<1x1024xbf16>
    %5 = vector.broadcast %4 : vector<1x1024xbf16> to vector<16x1024xbf16>
    %6 = arith.addf %3, %5 : vector<16x1024xbf16>
    %cst_5 = arith.constant 0.000000e+00 : bf16
    %7 = vector.broadcast %cst_5 : bf16 to vector<16x1024xbf16>
    %8 = arith.cmpf ogt, %6, %7 : vector<16x1024xbf16>
    %cst_6 = arith.constant 2.001950e-01 : bf16
    %9 = vector.broadcast %cst_6 : bf16 to vector<16x1024xbf16>
    %10 = arith.mulf %9, %6 : vector<16x1024xbf16>
    %11 = arith.select %8, %6, %10 : vector<16x1024xi1>, vector<16x1024xbf16>
    %c0_7 = arith.constant 0 : index
    %c0_8 = arith.constant 0 : index
    %12 = vector.load %arg4[%c0_7, %c0_8] : memref<1024x512xbf16, #tpu.memory_space<vmem>>, vector<1024x512xbf16>
    %cst_9 = arith.constant dense<0.000000e+00> : vector<16x512xf32>
    %13 = tpu.matmul %11, %12, %cst_9 {dimension_numbers = #tpu.dot_dimension_numbers<[1], [0], [0], [1], [0, 0, 1, 1], [], []>} : vector<16x1024xbf16>, vector<1024x512xbf16>, vector<16x512xf32> -> vector<16x512xf32>
    %14 = arith.truncf %13 : vector<16x512xf32> to vector<16x512xbf16>
    %c0_10 = arith.constant 0 : index
    %c0_11 = arith.constant 0 : index
    %15 = vector.load %arg5[%c0_10, %c0_11] : memref<1x512xbf16, #tpu.memory_space<vmem>>, vector<1x512xbf16>
    %16 = vector.broadcast %15 : vector<1x512xbf16> to vector<16x512xbf16>
    %17 = arith.addf %14, %16 : vector<16x512xbf16>
    %cst_12 = arith.constant 0.000000e+00 : bf16
    %18 = vector.broadcast %cst_12 : bf16 to vector<16x512xbf16>
    %19 = arith.cmpf ogt, %17, %18 : vector<16x512xbf16>
    %cst_13 = arith.constant 2.001950e-01 : bf16
    %20 = vector.broadcast %cst_13 : bf16 to vector<16x512xbf16>
    %21 = arith.mulf %20, %17 : vector<16x512xbf16>
    %22 = arith.select %19, %17, %21 : vector<16x512xi1>, vector<16x512xbf16>
    %c0_14 = arith.constant 0 : index
    %c0_15 = arith.constant 0 : index
    %23 = vector.load %arg6[%c0_14, %c0_15] : memref<512x256xbf16, #tpu.memory_space<vmem>>, vector<512x256xbf16>
    %cst_16 = arith.constant dense<0.000000e+00> : vector<16x256xf32>
    %24 = tpu.matmul %22, %23, %cst_16 {dimension_numbers = #tpu.dot_dimension_numbers<[1], [0], [0], [1], [0, 0, 1, 1], [], []>} : vector<16x512xbf16>, vector<512x256xbf16>, vector<16x256xf32> -> vector<16x256xf32>
    %25 = arith.truncf %24 : vector<16x256xf32> to vector<16x256xbf16>
    %c0_17 = arith.constant 0 : index
    %c0_18 = arith.constant 0 : index
    %26 = vector.load %arg7[%c0_17, %c0_18] : memref<1x256xbf16, #tpu.memory_space<vmem>>, vector<1x256xbf16>
    %27 = vector.broadcast %26 : vector<1x256xbf16> to vector<16x256xbf16>
    %28 = arith.addf %25, %27 : vector<16x256xbf16>
    %cst_19 = arith.constant 0.000000e+00 : bf16
    %29 = vector.broadcast %cst_19 : bf16 to vector<16x256xbf16>
    %30 = arith.cmpf ogt, %28, %29 : vector<16x256xbf16>
    %cst_20 = arith.constant 2.001950e-01 : bf16
    %31 = vector.broadcast %cst_20 : bf16 to vector<16x256xbf16>
    %32 = arith.mulf %31, %28 : vector<16x256xbf16>
    %33 = arith.select %30, %28, %32 : vector<16x256xi1>, vector<16x256xbf16>
    %c0_21 = arith.constant 0 : index
    %c0_22 = arith.constant 0 : index
    %34 = vector.load %arg8[%c0_21, %c0_22] : memref<256x128xbf16, #tpu.memory_space<vmem>>, vector<256x128xbf16>
    %cst_23 = arith.constant dense<0.000000e+00> : vector<16x128xf32>
    %35 = tpu.matmul %33, %34, %cst_23 {dimension_numbers = #tpu.dot_dimension_numbers<[1], [0], [0], [1], [0, 0, 1, 1], [], []>} : vector<16x256xbf16>, vector<256x128xbf16>, vector<16x128xf32> -> vector<16x128xf32>
    %c0_24 = arith.constant 0 : index
    %c0_25 = arith.constant 0 : index
    %36 = vector.load %arg9[%c0_24, %c0_25] : memref<1x128xf32, #tpu.memory_space<vmem>>, vector<1x128xf32>
    %37 = vector.broadcast %36 : vector<1x128xf32> to vector<16x128xf32>
    %38 = arith.addf %35, %37 : vector<16x128xf32>
    %39 = arith.negf %38 : vector<16x128xf32>
    %40 = math.exp %39 : vector<16x128xf32>
    %cst_26 = arith.constant 1.000000e+00 : f32
    %41 = vector.broadcast %cst_26 : f32 to vector<16x128xf32>
    %42 = arith.addf %41, %40 : vector<16x128xf32>
    %43 = arith.divf %41, %42 : vector<16x128xf32>
    %c0_27 = arith.constant 0 : index
    %c0_28 = arith.constant 0 : index
    %44 = vector.load %arg10[%c0_27, %c0_28] : memref<16x128xf32, #tpu.memory_space<vmem>>, vector<16x128xf32>
    tpu.vector_store %arg10[%c0_27, %c0_28], %43 {strides = array<i32>} : memref<16x128xf32, #tpu.memory_space<vmem>>, vector<16x128xf32>,
    return
  }
  func.func @transform_0(%arg0: i32) -> (i32, i32) {
    %c0_i32 = arith.constant 0 : i32
    %c0_i32_0 = arith.constant 0 : i32
    return %arg0, %c0_i32 : i32, i32
  }
  func.func @transform_1(%arg0: i32) -> (i32, i32) {
    %c0_i32 = arith.constant 0 : i32
    %c0_i32_0 = arith.constant 0 : i32
    %c0_i32_1 = arith.constant 0 : i32
    return %c0_i32, %c0_i32_0 : i32, i32
  }
  func.func @transform_2(%arg0: i32) -> (i32, i32) {
    %c0_i32 = arith.constant 0 : i32
    %c0_i32_0 = arith.constant 0 : i32
    %c0_i32_1 = arith.constant 0 : i32
    return %c0_i32, %c0_i32_0 : i32, i32
  }
  func.func @transform_3(%arg0: i32) -> (i32, i32) {
    %c0_i32 = arith.constant 0 : i32
    %c0_i32_0 = arith.constant 0 : i32
    %c0_i32_1 = arith.constant 0 : i32
    return %c0_i32, %c0_i32_0 : i32, i32
  }
  func.func @transform_4(%arg0: i32) -> (i32, i32) {
    %c0_i32 = arith.constant 0 : i32
    %c0_i32_0 = arith.constant 0 : i32
    %c0_i32_1 = arith.constant 0 : i32
    return %c0_i32, %c0_i32_0 : i32, i32
  }
  func.func @transform_5(%arg0: i32) -> (i32, i32) {
    %c0_i32 = arith.constant 0 : i32
    %c0_i32_0 = arith.constant 0 : i32
    %c0_i32_1 = arith.constant 0 : i32
    return %c0_i32, %c0_i32_0 : i32, i32
  }
  func.func @transform_6(%arg0: i32) -> (i32, i32) {
    %c0_i32 = arith.constant 0 : i32
    %c0_i32_0 = arith.constant 0 : i32
    %c0_i32_1 = arith.constant 0 : i32
    return %c0_i32, %c0_i32_0 : i32, i32
  }
  func.func @transform_7(%arg0: i32) -> (i32, i32) {
    %c0_i32 = arith.constant 0 : i32
    %c0_i32_0 = arith.constant 0 : i32
    %c0_i32_1 = arith.constant 0 : i32
    return %c0_i32, %c0_i32_0 : i32, i32
  }
  func.func @transform_8(%arg0: i32) -> (i32, i32) {
    %c0_i32 = arith.constant 0 : i32
    %c0_i32_0 = arith.constant 0 : i32
    %c0_i32_1 = arith.constant 0 : i32
    return %c0_i32, %c0_i32_0 : i32, i32
  }
  func.func @transform_9(%arg0: i32) -> (i32, i32) {
    %c0_i32 = arith.constant 0 : i32
    %c0_i32_0 = arith.constant 0 : i32
    return %arg0, %c0_i32 : i32, i32
  }
}

</mosaic_0001>

<bundles_post_ra>
// kernel: tpu_custom_call.1
= control target key start
LH: loop header
LB: loop body
LE: loop exit
PB: predicated region body
PF: predicated region fallthrough
CT: control target
= control target key end

     0   :  { %14 = vsyncpa [#allocation3], 0  ;;  %s8420_s0 = inlined_call_operand.hbm [shape: bf16[16,896], index: 0, kind: input, shape index: {}]   ;;  %s8421_s1 = inlined_call_operand.hbm [shape: bf16[896,1024], index: 1, kind: input, shape index: {}]   ;;  %s8422_s2 = inlined_call_operand.hbm [shape: bf16[1,1024], index: 2, kind: input, shape index: {}]   ;;  %s8423_s3 = inlined_call_operand.hbm [shape: bf16[1024,512], index: 3, kind: input, shape index: {}]   ;;  %s8424_s4 = inlined_call_operand.hbm [shape: bf16[1,512], index: 4, kind: input, shape index: {}]   ;;  %s8425_s5 = inlined_call_operand.hbm [shape: bf16[512,256], index: 5, kind: input, shape index: {}]   ;;  %s8426_s6 = inlined_call_operand.hbm [shape: bf16[1,256], index: 6, kind: input, shape index: {}]   ;;  %s8427_s7 = inlined_call_operand.hbm [shape: bf16[256,128], index: 7, kind: input, shape index: {}]   ;;  %s8428_s8 = inlined_call_operand.hbm [shape: f32[1,128], index: 8, kind: input, shape index: {}]   ;;  %s8429_s9 = inlined_call_operand.hbm [shape: f32[16,128], index: 9, kind: output, shape index: {}]  }
   0x1   :  { %15 = vsyncpa [#allocation6], 0 }
   0x2   :  { %16 = vsyncpa [#allocation9], 0 }
   0x3   :  { %17 = vsyncpa [#allocation12], 0 }
   0x4   :  { %18 = vsyncpa [#allocation15], 0 }
   0x5   :  { %19 = vsyncpa [#allocation4], 0  ;;  %s8076_s30 = smov [#allocation5]   ;;  %s7844_s13 = scalar_lea.hbm %s8421_s1, 57344 }
   0x6   :  { %s37_s10 = sshll.u32 %s8076_s30, 4  ;;  %p7845_p0 = scmp.ne.s32.totalorder %s8421_s1, %s7844_s13  ;;  %s38_s10 = int_to_ptr.vmem [resolvable:$true] %s37_s10 }
   0x7   :  { %p7848_p1 = scmp.lt.u32.totalorder %s7844_s13, %s8421_s1 }
   0x9   :  { %p7850_p2 = pnand %p7848_p1, %p7845_p0 }
   0xb   :  { %7853 = shalt.err (!%p7850_p2)
}
   0xc   :  { %s7854_s18 = scalar_lea.vmem %s38_s10, 57344  ;;  %p7859_p4 = scmp.lt.s32.totalorder %s38_s10, %s38_s10 }
   0xd   :  { %p7855_p3 = scmp.ne.s32.totalorder %s38_s10, %s7854_s18  ;;  %p7860_p5 = scmp.lt.s32.totalorder %s7854_s18, %s7854_s18 }
   0xf   :  { %p7861_p6 = por %p7860_p5, %p7859_p4 }
  0x11   :  { %p7862_p7 = pnand %p7861_p6, %p7855_p3 }
  0x13   :  { %7865 = shalt.err (!%p7862_p7)
}
  0x14   :  { %s8077_s19 = smov 512   ;;  %s8078_s20 = smov 32  }
  0x15   :  { %43 = dma.hbm_to_vmem [thread:$0]  %s8421_s1, 57344, %s38_s10, [#allocation6], %s8077_s19, %s8077_s19, %s8078_s20  }
  0x16   :  { %s8079_s23 = smov [#allocation8]   ;;  %s7866_s27 = scalar_lea.hbm %s8423_s3, 32768 }
  0x17   :  { %s59_s24 = sshll.u32 %s8079_s23, 4  ;;  %p7867_p8 = scmp.ne.s32.totalorder %s8423_s3, %s7866_s27  ;;  %s60_s24 = int_to_ptr.vmem [resolvable:$true] %s59_s24 }
  0x18   :  { %p7870_p9 = scmp.lt.u32.totalorder %s7866_s27, %s8423_s3 }
  0x1a   :  { %p7872_p10 = pnand %p7870_p9, %p7867_p8 }
  0x1c   :  { %7875 = shalt.err (!%p7872_p10)
}
  0x1d   :  { %s7876_s12 = scalar_lea.vmem %s60_s24, 32768  ;;  %p7881_p12 = scmp.lt.s32.totalorder %s60_s24, %s60_s24 }
  0x1e   :  { %p7877_p11 = scmp.ne.s32.totalorder %s60_s24, %s7876_s12  ;;  %p7882_p13 = scmp.lt.s32.totalorder %s7876_s12, %s7876_s12 }
  0x20   :  { %p7883_p0 = por %p7882_p13, %p7881_p12 }
  0x22   :  { %p7884_p1 = pnand %p7883_p0, %p7877_p11 }
  0x24   :  { %7887 = shalt.err (!%p7884_p1)
}
  0x25   :  { %s8080_s1 = smov 256   ;;  %s8081_s10 = smov 16  }
  0x26   :  { %65 = dma.hbm_to_vmem [thread:$0]  %s8423_s3, 32768, %s60_s24, [#allocation9], %s8080_s1, %s8080_s1, %s8081_s10  }
  0x27   :  { %s8082_s15 = smov [#allocation11]   ;;  %s7888_s19 = scalar_lea.hbm %s8425_s5, 8192 }
  0x28   :  { %s81_s16 = sshll.u32 %s8082_s15, 4  ;;  %p7889_p2 = scmp.ne.s32.totalorder %s8425_s5, %s7888_s19  ;;  %s82_s16 = int_to_ptr.vmem [resolvable:$true] %s81_s16 }
  0x29   :  { %p7892_p3 = scmp.lt.u32.totalorder %s7888_s19, %s8425_s5 }
  0x2b   :  { %p7894_p4 = pnand %p7892_p3, %p7889_p2 }
  0x2d   :  { %7897 = shalt.err (!%p7894_p4)
}
  0x2e   :  { %s7898_s25 = scalar_lea.vmem %s82_s16, 8192  ;;  %p7903_p6 = scmp.lt.s32.totalorder %s82_s16, %s82_s16 }
  0x2f   :  { %p7899_p5 = scmp.ne.s32.totalorder %s82_s16, %s7898_s25  ;;  %p7904_p7 = scmp.lt.s32.totalorder %s7898_s25, %s7898_s25 }
  0x31   :  { %p7905_p8 = por %p7904_p7, %p7903_p6 }
  0x33   :  { %p7906_p9 = pnand %p7905_p8, %p7899_p5 }
  0x35   :  { %7909 = shalt.err (!%p7906_p9)
}
  0x36   :  { %s8083_s3 = smov 128   ;;  %s8084_s24 = smov 8  }
  0x37   :  { %87 = dma.hbm_to_vmem [thread:$0]  %s8425_s5, 8192, %s82_s16, [#allocation12], %s8083_s3, %s8083_s3, %s8084_s24  }
  0x38   :  { %s8085_s28 = smov [#allocation14]   ;;  %s7910_s12 = scalar_lea.hbm %s8427_s7, 2048 }
  0x39   :  { %s103_s29 = sshll.u32 %s8085_s28, 4  ;;  %p7911_p10 = scmp.ne.s32.totalorder %s8427_s7, %s7910_s12  ;;  %s104_s29 = int_to_ptr.vmem [resolvable:$true] %s103_s29 }
  0x3a   :  { %p7914_p11 = scmp.lt.u32.totalorder %s7910_s12, %s8427_s7 }
  0x3c   :  { %p7916_p12 = pnand %p7914_p11, %p7911_p10 }
  0x3e   :  { %7919 = shalt.err (!%p7916_p12)
}
  0x3f   :  { %s7920_s15 = scalar_lea.vmem %s104_s29, 2048  ;;  %p7925_p0 = scmp.lt.s32.totalorder %s104_s29, %s104_s29 }
  0x40   :  { %p7921_p13 = scmp.ne.s32.totalorder %s104_s29, %s7920_s15  ;;  %p7926_p1 = scmp.lt.s32.totalorder %s7920_s15, %s7920_s15 }
  0x42   :  { %p7927_p2 = por %p7926_p1, %p7925_p0 }
  0x44   :  { %p7928_p3 = pnand %p7927_p2, %p7921_p13 }
  0x46   :  { %7931 = shalt.err (!%p7928_p3)
}
  0x47   :  { %s8086_s5 = smov 64   ;;  %s8087_s16 = smov 4  }
  0x48   :  { %109 = dma.hbm_to_vmem [thread:$0]  %s8427_s7, 2048, %s104_s29, [#allocation15], %s8086_s5, %s8086_s5, %s8087_s16  }
  0x49   :  { %s8088_s19 = smov [#allocation2]   ;;  %s7932_s23 = scalar_lea.hbm %s8420_s0, 896 }
  0x4a   :  { %s25_s20 = sshll.u32 %s8088_s19, 4  ;;  %p7933_p4 = scmp.ne.s32.totalorder %s8420_s0, %s7932_s23  ;;  %s26_s20 = int_to_ptr.vmem [resolvable:$true] %s25_s20 }
  0x4b   :  { %p7936_p5 = scmp.lt.u32.totalorder %s7932_s23, %s8420_s0 }
  0x4d   :  { %p7938_p6 = pnand %p7936_p5, %p7933_p4 }
  0x4f   :  { %7941 = shalt.err (!%p7938_p6)
}
  0x50   :  { %s7942_s30 = scalar_lea.vmem %s26_s20, 896  ;;  %p7947_p8 = scmp.lt.s32.totalorder %s26_s20, %s26_s20 }
  0x51   :  { %p7943_p7 = scmp.ne.s32.totalorder %s26_s20, %s7942_s30  ;;  %p7948_p9 = scmp.lt.s32.totalorder %s7942_s30, %s7942_s30 }
  0x53   :  { %p7949_p10 = por %p7948_p9, %p7947_p8 }
  0x55   :  { %p7950_p11 = pnand %p7949_p10, %p7943_p7 }
  0x57   :  { %7953 = shalt.err (!%p7950_p11)
}
  0x58   :  { %s8089_s7 = smov 448   ;;  %s8090_s29 = smov 28  }
  0x59   :  { %31 = dma.hbm_to_vmem [thread:$0]  %s8420_s0, 896, %s26_s20, [#allocation3], %s8089_s7, %s8089_s7, %s8090_s29  }
  0x5a   :  { %s8091_s1 = smov [#allocation7]   ;;  %s8092_s13 = smov [#allocation10]  }
  0x5b   :  { %s50_s10 = sshll.u32 %s8091_s1, 4  ;;  %s72_s14 = sshll.u32 %s8092_s13, 4  ;;  %s51_s10 = int_to_ptr.vmem [resolvable:$true] %s50_s10  ;;  %s73_s14 = int_to_ptr.vmem [resolvable:$true] %s72_s14 }
  0x5c   :  { %s7954_s16 = scalar_lea.hbm %s8422_s2, 128 }
  0x5d   :  { %p7955_p12 = scmp.ne.s32.totalorder %s8422_s2, %s7954_s16  ;;  %p7958_p13 = scmp.lt.u32.totalorder %s7954_s16, %s8422_s2 }
  0x5f   :  { %p7960_p0 = pnand %p7958_p13, %p7955_p12 }
  0x61   :  { %7963 = shalt.err (!%p7960_p0)
}
  0x62   :  { %s7964_s0 = scalar_lea.vmem %s51_s10, 128  ;;  %p7969_p2 = scmp.lt.s32.totalorder %s51_s10, %s51_s10 }
  0x63   :  { %p7965_p1 = scmp.ne.s32.totalorder %s51_s10, %s7964_s0  ;;  %p7970_p3 = scmp.lt.s32.totalorder %s7964_s0, %s7964_s0 }
  0x65   :  { %p7971_p4 = por %p7970_p3, %p7969_p2 }
  0x67   :  { %p7972_p5 = pnand %p7971_p4, %p7965_p1 }
  0x69   :  { %7975 = shalt.err (!%p7972_p5)
}
  0x6a   :  { %53 = dma.hbm_to_vmem [thread:$0]  %s8422_s2, 128, %s51_s10, [#allocation6]  }
  0x6b   :  { %s7976_s26 = scalar_lea.hbm %s8424_s4, 64 }
  0x6c   :  { %p7977_p6 = scmp.ne.s32.totalorder %s8424_s4, %s7976_s26  ;;  %p7980_p7 = scmp.lt.u32.totalorder %s7976_s26, %s8424_s4 }
  0x6e   :  { %p7982_p8 = pnand %p7980_p7, %p7977_p6 }
  0x70   :  { %7985 = shalt.err (!%p7982_p8)
}
  0x71   :  { %s7986_s29 = scalar_lea.vmem %s73_s14, 64  ;;  %p7991_p10 = scmp.lt.s32.totalorder %s73_s14, %s73_s14 }
  0x72   :  { %p7987_p9 = scmp.ne.s32.totalorder %s73_s14, %s7986_s29  ;;  %p7992_p11 = scmp.lt.s32.totalorder %s7986_s29, %s7986_s29 }
  0x74   :  { %p7993_p12 = por %p7992_p11, %p7991_p10 }
  0x76   :  { %p7994_p13 = pnand %p7993_p12, %p7987_p9 }
  0x78   :  { %7997 = shalt.err (!%p7994_p13)
}
  0x79   :  { %75 = dma.hbm_to_vmem [thread:$0]  %s8424_s4, 64, %s73_s14, [#allocation9]  }
  0x7a   :  { %s8093_s12 = smov [#allocation13]   ;;  %s8094_s10 = smov [#allocation16]  }
  0x7b   :  { %s94_s1 = sshll.u32 %s8093_s12, 4  ;;  %s116_s13 = sshll.u32 %s8094_s10, 4  ;;  %s95_s1 = int_to_ptr.vmem [resolvable:$true] %s94_s1  ;;  %s117_s13 = int_to_ptr.vmem [resolvable:$true] %s116_s13 }
  0x7c   :  { %s7998_s16 = scalar_lea.hbm %s8426_s6, 32 }
  0x7d   :  { %p7999_p0 = scmp.ne.s32.totalorder %s8426_s6, %s7998_s16  ;;  %p8002_p1 = scmp.lt.u32.totalorder %s7998_s16, %s8426_s6 }
  0x7f   :  { %p8004_p2 = pnand %p8002_p1, %p7999_p0 }
  0x81   :  { %8007 = shalt.err (!%p8004_p2)
}
  0x82   :  { %s8008_s4 = scalar_lea.vmem %s95_s1, 32  ;;  %p8013_p4 = scmp.lt.s32.totalorder %s95_s1, %s95_s1 }
  0x83   :  { %p8009_p3 = scmp.ne.s32.totalorder %s95_s1, %s8008_s4  ;;  %p8014_p5 = scmp.lt.s32.totalorder %s8008_s4, %s8008_s4 }
  0x85   :  { %p8015_p6 = por %p8014_p5, %p8013_p4 }
  0x87   :  { %p8016_p7 = pnand %p8015_p6, %p8009_p3 }
  0x89   :  { %8019 = shalt.err (!%p8016_p7)
}
  0x8a   :  { %97 = dma.hbm_to_vmem [thread:$0]  %s8426_s6, 32, %s95_s1, [#allocation12]  }
  0x8b   :  { %s8020_s23 = scalar_lea.hbm %s8428_s8, 16 }
  0x8c   :  { %p8021_p8 = scmp.ne.s32.totalorder %s8428_s8, %s8020_s23  ;;  %p8024_p9 = scmp.lt.u32.totalorder %s8020_s23, %s8428_s8 }
  0x8e   :  { %p8026_p10 = pnand %p8024_p9, %p8021_p8 }
  0x90   :  { %8029 = shalt.err (!%p8026_p10)
}
  0x91   :  { %s8030_s30 = scalar_lea.vmem %s117_s13, 16  ;;  %s8034_s7 = scalar_lea.vmem %s117_s13, 32 }
  0x92   :  { %p8031_p11 = scmp.ne.s32.totalorder %s117_s13, %s8030_s30  ;;  %p8035_p12 = scmp.lt.s32.totalorder %s117_s13, %s117_s13 }
  0x93   :  { %p8036_p13 = scmp.lt.s32.totalorder %s8034_s7, %s8030_s30 }
  0x95   :  { %p8037_p0 = por %p8036_p13, %p8035_p12 }
  0x97   :  { %p8038_p1 = pnand %p8037_p0, %p8031_p11 }
  0x99   :  { %8041 = shalt.err (!%p8038_p1)
}
  0x9a   :  { %119 = dma.hbm_to_vmem [thread:$0]  %s8428_s8, 16, %s117_s13, [#allocation15]  }
  0x9b   :  { %8064 = dma.done.wait [#allocation3], 896  }
  0x9c   :  { %8065 = vsyncadd [#allocation3], 4294966400 }
  0x9d   :  { %8066 = dma.done.wait [#allocation6], 57472  }
  0x9e   :  { %8067 = vsyncadd [#allocation6], 4294909824 }
  0x9f   :  { %8068 = dma.done.wait [#allocation9], 32832  }
  0xa0   :  { %8069 = vsyncadd [#allocation9], 4294934464 }
  0xa1   :  { %8070 = dma.done.wait [#allocation12], 8224  }
  0xa2   :  { %8071 = vsyncadd [#allocation12], 4294959072 }
  0xa3   :  { %8072 = dma.done.wait [#allocation15], 2064  }
  0xa4   :  { %8073 = vsyncadd [#allocation15], 4294965232  ;;  %v157_v0 = vld [vmem:[#allocation5] sm:$0xff]  ;;  %v8259_v57 = vld [vmem:[#allocation2 + $0x4] ss:$28 sps:$4 sm:$0xff]   ;;  %s8097_s8 = smov [#allocation17]  }
  0xa5   :  { %v161_v1 = vld [vmem:[#allocation5 + $0x20] sm:$0xff]  ;;  %v8261_v59 = vld [vmem:[#allocation2 + $0xc] ss:$28 sps:$4 sm:$0xff]   ;;  %2913 = vmatprep.mubr.bf16.mxu1 %v8259_v57  ;;  %s6383_s2 = sshll.u32 %s8097_s8, 4  ;;  %s6384_s2 = int_to_ptr.vmem [resolvable:$true] %s6383_s2 }
  0xa6   :  { %v285_v2 = vld [vmem:[#allocation5 + $0x400] sm:$0xff]  ;;  %v6407_v3 = vcombine.high %v157_v0, %v161_v1  ;;  %v6406_v5 = vcombine.low %v157_v0, %v161_v1  ;;  %2956 = vmatprep.mubr.bf16.mxu0 %v8261_v59  ;;  %s8042_s11 = scalar_lea.vmem %s6384_s2, 256  ;;  %p8047_p3 = scmp.lt.s32.totalorder %s6384_s2, %s6384_s2 }
  0xa7   :  { %v289_v4 = vld [vmem:[#allocation5 + $0x420] sm:$0xff]  ;;  %p8043_p2 = scmp.ne.s32.totalorder %s6384_s2, %s8042_s11  ;;  %p8048_p4 = scmp.lt.s32.totalorder %s8042_s11, %s8042_s11 }
  0xa8   :  { %v165_v6 = vld [vmem:[#allocation5 + $0x40] sm:$0xff]  ;;  %v6535_v8 = vcombine.high %v285_v2, %v289_v4  ;;  %v6534_v9 = vcombine.low %v285_v2, %v289_v4  ;;  %2881 = vmatprep.subr.bf16.mxu1 %v6407_v3 }
  0xa9   :  { %v169_v7 = vld [vmem:[#allocation5 + $0x60] sm:$0xff]  ;;  %2882 = vmatpush1.bf16.msra.mxu1 %v6406_v5  ;;  %p8049_p5 = por %p8048_p4, %p8047_p3 }
  0xaa   :  { %v6415_v10 = vcombine.high %v165_v6, %v169_v7  ;;  %v293_v11 = vld [vmem:[#allocation5 + $0x440] sm:$0xff]  ;;  %2924 = vmatprep.subr.bf16.mxu0 %v6535_v8  ;;  %v6414_v18 = vcombine.low %v165_v6, %v169_v7 }
  0xab   :  { %v297_v12 = vld [vmem:[#allocation5 + $0x460] sm:$0xff]  ;;  %2925 = vmatpush1.bf16.msra.mxu0 %v6534_v9  ;;  %p8050_p6 = pnand %p8049_p5, %p8043_p2 }
  0xac   :  { %v173_v13 = vld [vmem:[#allocation5 + $0x80] sm:$0xff]  ;;  %v6543_v14 = vcombine.high %v293_v11, %v297_v12  ;;  %2883 = vmatprep.subr.bf16.mxu1 %v6415_v10  ;;  %v6542_v19 = vcombine.low %v293_v11, %v297_v12 }
  0xad   :  { %v177_v15 = vld [vmem:[#allocation5 + $0xa0] sm:$0xff]  ;;  %2884 = vmatpush1.bf16.msra.mxu1 %v6414_v18 }
  0xae   :  { %v301_v16 = vld [vmem:[#allocation5 + $0x480] sm:$0xff]  ;;  %v6423_v20 = vcombine.high %v173_v13, %v177_v15  ;;  %2926 = vmatprep.subr.bf16.mxu0 %v6543_v14  ;;  %v6422_v26 = vcombine.low %v173_v13, %v177_v15 }
  0xaf   :  { %v305_v17 = vld [vmem:[#allocation5 + $0x4a0] sm:$0xff]  ;;  %2927 = vmatpush1.bf16.msra.mxu0 %v6542_v19 }
  0xb0   :  { %v6551_v21 = vcombine.high %v301_v16, %v305_v17  ;;  %v181_v22 = vld [vmem:[#allocation5 + $0xc0] sm:$0xff]  ;;  %2885 = vmatprep.subr.bf16.mxu1 %v6423_v20  ;;  %v6550_v27 = vcombine.low %v301_v16, %v305_v17 }
  0xb1   :  { %v185_v23 = vld [vmem:[#allocation5 + $0xe0] sm:$0xff]  ;;  %2886 = vmatpush1.bf16.msra.mxu1 %v6422_v26 }
  0xb2   :  { %v309_v24 = vld [vmem:[#allocation5 + $0x4c0] sm:$0xff]  ;;  %v6431_v28 = vcombine.high %v181_v22, %v185_v23  ;;  %2928 = vmatprep.subr.bf16.mxu0 %v6551_v21  ;;  %v6430_v34 = vcombine.low %v181_v22, %v185_v23 }
  0xb3   :  { %v313_v25 = vld [vmem:[#allocation5 + $0x4e0] sm:$0xff]  ;;  %2929 = vmatpush1.bf16.msra.mxu0 %v6550_v27 }
  0xb4   :  { %v6559_v29 = vcombine.high %v309_v24, %v313_v25  ;;  %v189_v30 = vld [vmem:[#allocation5 + $0x100] sm:$0xff]  ;;  %2887 = vmatprep.subr.bf16.mxu1 %v6431_v28  ;;  %v6558_v35 = vcombine.low %v309_v24, %v313_v25 }
  0xb5   :  { %v193_v31 = vld [vmem:[#allocation5 + $0x120] sm:$0xff]  ;;  %2888 = vmatpush1.bf16.msra.mxu1 %v6430_v34 }
  0xb6   :  { %v317_v32 = vld [vmem:[#allocation5 + $0x500] sm:$0xff]  ;;  %v6439_v36 = vcombine.high %v189_v30, %v193_v31  ;;  %2930 = vmatprep.subr.bf16.mxu0 %v6559_v29  ;;  %v6438_v42 = vcombine.low %v189_v30, %v193_v31 }
  0xb7   :  { %v321_v33 = vld [vmem:[#allocation5 + $0x520] sm:$0xff]  ;;  %2931 = vmatpush1.bf16.msra.mxu0 %v6558_v35 }
  0xb8   :  { %v6567_v37 = vcombine.high %v317_v32, %v321_v33  ;;  %v197_v38 = vld [vmem:[#allocation5 + $0x140] sm:$0xff]  ;;  %2889 = vmatprep.subr.bf16.mxu1 %v6439_v36  ;;  %v6566_v43 = vcombine.low %v317_v32, %v321_v33 }
  0xb9   :  { %v201_v39 = vld [vmem:[#allocation5 + $0x160] sm:$0xff]  ;;  %2890 = vmatpush1.bf16.msra.mxu1 %v6438_v42 }
  0xba   :  { %v325_v40 = vld [vmem:[#allocation5 + $0x540] sm:$0xff]  ;;  %v6447_v44 = vcombine.high %v197_v38, %v201_v39  ;;  %2932 = vmatprep.subr.bf16.mxu0 %v6567_v37  ;;  %v6446_v50 = vcombine.low %v197_v38, %v201_v39 }
  0xbb   :  { %v329_v41 = vld [vmem:[#allocation5 + $0x560] sm:$0xff]  ;;  %2933 = vmatpush1.bf16.msra.mxu0 %v6566_v43 }
  0xbc   :  { %v6575_v45 = vcombine.high %v325_v40, %v329_v41  ;;  %v205_v46 = vld [vmem:[#allocation5 + $0x180] sm:$0xff]  ;;  %2891 = vmatprep.subr.bf16.mxu1 %v6447_v44  ;;  %v6574_v52 = vcombine.low %v325_v40, %v329_v41 }
  0xbd   :  { %v209_v47 = vld [vmem:[#allocation5 + $0x1a0] sm:$0xff]  ;;  %2892 = vmatpush1.bf16.msra.mxu1 %v6446_v50 }
  0xbe   :  { %v333_v48 = vld [vmem:[#allocation5 + $0x580] sm:$0xff]  ;;  %v6455_v53 = vcombine.high %v205_v46, %v209_v47  ;;  %2934 = vmatprep.subr.bf16.mxu0 %v6575_v45  ;;  %v6454_v60 = vcombine.low %v205_v46, %v209_v47 }
  0xbf   :  { %v337_v49 = vld [vmem:[#allocation5 + $0x5a0] sm:$0xff]  ;;  %2935 = vmatpush1.bf16.msra.mxu0 %v6574_v52 }
  0xc0   :  { %v213_v51 = vld [vmem:[#allocation5 + $0x1c0] sm:$0xff]  ;;  %v6583_v55 = vcombine.high %v333_v48, %v337_v49  ;;  %2893 = vmatprep.subr.bf16.mxu1 %v6455_v53  ;;  %v6582_v61 = vcombine.low %v333_v48, %v337_v49 }
  0xc1   :  { %v217_v54 = vld [vmem:[#allocation5 + $0x1e0] sm:$0xff]  ;;  %2894 = vmatpush1.bf16.msra.mxu1 %v6454_v60 }
  0xc2   :  { %v341_v56 = vld [vmem:[#allocation5 + $0x5c0] sm:$0xff]  ;;  %v6463_v62 = vcombine.high %v213_v51, %v217_v54  ;;  %2936 = vmatprep.subr.bf16.mxu0 %v6583_v55  ;;  %v6462_v4 = vcombine.low %v213_v51, %v217_v54 }
  0xc3   :  { %v345_v58 = vld [vmem:[#allocation5 + $0x5e0] sm:$0xff]  ;;  %2937 = vmatpush1.bf16.msra.mxu0 %v6582_v61 }
  0xc4   :  { %v6591_v63 = vcombine.high %v341_v56, %v345_v58  ;;  %v221_v0 = vld [vmem:[#allocation5 + $0x200] sm:$0xff]  ;;  %2895 = vmatprep.subr.bf16.mxu1 %v6463_v62  ;;  %v6590_v5 = vcombine.low %v341_v56, %v345_v58 }
  0xc5   :  { %v225_v1 = vld [vmem:[#allocation5 + $0x220] sm:$0xff]  ;;  %2896 = vmatpush1.bf16.msra.mxu1 %v6462_v4 }
  0xc6   :  { %v349_v2 = vld [vmem:[#allocation5 + $0x600] sm:$0xff]  ;;  %v6471_v6 = vcombine.high %v221_v0, %v225_v1  ;;  %2938 = vmatprep.subr.bf16.mxu0 %v6591_v63  ;;  %v6470_v12 = vcombine.low %v221_v0, %v225_v1 }
  0xc7   :  { %v353_v3 = vld [vmem:[#allocation5 + $0x620] sm:$0xff]  ;;  %2939 = vmatpush1.bf16.msra.mxu0 %v6590_v5 }
  0xc8   :  { %v6599_v7 = vcombine.high %v349_v2, %v353_v3  ;;  %v229_v8 = vld [vmem:[#allocation5 + $0x240] sm:$0xff]  ;;  %2897 = vmatprep.subr.bf16.mxu1 %v6471_v6  ;;  %v6598_v13 = vcombine.low %v349_v2, %v353_v3  ;;  %v158_v2 = vld [vmem:[#allocation5 + $0x8] sm:$0xff] }
  0xc9   :  { %v233_v9 = vld [vmem:[#allocation5 + $0x260] sm:$0xff]  ;;  %2898 = vmatpush1.bf16.msra.mxu1 %v6470_v12  ;;  %v162_v3 = vld [vmem:[#allocation5 + $0x28] sm:$0xff] }
  0xca   :  { %v357_v10 = vld [vmem:[#allocation5 + $0x640] sm:$0xff]  ;;  %v6479_v14 = vcombine.high %v229_v8, %v233_v9  ;;  %2940 = vmatprep.subr.bf16.mxu0 %v6599_v7  ;;  %v6478_v20 = vcombine.low %v229_v8, %v233_v9  ;;  %v6409_v8 = vcombine.high %v158_v2, %v162_v3 }
  0xcb   :  { %v361_v11 = vld [vmem:[#allocation5 + $0x660] sm:$0xff]  ;;  %2941 = vmatpush1.bf16.msra.mxu0 %v6598_v13 }
  0xcc   :  { %v6607_v15 = vcombine.high %v357_v10, %v361_v11  ;;  %v237_v16 = vld [vmem:[#allocation5 + $0x280] sm:$0xff]  ;;  %2899 = vmatprep.subr.bf16.mxu1 %v6479_v14  ;;  %v6606_v21 = vcombine.low %v357_v10, %v361_v11  ;;  %v166_v10 = vld [vmem:[#allocation5 + $0x48] sm:$0xff] }
  0xcd   :  { %v241_v17 = vld [vmem:[#allocation5 + $0x2a0] sm:$0xff]  ;;  %2900 = vmatpush1.bf16.msra.mxu1 %v6478_v20  ;;  %v170_v11 = vld [vmem:[#allocation5 + $0x68] sm:$0xff] }
  0xce   :  { %v365_v18 = vld [vmem:[#allocation5 + $0x680] sm:$0xff]  ;;  %v6487_v22 = vcombine.high %v237_v16, %v241_v17  ;;  %2942 = vmatprep.subr.bf16.mxu0 %v6607_v15  ;;  %v6486_v28 = vcombine.low %v237_v16, %v241_v17  ;;  %v6408_v15 = vcombine.low %v158_v2, %v162_v3  ;;  %v7320_v16 = vld [vmem:[#allocation2 + $0x8] ss:$28 sps:$4 sm:$0xff]  }
  0xcf   :  { %v369_v19 = vld [vmem:[#allocation5 + $0x6a0] sm:$0xff]  ;;  %2943 = vmatpush1.bf16.msra.mxu0 %v6606_v21  ;;  %v174_v20 = vld [vmem:[#allocation5 + $0x88] sm:$0xff] }
  0xd0   :  { %v6615_v23 = vcombine.high %v365_v18, %v369_v19  ;;  %v245_v24 = vld [vmem:[#allocation5 + $0x2c0] sm:$0xff]  ;;  %2901 = vmatprep.subr.bf16.mxu1 %v6487_v22  ;;  %v6614_v29 = vcombine.low %v365_v18, %v369_v19  ;;  %v6417_v18 = vcombine.high %v166_v10, %v170_v11  ;;  %v178_v21 = vld [vmem:[#allocation5 + $0xa8] sm:$0xff]  ;;  %v7321_v22 = vld [vmem:[#allocation2 + $0x14] ss:$28 sps:$4 sm:$0xff]  }
  0xd1   :  { %v249_v25 = vld [vmem:[#allocation5 + $0x2e0] sm:$0xff]  ;;  %2902 = vmatpush1.bf16.msra.mxu1 %v6486_v28 }
  0xd2   :  { %v373_v26 = vld [vmem:[#allocation5 + $0x6c0] sm:$0xff]  ;;  %v6495_v30 = vcombine.high %v245_v24, %v249_v25  ;;  %2944 = vmatprep.subr.bf16.mxu0 %v6615_v23  ;;  %v6494_v36 = vcombine.low %v245_v24, %v249_v25  ;;  %v6416_v25 = vcombine.low %v166_v10, %v170_v11 }
  0xd3   :  { %v377_v27 = vld [vmem:[#allocation5 + $0x6e0] sm:$0xff]  ;;  %2945 = vmatpush1.bf16.msra.mxu0 %v6614_v29  ;;  %v182_v29 = vld [vmem:[#allocation5 + $0xc8] sm:$0xff] }
  0xd4   :  { %v6623_v31 = vcombine.high %v373_v26, %v377_v27  ;;  %v253_v32 = vld [vmem:[#allocation5 + $0x300] sm:$0xff]  ;;  %2903 = vmatprep.subr.bf16.mxu1 %v6495_v30  ;;  %v6622_v37 = vcombine.low %v373_v26, %v377_v27  ;;  %v6425_v27 = vcombine.high %v174_v20, %v178_v21  ;;  %v186_v30 = vld [vmem:[#allocation5 + $0xe8] sm:$0xff] }
  0xd5   :  { %v257_v33 = vld [vmem:[#allocation5 + $0x320] sm:$0xff]  ;;  %2904 = vmatpush1.bf16.msra.mxu1 %v6494_v36 }
  0xd6   :  { %v381_v34 = vld [vmem:[#allocation5 + $0x700] sm:$0xff]  ;;  %v6503_v38 = vcombine.high %v253_v32, %v257_v33  ;;  %2946 = vmatprep.subr.bf16.mxu0 %v6623_v31  ;;  %v6502_v44 = vcombine.low %v253_v32, %v257_v33  ;;  %v6424_v33 = vcombine.low %v174_v20, %v178_v21 }
  0xd7   :  { %v385_v35 = vld [vmem:[#allocation5 + $0x720] sm:$0xff]  ;;  %2947 = vmatpush1.bf16.msra.mxu0 %v6622_v37 }
  0xd8   :  { %v6631_v39 = vcombine.high %v381_v34, %v385_v35  ;;  %v261_v40 = vld [vmem:[#allocation5 + $0x340] sm:$0xff]  ;;  %2905 = vmatprep.subr.bf16.mxu1 %v6503_v38  ;;  %v6630_v45 = vcombine.low %v381_v34, %v385_v35  ;;  %v6433_v35 = vcombine.high %v182_v29, %v186_v30  ;;  %v190_v38 = vld [vmem:[#allocation5 + $0x108] sm:$0xff] }
  0xd9   :  { %v265_v41 = vld [vmem:[#allocation5 + $0x360] sm:$0xff]  ;;  %2906 = vmatpush1.bf16.msra.mxu1 %v6502_v44 }
  0xda   :  { %v389_v42 = vld [vmem:[#allocation5 + $0x740] sm:$0xff]  ;;  %v6511_v46 = vcombine.high %v261_v40, %v265_v41  ;;  %2948 = vmatprep.subr.bf16.mxu0 %v6631_v39  ;;  %v6510_v52 = vcombine.low %v261_v40, %v265_v41  ;;  %v194_v40 = vld [vmem:[#allocation5 + $0x128] sm:$0xff]  ;;  %v6432_v41 = vcombine.low %v182_v29, %v186_v30 }
  0xdb   :  { %v393_v43 = vld [vmem:[#allocation5 + $0x760] sm:$0xff]  ;;  %2949 = vmatpush1.bf16.msra.mxu0 %v6630_v45  ;;  %v198_v45 = vld [vmem:[#allocation5 + $0x148] sm:$0xff] }
  0xdc   :  { %v6639_v47 = vcombine.high %v389_v42, %v393_v43  ;;  %v269_v48 = vld [vmem:[#allocation5 + $0x380] sm:$0xff]  ;;  %2907 = vmatprep.subr.bf16.mxu1 %v6511_v46  ;;  %v6638_v53 = vcombine.low %v389_v42, %v393_v43  ;;  %v6441_v43 = vcombine.high %v190_v38, %v194_v40 }
  0xdd   :  { %v273_v49 = vld [vmem:[#allocation5 + $0x3a0] sm:$0xff]  ;;  %2908 = vmatpush1.bf16.msra.mxu1 %v6510_v52 }
  0xde   :  { %v397_v50 = vld [vmem:[#allocation5 + $0x780] sm:$0xff]  ;;  %v6519_v54 = vcombine.high %v269_v48, %v273_v49  ;;  %2950 = vmatprep.subr.bf16.mxu0 %v6639_v47  ;;  %v6518_v62 = vcombine.low %v269_v48, %v273_v49  ;;  %v202_v47 = vld [vmem:[#allocation5 + $0x168] sm:$0xff]  ;;  %v6440_v48 = vcombine.low %v190_v38, %v194_v40 }
  0xdf   :  { %v401_v51 = vld [vmem:[#allocation5 + $0x7a0] sm:$0xff]  ;;  %2951 = vmatpush1.bf16.msra.mxu0 %v6638_v53  ;;  %v206_v53 = vld [vmem:[#allocation5 + $0x188] sm:$0xff] }
  0xe0   :  { %v6647_v55 = vcombine.high %v397_v50, %v401_v51  ;;  %v277_v56 = vld [vmem:[#allocation5 + $0x3c0] sm:$0xff]  ;;  %2909 = vmatprep.subr.bf16.mxu1 %v6519_v54  ;;  %v6646_v63 = vcombine.low %v397_v50, %v401_v51  ;;  %v6449_v50 = vcombine.high %v198_v45, %v202_v47  ;;  %v254_v40 = vld [vmem:[#allocation5 + $0x308] sm:$0xff] }
  0xe1   :  { %v281_v58 = vld [vmem:[#allocation5 + $0x3e0] sm:$0xff]  ;;  %2910 = vmatpush1.bf16.msra.mxu1 %v6518_v62 }
  0xe2   :  { %v405_v60 = vld [vmem:[#allocation5 + $0x7c0] sm:$0xff]  ;;  %v6527_v0 = vcombine.high %v277_v56, %v281_v58  ;;  %2952 = vmatprep.subr.bf16.mxu0 %v6647_v55  ;;  %v6526_v6 = vcombine.low %v277_v56, %v281_v58  ;;  %v210_v55 = vld [vmem:[#allocation5 + $0x1a8] sm:$0xff]  ;;  %v6448_v56 = vcombine.low %v198_v45, %v202_v47 }
  0xe3   :  { %v409_v61 = vld [vmem:[#allocation5 + $0x7e0] sm:$0xff]  ;;  %2953 = vmatpush1.bf16.msra.mxu0 %v6646_v63  ;;  %v214_v63 = vld [vmem:[#allocation5 + $0x1c8] sm:$0xff]  ;;  %v6456_v2 = vcombine.low %v206_v53, %v210_v55 }
  0xe4   :  { %v6655_v1 = vcombine.high %v405_v60, %v409_v61  ;;  %v413_v4 = vld [vmem:[#allocation5 + $0x800] sm:$0xff]  ;;  %2911 = vmatprep.subr.bf16.mxu1 %v6527_v0  ;;  %v6654_v7 = vcombine.low %v405_v60, %v409_v61  ;;  %v6457_v60 = vcombine.high %v206_v53, %v210_v55  ;;  %v262_v47 = vld [vmem:[#allocation5 + $0x348] sm:$0xff] }
  0xe5   :  { %v417_v5 = vld [vmem:[#allocation5 + $0x820] sm:$0xff]  ;;  %2912 = vmatpush1.bf16.msra.mxu1 %v6526_v6  ;;  %v270_v55 = vld [vmem:[#allocation5 + $0x388] sm:$0xff] }
  0xe6   :  { %2954 = vmatprep.subr.bf16.mxu0 %v6655_v1  ;;  %v6663_v9 = vcombine.high %v413_v4, %v417_v5  ;;  %v8265_v12 = vld [vmem:[#allocation2] ss:$28 sps:$4 sm:$0xff]   ;;  %v6662_v17 = vcombine.low %v413_v4, %v417_v5  ;;  %3053 = vmatprep.subr.bf16.mxu1 %v6409_v8 }
  0xe7   :  { %v421_v13 = vld [vmem:[#allocation5 + $0x840] sm:$0xff]  ;;  %2955 = vmatpush1.bf16.msra.mxu0 %v6654_v7  ;;  %v218_v1 = vld [vmem:[#allocation5 + $0x1e8] sm:$0xff] }
  0xe8   :  { %v425_v14 = vld [vmem:[#allocation5 + $0x860] sm:$0xff]  ;;  %2967 = vmatprep.subr.bf16.mxu0 %v6663_v9  ;;  %2914 = vmatmul.mubr.bf16.vlgmr.msra.gmra.mrb[0].mxu1 %v8265_v12  ;;  %v6465_v4 = vcombine.high %v214_v63, %v218_v1  ;;  %v222_v7 = vld [vmem:[#allocation5 + $0x208] sm:$0xff]  ;;  %v6464_v10 = vcombine.low %v214_v63, %v218_v1 }
  0xe9   :  { %v6671_v19 = vcombine.high %v421_v13, %v425_v14  ;;  %v429_v23 = vld [vmem:[#allocation5 + $0x880] sm:$0xff]  ;;  %3054 = vmatpush1.bf16.msra.mxu1 %v6408_v15  ;;  %v6670_v26 = vcombine.low %v421_v13, %v425_v14  ;;  %3085 = vmatprep.mubr.bf16.mxu1 %v8259_v57  ;;  %v226_v9 = vld [vmem:[#allocation5 + $0x228] sm:$0xff] }
  0xea   :  { %v433_v24 = vld [vmem:[#allocation5 + $0x8a0] sm:$0xff]  ;;  %2957 = vmatmul.mubr.bf16.vlgmr.msra.gmra.mrb[0].mxu0 %v7320_v16  ;;  %3055 = vmatprep.subr.bf16.mxu1 %v6417_v18  ;;  %v6473_v13 = vcombine.high %v222_v7, %v226_v9  ;;  %v230_v16 = vld [vmem:[#allocation5 + $0x248] sm:$0xff] }
  0xeb   :  { %2968 = vmatpush1.bf16.msra.mxu0 %v6662_v17  ;;  %v6679_v28 = vcombine.high %v429_v23, %v433_v24  ;;  %2999 = vmatprep.mubr.bf16.mxu0 %v7321_v22  ;;  %v437_v31 = vld [vmem:[#allocation5 + $0x8c0] sm:$0xff]  ;;  %v6678_v34 = vcombine.low %v429_v23, %v433_v24  ;;  %v234_v18 = vld [vmem:[#allocation5 + $0x268] sm:$0xff] }
  0xec   :  { %2969 = vmatprep.subr.bf16.mxu0 %v6671_v19  ;;  %v441_v32 = vld [vmem:[#allocation5 + $0x8e0] sm:$0xff]  ;;  %v6472_v19 = vcombine.low %v222_v7, %v226_v9  ;;  %v6481_v21 = vcombine.high %v230_v16, %v234_v18  ;;  %v238_v24 = vld [vmem:[#allocation5 + $0x288] sm:$0xff] }
  0xed   :  { %3056 = vmatpush1.bf16.msra.mxu1 %v6416_v25  ;;  %v445_v36 = vld [vmem:[#allocation5 + $0x900] sm:$0xff]  ;;  %v6687_v39 = vcombine.high %v437_v31, %v441_v32  ;;  %v6686_v42 = vcombine.low %v437_v31, %v441_v32  ;;  %v246_v32 = vld [vmem:[#allocation5 + $0x2c8] sm:$0xff] }
  0xee   :  { %3057 = vmatprep.subr.bf16.mxu1 %v6425_v27  ;;  %v449_v37 = vld [vmem:[#allocation5 + $0x920] sm:$0xff]  ;;  %v6480_v27 = vcombine.low %v230_v16, %v234_v18  ;;  %v278_v1 = vld [vmem:[#allocation5 + $0x3c8] sm:$0xff] }
  0xef   :  { %2970 = vmatpush1.bf16.msra.mxu0 %v6670_v26  ;;  %v453_v44 = vld [vmem:[#allocation5 + $0x940] sm:$0xff]  ;;  %v6695_v46 = vcombine.high %v445_v36, %v449_v37  ;;  %v6694_v49 = vcombine.low %v445_v36, %v449_v37  ;;  %v242_v26 = vld [vmem:[#allocation5 + $0x2a8] sm:$0xff] }
  0xf0   :  { %2971 = vmatprep.subr.bf16.mxu0 %v6679_v28  ;;  %v457_v57 = vld [vmem:[#allocation5 + $0x960] sm:$0xff]  ;;  %v6489_v29 = vcombine.high %v238_v24, %v242_v26  ;;  %v286_v9 = vld [vmem:[#allocation5 + $0x408] sm:$0xff] }
  0xf1   :  { %3058 = vmatpush1.bf16.msra.mxu1 %v6424_v33  ;;  %v461_v51 = vld [vmem:[#allocation5 + $0x980] sm:$0xff]  ;;  %v6703_v54 = vcombine.high %v453_v44, %v457_v57  ;;  %v6702_v58 = vcombine.low %v453_v44, %v457_v57  ;;  %v294_v18 = vld [vmem:[#allocation5 + $0x448] sm:$0xff] }
  0xf2   :  { %3059 = vmatprep.subr.bf16.mxu1 %v6433_v35  ;;  %v465_v52 = vld [vmem:[#allocation5 + $0x9a0] sm:$0xff]  ;;  %v6488_v35 = vcombine.low %v238_v24, %v242_v26 }
  0xf3   :  { %2972 = vmatpush1.bf16.msra.mxu0 %v6678_v34  ;;  %v469_v61 = vld [vmem:[#allocation5 + $0x9c0] sm:$0xff]  ;;  %v6711_v0 = vcombine.high %v461_v51, %v465_v52  ;;  %v6710_v3 = vcombine.low %v461_v51, %v465_v52  ;;  %v250_v34 = vld [vmem:[#allocation5 + $0x2e8] sm:$0xff] }
  0xf4   :  { %2973 = vmatprep.subr.bf16.mxu0 %v6687_v39  ;;  %v473_v62 = vld [vmem:[#allocation5 + $0x9e0] sm:$0xff]  ;;  %v6497_v37 = vcombine.high %v246_v32, %v250_v34 }
  0xf5   :  { %3060 = vmatpush1.bf16.msra.mxu1 %v6432_v41  ;;  %v477_v5 = vld [vmem:[#allocation5 + $0xa00] sm:$0xff]  ;;  %v6719_v8 = vcombine.high %v469_v61, %v473_v62  ;;  %v6718_v11 = vcombine.low %v469_v61, %v473_v62 }
  0xf6   :  { %3061 = vmatprep.subr.bf16.mxu1 %v6441_v43  ;;  %v481_v6 = vld [vmem:[#allocation5 + $0xa20] sm:$0xff]  ;;  %v6496_v43 = vcombine.low %v246_v32, %v250_v34 }
  0xf7   :  { %2974 = vmatpush1.bf16.msra.mxu0 %v6686_v42  ;;  %v485_v14 = vld [vmem:[#allocation5 + $0xa40] sm:$0xff]  ;;  %v6727_v17 = vcombine.high %v477_v5, %v481_v6  ;;  %v6726_v20 = vcombine.low %v477_v5, %v481_v6  ;;  %v258_v42 = vld [vmem:[#allocation5 + $0x328] sm:$0xff] }
  0xf8   :  { %2975 = vmatprep.subr.bf16.mxu0 %v6695_v46  ;;  %v489_v15 = vld [vmem:[#allocation5 + $0xa60] sm:$0xff]  ;;  %v6505_v57 = vcombine.high %v254_v40, %v258_v42 }
  0xf9   :  { %3062 = vmatpush1.bf16.msra.mxu1 %v6440_v48  ;;  %v493_v22 = vld [vmem:[#allocation5 + $0xa80] sm:$0xff]  ;;  %v6735_v25 = vcombine.high %v485_v14, %v489_v15  ;;  %v6734_v28 = vcombine.low %v485_v14, %v489_v15 }
  0xfa   :  { %3063 = vmatprep.subr.bf16.mxu1 %v6449_v50  ;;  %v497_v23 = vld [vmem:[#allocation5 + $0xaa0] sm:$0xff]  ;;  %v6504_v50 = vcombine.low %v254_v40, %v258_v42 }
  0xfb   :  { %2976 = vmatpush1.bf16.msra.mxu0 %v6694_v49  ;;  %v501_v30 = vld [vmem:[#allocation5 + $0xac0] sm:$0xff]  ;;  %v6743_v33 = vcombine.high %v493_v22, %v497_v23  ;;  %v6742_v36 = vcombine.low %v493_v22, %v497_v23  ;;  %v266_v49 = vld [vmem:[#allocation5 + $0x368] sm:$0xff] }
  0xfc   :  { %2977 = vmatprep.subr.bf16.mxu0 %v6703_v54  ;;  %v505_v31 = vld [vmem:[#allocation5 + $0xae0] sm:$0xff]  ;;  %v6513_v52 = vcombine.high %v262_v47, %v266_v49 }
  0xfd   :  { %3064 = vmatpush1.bf16.msra.mxu1 %v6448_v56  ;;  %v509_v38 = vld [vmem:[#allocation5 + $0xb00] sm:$0xff]  ;;  %v6751_v41 = vcombine.high %v501_v30, %v505_v31  ;;  %v6750_v44 = vcombine.low %v501_v30, %v505_v31 }
  0xfe   :  { %3065 = vmatprep.subr.bf16.mxu1 %v6457_v60  ;;  %v513_v39 = vld [vmem:[#allocation5 + $0xb20] sm:$0xff]  ;;  %v6512_v60 = vcombine.low %v262_v47, %v266_v49  ;;  %v326_v49 = vld [vmem:[#allocation5 + $0x548] sm:$0xff] }
  0xff   :  { %2978 = vmatpush1.bf16.msra.mxu0 %v6702_v58  ;;  %v517_v45 = vld [vmem:[#allocation5 + $0xb40] sm:$0xff]  ;;  %v6759_v48 = vcombine.high %v509_v38, %v513_v39  ;;  %v6758_v51 = vcombine.low %v509_v38, %v513_v39  ;;  %v274_v58 = vld [vmem:[#allocation5 + $0x3a8] sm:$0xff]  ;;  %v8095_v38 = vmov 0  }
 0x100   :  { %2979 = vmatprep.subr.bf16.mxu0 %v6711_v0  ;;  %v521_v46 = vld [vmem:[#allocation5 + $0xb60] sm:$0xff]  ;;  %v6521_v62 = vcombine.high %v270_v55, %v274_v58 }
 0x101   :  { %3066 = vmatpush1.bf16.msra.mxu1 %v6456_v2  ;;  %v525_v53 = vld [vmem:[#allocation5 + $0xb80] sm:$0xff]  ;;  %v6767_v56 = vcombine.high %v517_v45, %v521_v46  ;;  %v6766_v61 = vcombine.low %v517_v45, %v521_v46 }
 0x102   :  { %3067 = vmatprep.subr.bf16.mxu1 %v6465_v4  ;;  %v529_v54 = vld [vmem:[#allocation5 + $0xba0] sm:$0xff]  ;;  %v6520_v4 = vcombine.low %v270_v55, %v274_v58  ;;  %v334_v58 = vld [vmem:[#allocation5 + $0x588] sm:$0xff] }
 0x103   :  { %2980 = vmatpush1.bf16.msra.mxu0 %v6710_v3  ;;  %v533_v63 = vld [vmem:[#allocation5 + $0xbc0] sm:$0xff]  ;;  %v6775_v2 = vcombine.high %v525_v53, %v529_v54  ;;  %v282_v3 = vld [vmem:[#allocation5 + $0x3e8] sm:$0xff]  ;;  %v6774_v5 = vcombine.low %v525_v53, %v529_v54 }
 0x104   :  { %2981 = vmatprep.subr.bf16.mxu0 %v6719_v8  ;;  %v537_v0 = vld [vmem:[#allocation5 + $0xbe0] sm:$0xff]  ;;  %v6529_v6 = vcombine.high %v278_v1, %v282_v3 }
 0x105   :  { %3068 = vmatpush1.bf16.msra.mxu1 %v6464_v10  ;;  %v541_v7 = vld [vmem:[#allocation5 + $0xc00] sm:$0xff]  ;;  %v6783_v10 = vcombine.high %v533_v63, %v537_v0  ;;  %v6782_v14 = vcombine.low %v533_v63, %v537_v0 }
 0x106   :  { %3069 = vmatprep.subr.bf16.mxu1 %v6473_v13  ;;  %v545_v8 = vld [vmem:[#allocation5 + $0xc20] sm:$0xff]  ;;  %v6528_v13 = vcombine.low %v278_v1, %v282_v3  ;;  %v342_v3 = vld [vmem:[#allocation5 + $0x5c8] sm:$0xff] }
 0x107   :  { %2982 = vmatpush1.bf16.msra.mxu0 %v6718_v11  ;;  %v290_v11 = vld [vmem:[#allocation5 + $0x428] sm:$0xff]  ;;  %v549_v16 = vld [vmem:[#allocation5 + $0xc40] sm:$0xff]  ;;  %v6790_v23 = vcombine.low %v541_v7, %v545_v8 }
 0x108   :  { %2983 = vmatprep.subr.bf16.mxu0 %v6727_v17  ;;  %v6537_v15 = vcombine.high %v286_v9, %v290_v11  ;;  %v553_v17 = vld [vmem:[#allocation5 + $0xc60] sm:$0xff]  ;;  %v6536_v22 = vcombine.low %v286_v9, %v290_v11  ;;  %v350_v9 = vld [vmem:[#allocation5 + $0x608] sm:$0xff]  ;;  %v159_v11 = vld [vmem:[#allocation5 + $0x10] sm:$0xff] }
 0x109   :  { %3070 = vmatpush1.bf16.msra.mxu1 %v6472_v19  ;;  %v6791_v19 = vcombine.high %v541_v7, %v545_v8  ;;  %v561_v26 = vld [vmem:[#allocation5 + $0xca0] sm:$0xff]  ;;  %v6798_v31 = vcombine.low %v549_v16, %v553_v17 }
 0x10a   :  { %3071 = vmatprep.subr.bf16.mxu1 %v6481_v21  ;;  %v298_v21 = vld [vmem:[#allocation5 + $0x468] sm:$0xff]  ;;  %v569_v34 = vld [vmem:[#allocation5 + $0xce0] sm:$0xff] }
 0x10b   :  { %2984 = vmatpush1.bf16.msra.mxu0 %v6726_v20  ;;  %v7323_v20 = vld [vmem:[#allocation2 + $0x10] ss:$28 sps:$4 sm:$0xff]   ;;  %v6545_v24 = vcombine.high %v294_v18, %v298_v21  ;;  %v6544_v30 = vcombine.low %v294_v18, %v298_v21  ;;  %v577_v42 = vld [vmem:[#allocation5 + $0xd20] sm:$0xff]  ;;  %v358_v18 = vld [vmem:[#allocation5 + $0x648] sm:$0xff] }
 0x10c   :  { %2985 = vmatprep.subr.bf16.mxu0 %v6735_v25  ;;  %v557_v25 = vld [vmem:[#allocation5 + $0xc80] sm:$0xff] }
 0x10d   :  { %3072 = vmatpush1.bf16.msra.mxu1 %v6480_v27  ;;  %v302_v27 = vld [vmem:[#allocation5 + $0x488] sm:$0xff]  ;;  %v6806_v39 = vcombine.low %v557_v25, %v561_v26  ;;  %v589_v55 = vld [vmem:[#allocation5 + $0xd80] sm:$0xff] }
 0x10e   :  { %3073 = vmatprep.subr.bf16.mxu1 %v6489_v29  ;;  %v306_v29 = vld [vmem:[#allocation5 + $0x4a8] sm:$0xff]  ;;  %v597_v1 = vld [vmem:[#allocation5 + $0xdc0] sm:$0xff] }
 0x10f   :  { %2986 = vmatpush1.bf16.msra.mxu0 %v6734_v28  ;;  %v6799_v28 = vcombine.high %v549_v16, %v553_v17  ;;  %v6553_v32 = vcombine.high %v302_v27, %v306_v29  ;;  %v7324_v21 = vld [vmem:[#allocation2 + $0x18] ss:$28 sps:$4 sm:$0xff]  }
 0x110   :  { %2987 = vmatprep.subr.bf16.mxu0 %v6743_v33  ;;  %v565_v33 = vld [vmem:[#allocation5 + $0xcc0] sm:$0xff] }
 0x111   :  { %3074 = vmatpush1.bf16.msra.mxu1 %v6488_v35  ;;  %v310_v35 = vld [vmem:[#allocation5 + $0x4c8] sm:$0xff]  ;;  %v6814_v46 = vcombine.low %v565_v33, %v569_v34 }
 0x112   :  { %3075 = vmatprep.subr.bf16.mxu1 %v6497_v37  ;;  %v314_v37 = vld [vmem:[#allocation5 + $0x4e8] sm:$0xff] }
 0x113   :  { %2988 = vmatpush1.bf16.msra.mxu0 %v6742_v36  ;;  %v6807_v36 = vcombine.high %v557_v25, %v561_v26  ;;  %v6561_v40 = vcombine.high %v310_v35, %v314_v37  ;;  %v6560_v45 = vcombine.low %v310_v35, %v314_v37  ;;  %v374_v35 = vld [vmem:[#allocation5 + $0x6c8] sm:$0xff]  ;;  %v183_v37 = vld [vmem:[#allocation5 + $0xd0] sm:$0xff] }
 0x114   :  { %2989 = vmatprep.subr.bf16.mxu0 %v6751_v41  ;;  %v573_v41 = vld [vmem:[#allocation5 + $0xd00] sm:$0xff] }
 0x115   :  { %3076 = vmatpush1.bf16.msra.mxu1 %v6496_v43  ;;  %v318_v43 = vld [vmem:[#allocation5 + $0x508] sm:$0xff]  ;;  %v6822_v53 = vcombine.low %v573_v41, %v577_v42 }
 0x116   :  { %3077 = vmatprep.subr.bf16.mxu1 %v6505_v57  ;;  %v322_v57 = vld [vmem:[#allocation5 + $0x528] sm:$0xff] }
 0x117   :  { %2990 = vmatpush1.bf16.msra.mxu0 %v6750_v44  ;;  %v6815_v44 = vcombine.high %v565_v33, %v569_v34  ;;  %v6569_v47 = vcombine.high %v318_v43, %v322_v57 }
 0x118   :  { %2991 = vmatprep.subr.bf16.mxu0 %v6759_v48  ;;  %v581_v48 = vld [vmem:[#allocation5 + $0xd40] sm:$0xff] }
 0x119   :  { %3078 = vmatpush1.bf16.msra.mxu1 %v6504_v50  ;;  %v6823_v50 = vcombine.high %v573_v41, %v577_v42 }
 0x11a   :  { %3079 = vmatprep.subr.bf16.mxu1 %v6513_v52  ;;  %v6568_v52 = vcombine.low %v318_v43, %v322_v57  ;;  %v386_v57 = vld [vmem:[#allocation5 + $0x728] sm:$0xff] }
 0x11b   :  { %2992 = vmatpush1.bf16.msra.mxu0 %v6758_v51  ;;  %v330_v51 = vld [vmem:[#allocation5 + $0x568] sm:$0xff] }
 0x11c   :  { %2993 = vmatprep.subr.bf16.mxu0 %v6767_v56  ;;  %v6577_v54 = vcombine.high %v326_v49, %v330_v51  ;;  %v593_v56 = vld [vmem:[#allocation5 + $0xda0] sm:$0xff] }
 0x11d   :  { %3080 = vmatpush1.bf16.msra.mxu1 %v6512_v60  ;;  %v6838_v7 = vcombine.low %v589_v55, %v593_v56 }
 0x11e   :  { %3081 = vmatprep.subr.bf16.mxu1 %v6521_v62  ;;  %v6576_v62 = vcombine.low %v326_v49, %v330_v51  ;;  %v394_v51 = vld [vmem:[#allocation5 + $0x768] sm:$0xff] }
 0x11f   :  { %2994 = vmatpush1.bf16.msra.mxu0 %v6766_v61  ;;  %v338_v61 = vld [vmem:[#allocation5 + $0x5a8] sm:$0xff] }
 0x120   :  { %2995 = vmatprep.subr.bf16.mxu0 %v6775_v2  ;;  %v6585_v0 = vcombine.high %v334_v58, %v338_v61  ;;  %v601_v2 = vld [vmem:[#allocation5 + $0xde0] sm:$0xff] }
 0x121   :  { %3082 = vmatpush1.bf16.msra.mxu1 %v6520_v4  ;;  %v6839_v4 = vcombine.high %v589_v55, %v593_v56  ;;  %v6846_v16 = vcombine.low %v597_v1, %v601_v2 }
 0x122   :  { %3083 = vmatprep.subr.bf16.mxu1 %v6529_v6  ;;  %v6584_v6 = vcombine.low %v334_v58, %v338_v61  ;;  %v402_v61 = vld [vmem:[#allocation5 + $0x7a8] sm:$0xff] }
 0x123   :  { %2996 = vmatpush1.bf16.msra.mxu0 %v6774_v5  ;;  %v346_v5 = vld [vmem:[#allocation5 + $0x5e8] sm:$0xff] }
 0x124   :  { %2997 = vmatprep.subr.bf16.mxu0 %v6783_v10  ;;  %v6593_v8 = vcombine.high %v342_v3, %v346_v5  ;;  %v354_v10 = vld [vmem:[#allocation5 + $0x628] sm:$0xff] }
 0x125   :  { %3084 = vmatpush1.bf16.msra.mxu1 %v6528_v13  ;;  %v6847_v13 = vcombine.high %v597_v1, %v601_v2  ;;  %v6601_v17 = vcombine.high %v350_v9, %v354_v10 }
 0x126   :  { %3096 = vmatprep.subr.bf16.mxu1 %v6537_v15  ;;  %v6592_v15 = vcombine.low %v342_v3, %v346_v5  ;;  %v410_v5 = vld [vmem:[#allocation5 + $0x7e8] sm:$0xff] }
 0x127   :  { %2998 = vmatpush1.bf16.msra.mxu0 %v6782_v14  ;;  %v163_v14 = vld [vmem:[#allocation5 + $0x30] sm:$0xff] }
 0x128   :  { %3010 = vmatprep.subr.bf16.mxu0 %v6791_v19  ;;  %3086 = vmatmul.mubr.bf16.vlgmr.msra.gmra.mrb[4].mxu1 %v8265_v12  ;;  %v6552_v12 = vcombine.low %v302_v27, %v306_v29  ;;  %v362_v19 = vld [vmem:[#allocation5 + $0x668] sm:$0xff]  ;;  %v6410_v25 = vcombine.low %v159_v11, %v163_v14  ;;  %v175_v29 = vld [vmem:[#allocation5 + $0x90] sm:$0xff] }
 0x129   :  { %3097 = vmatpush1.bf16.msra.mxu1 %v6536_v22  ;;  %3128 = vmatprep.mubr.bf16.mxu1 %v8261_v59  ;;  %v585_v59 = vld [vmem:[#allocation5 + $0xd60] sm:$0xff]  ;;  %v6411_v22 = vcombine.high %v159_v11, %v163_v14  ;;  %v6609_v26 = vcombine.high %v358_v18, %v362_v19  ;;  %v366_v27 = vld [vmem:[#allocation5 + $0x688] sm:$0xff] }
 0x12a   :  { %3000 = vmatmul.mubr.bf16.vlgmr.msra.gmra.mrb[0].mxu0 %v7323_v20  ;;  %3098 = vmatprep.subr.bf16.mxu1 %v6545_v24  ;;  %v6831_v60 = vcombine.high %v581_v48, %v585_v59  ;;  %v6830_v63 = vcombine.low %v581_v48, %v585_v59  ;;  %v167_v20 = vld [vmem:[#allocation5 + $0x50] sm:$0xff]  ;;  %v6600_v24 = vcombine.low %v350_v9, %v354_v10  ;;  %v418_v14 = vld [vmem:[#allocation5 + $0x828] sm:$0xff] }
 0x12b   :  { %3011 = vmatpush1.bf16.msra.mxu0 %v6790_v23  ;;  %3042 = vmatprep.mubr.bf16.mxu0 %v8095_v38  ;;  %v171_v23 = vld [vmem:[#allocation5 + $0x70] sm:$0xff] }
 0x12c   :  { %3012 = vmatprep.subr.bf16.mxu0 %v6799_v28  ;;  %v370_v28 = vld [vmem:[#allocation5 + $0x6a8] sm:$0xff]  ;;  %v6418_v33 = vcombine.low %v167_v20, %v171_v23 }
 0x12d   :  { %3099 = vmatpush1.bf16.msra.mxu1 %v6544_v30  ;;  %v6419_v30 = vcombine.high %v167_v20, %v171_v23  ;;  %v6617_v34 = vcombine.high %v366_v27, %v370_v28  ;;  %v6616_v41 = vcombine.low %v366_v27, %v370_v28  ;;  %v231_v23 = vld [vmem:[#allocation5 + $0x250] sm:$0xff] }
 0x12e   :  { %3100 = vmatprep.subr.bf16.mxu1 %v6553_v32  ;;  %v6608_v32 = vcombine.low %v358_v18, %v362_v19 }
 0x12f   :  { %3013 = vmatpush1.bf16.msra.mxu0 %v6798_v31  ;;  %v179_v31 = vld [vmem:[#allocation5 + $0xb0] sm:$0xff] }
 0x130   :  { %3014 = vmatprep.subr.bf16.mxu0 %v6807_v36  ;;  %v378_v36 = vld [vmem:[#allocation5 + $0x6e8] sm:$0xff]  ;;  %v6426_v42 = vcombine.low %v175_v29, %v179_v31 }
 0x131   :  { %3101 = vmatpush1.bf16.msra.mxu1 %v6552_v12  ;;  %v6427_v12 = vcombine.high %v175_v29, %v179_v31  ;;  %v6625_v43 = vcombine.high %v374_v35, %v378_v36  ;;  %v6624_v48 = vcombine.low %v374_v35, %v378_v36  ;;  %v430_v29 = vld [vmem:[#allocation5 + $0x888] sm:$0xff]  ;;  %v239_v31 = vld [vmem:[#allocation5 + $0x290] sm:$0xff]  ;;  %v8275_v36 = vld [vmem:[#allocation2 + $0x14] ss:$28 sps:$4 sm:$0xff]  }
 0x132   :  { %3102 = vmatprep.subr.bf16.mxu1 %v6561_v40  ;;  %v7830_v40 = vld [vmem:[#allocation2 + $0x4] ss:$28 sps:$4 sm:$0xff]  }
 0x133   :  { %3015 = vmatpush1.bf16.msra.mxu0 %v6806_v39  ;;  %v187_v39 = vld [vmem:[#allocation5 + $0xf0] sm:$0xff] }
 0x134   :  { %3016 = vmatprep.subr.bf16.mxu0 %v6815_v44  ;;  %v382_v44 = vld [vmem:[#allocation5 + $0x708] sm:$0xff]  ;;  %v6434_v59 = vcombine.low %v183_v37, %v187_v39 }
 0x135   :  { %3103 = vmatpush1.bf16.msra.mxu1 %v6560_v45  ;;  %v191_v45 = vld [vmem:[#allocation5 + $0x110] sm:$0xff]  ;;  %v6633_v49 = vcombine.high %v382_v44, %v386_v57  ;;  %v6632_v55 = vcombine.low %v382_v44, %v386_v57 }
 0x136   :  { %3104 = vmatprep.subr.bf16.mxu1 %v6569_v47  ;;  %v195_v47 = vld [vmem:[#allocation5 + $0x130] sm:$0xff] }
 0x137   :  { %3017 = vmatpush1.bf16.msra.mxu0 %v6814_v46  ;;  %v6435_v46 = vcombine.high %v183_v37, %v187_v39  ;;  %v6442_v56 = vcombine.low %v191_v45, %v195_v47  ;;  %v438_v39 = vld [vmem:[#allocation5 + $0x8c8] sm:$0xff] }
 0x138   :  { %3018 = vmatprep.subr.bf16.mxu0 %v6823_v50  ;;  %v390_v50 = vld [vmem:[#allocation5 + $0x748] sm:$0xff] }
 0x139   :  { %3105 = vmatpush1.bf16.msra.mxu1 %v6568_v52  ;;  %v199_v52 = vld [vmem:[#allocation5 + $0x150] sm:$0xff]  ;;  %v6641_v58 = vcombine.high %v390_v50, %v394_v51  ;;  %v6640_v1 = vcombine.low %v390_v50, %v394_v51 }
 0x13a   :  { %3106 = vmatprep.subr.bf16.mxu1 %v6577_v54  ;;  %v203_v54 = vld [vmem:[#allocation5 + $0x170] sm:$0xff] }
 0x13b   :  { %3019 = vmatpush1.bf16.msra.mxu0 %v6822_v53  ;;  %v6443_v53 = vcombine.high %v191_v45, %v195_v47  ;;  %v6450_v2 = vcombine.low %v199_v52, %v203_v54  ;;  %v450_v47 = vld [vmem:[#allocation5 + $0x928] sm:$0xff] }
 0x13c   :  { %3020 = vmatprep.subr.bf16.mxu0 %v6831_v60  ;;  %v398_v60 = vld [vmem:[#allocation5 + $0x788] sm:$0xff] }
 0x13d   :  { %3107 = vmatpush1.bf16.msra.mxu1 %v6576_v62  ;;  %v207_v62 = vld [vmem:[#allocation5 + $0x190] sm:$0xff]  ;;  %v6649_v3 = vcombine.high %v398_v60, %v402_v61  ;;  %v6648_v9 = vcombine.low %v398_v60, %v402_v61 }
 0x13e   :  { %3108 = vmatprep.subr.bf16.mxu1 %v6585_v0  ;;  %v211_v0 = vld [vmem:[#allocation5 + $0x1b0] sm:$0xff] }
 0x13f   :  { %3021 = vmatpush1.bf16.msra.mxu0 %v6830_v63  ;;  %v6451_v63 = vcombine.high %v199_v52, %v203_v54  ;;  %v6458_v10 = vcombine.low %v207_v62, %v211_v0  ;;  %v458_v54 = vld [vmem:[#allocation5 + $0x968] sm:$0xff] }
 0x140   :  { %3022 = vmatprep.subr.bf16.mxu0 %v6839_v4  ;;  %v406_v4 = vld [vmem:[#allocation5 + $0x7c8] sm:$0xff] }
 0x141   :  { %3109 = vmatpush1.bf16.msra.mxu1 %v6584_v6  ;;  %v215_v6 = vld [vmem:[#allocation5 + $0x1d0] sm:$0xff]  ;;  %v6657_v11 = vcombine.high %v406_v4, %v410_v5  ;;  %v6656_v18 = vcombine.low %v406_v4, %v410_v5 }
 0x142   :  { %3110 = vmatprep.subr.bf16.mxu1 %v6593_v8  ;;  %v219_v8 = vld [vmem:[#allocation5 + $0x1f0] sm:$0xff] }
 0x143   :  { %3023 = vmatpush1.bf16.msra.mxu0 %v6838_v7  ;;  %v6459_v7 = vcombine.high %v207_v62, %v211_v0  ;;  %v6466_v19 = vcombine.low %v215_v6, %v219_v8  ;;  %v466_v0 = vld [vmem:[#allocation5 + $0x9a8] sm:$0xff] }
 0x144   :  { %3024 = vmatprep.subr.bf16.mxu0 %v6847_v13  ;;  %v414_v13 = vld [vmem:[#allocation5 + $0x808] sm:$0xff] }
 0x145   :  { %3111 = vmatpush1.bf16.msra.mxu1 %v6592_v15  ;;  %v223_v15 = vld [vmem:[#allocation5 + $0x210] sm:$0xff]  ;;  %v6665_v20 = vcombine.high %v414_v13, %v418_v14 }
 0x146   :  { %3112 = vmatprep.subr.bf16.mxu1 %v6601_v17  ;;  %v227_v17 = vld [vmem:[#allocation5 + $0x230] sm:$0xff] }
 0x147   :  { %3025 = vmatpush1.bf16.msra.mxu0 %v6846_v16  ;;  %v6467_v16 = vcombine.high %v215_v6, %v219_v8  ;;  %v6474_v27 = vcombine.low %v223_v15, %v227_v17  ;;  %v474_v8 = vld [vmem:[#allocation5 + $0x9e8] sm:$0xff] }
 0x148   :  { %3225 = vmatprep.subr.bf16.mxu0 %v6411_v22  ;;  %v426_v22 = vld [vmem:[#allocation5 + $0x868] sm:$0xff] }
 0x149   :  { %3113 = vmatpush1.bf16.msra.mxu1 %v6600_v24  ;;  %v6475_v24 = vcombine.high %v223_v15, %v227_v17  ;;  %v482_v17 = vld [vmem:[#allocation5 + $0xa28] sm:$0xff] }
 0x14a   :  { %3043 = vmatmul.mubr.bf16.vlgmr.msra.gmra.mrb[0].mxu0 %v7324_v21  ;;  %3114 = vmatprep.subr.bf16.mxu1 %v6609_v26  ;;  %v422_v21 = vld [vmem:[#allocation5 + $0x848] sm:$0xff]  ;;  %v6664_v26 = vcombine.low %v414_v13, %v418_v14 }
 0x14b   :  { %3226 = vmatpush1.bf16.msra.mxu0 %v6410_v25  ;;  %3257 = vmatprep.mubr.bf16.mxu0 %v7830_v40  ;;  %v235_v25 = vld [vmem:[#allocation5 + $0x270] sm:$0xff]  ;;  %v6673_v28 = vcombine.high %v422_v21, %v426_v22  ;;  %v6672_v35 = vcombine.low %v422_v21, %v426_v22  ;;  %v442_v40 = vld [vmem:[#allocation5 + $0x8e8] sm:$0xff] }
 0x14c   :  { %3227 = vmatprep.subr.bf16.mxu0 %v6419_v30  ;;  %v434_v30 = vld [vmem:[#allocation5 + $0x8a8] sm:$0xff]  ;;  %v6482_v37 = vcombine.low %v231_v23, %v235_v25  ;;  %v6689_v45 = vcombine.high %v438_v39, %v442_v40  ;;  %v6688_v50 = vcombine.low %v438_v39, %v442_v40 }
 0x14d   :  { %3115 = vmatpush1.bf16.msra.mxu1 %v6608_v32  ;;  %v6483_v32 = vcombine.high %v231_v23, %v235_v25  ;;  %v6680_v44 = vcombine.low %v430_v29, %v434_v30  ;;  %v490_v25 = vld [vmem:[#allocation5 + $0xa68] sm:$0xff] }
 0x14e   :  { %3116 = vmatprep.subr.bf16.mxu1 %v6617_v34  ;;  %v8272_v34 = vld [vmem:[#allocation2 + $0x8] ss:$28 sps:$4 sm:$0xff]   ;;  %v8278_v39 = vld [vmem:[#allocation2] ss:$28 sps:$4 sm:$0xff]  }
 0x14f   :  { %3228 = vmatpush1.bf16.msra.mxu0 %v6418_v33  ;;  %v243_v33 = vld [vmem:[#allocation5 + $0x2b0] sm:$0xff] }
 0x150   :  { %3229 = vmatprep.subr.bf16.mxu0 %v6427_v12  ;;  %v6681_v12 = vcombine.high %v430_v29, %v434_v30  ;;  %v6490_v57 = vcombine.low %v239_v31, %v243_v33 }
 0x151   :  { %3117 = vmatpush1.bf16.msra.mxu1 %v6616_v41  ;;  %v247_v41 = vld [vmem:[#allocation5 + $0x2d0] sm:$0xff] }
 0x152   :  { %3118 = vmatprep.subr.bf16.mxu1 %v6625_v43  ;;  %v251_v43 = vld [vmem:[#allocation5 + $0x2f0] sm:$0xff] }
 0x153   :  { %3230 = vmatpush1.bf16.msra.mxu0 %v6426_v42  ;;  %v6491_v42 = vcombine.high %v239_v31, %v243_v33  ;;  %v6498_v51 = vcombine.low %v247_v41, %v251_v43  ;;  %v498_v33 = vld [vmem:[#allocation5 + $0xaa8] sm:$0xff] }
 0x154   :  { %3231 = vmatprep.subr.bf16.mxu0 %v6435_v46  ;;  %v446_v46 = vld [vmem:[#allocation5 + $0x908] sm:$0xff] }
 0x155   :  { %3119 = vmatpush1.bf16.msra.mxu1 %v6624_v48  ;;  %v255_v48 = vld [vmem:[#allocation5 + $0x310] sm:$0xff]  ;;  %v6697_v52 = vcombine.high %v446_v46, %v450_v47  ;;  %v6696_v60 = vcombine.low %v446_v46, %v450_v47 }
 0x156   :  { %3120 = vmatprep.subr.bf16.mxu1 %v6633_v49  ;;  %v259_v49 = vld [vmem:[#allocation5 + $0x330] sm:$0xff] }
 0x157   :  { %3232 = vmatpush1.bf16.msra.mxu0 %v6434_v59  ;;  %v6499_v59 = vcombine.high %v247_v41, %v251_v43  ;;  %v6506_v61 = vcombine.low %v255_v48, %v259_v49  ;;  %v502_v43 = vld [vmem:[#allocation5 + $0xac8] sm:$0xff]  ;;  %v315_v46 = vld [vmem:[#allocation5 + $0x4f0] sm:$0xff] }
 0x158   :  { %3233 = vmatprep.subr.bf16.mxu0 %v6443_v53  ;;  %v454_v53 = vld [vmem:[#allocation5 + $0x948] sm:$0xff]  ;;  %v8281_v47 = vld [vmem:[#allocation2 + $0xc] ss:$28 sps:$4 sm:$0xff]  }
 0x159   :  { %3121 = vmatpush1.bf16.msra.mxu1 %v6632_v55  ;;  %v263_v55 = vld [vmem:[#allocation5 + $0x350] sm:$0xff]  ;;  %v6705_v62 = vcombine.high %v454_v53, %v458_v54  ;;  %v6704_v4 = vcombine.low %v454_v53, %v458_v54 }
 0x15a   :  { %3122 = vmatprep.subr.bf16.mxu1 %v6641_v58  ;;  %v267_v58 = vld [vmem:[#allocation5 + $0x370] sm:$0xff] }
 0x15b   :  { %3234 = vmatpush1.bf16.msra.mxu0 %v6442_v56  ;;  %v6507_v56 = vcombine.high %v255_v48, %v259_v49  ;;  %v6514_v5 = vcombine.low %v263_v55, %v267_v58  ;;  %v323_v54 = vld [vmem:[#allocation5 + $0x530] sm:$0xff] }
 0x15c   :  { %3235 = vmatprep.subr.bf16.mxu0 %v6451_v63  ;;  %v462_v63 = vld [vmem:[#allocation5 + $0x988] sm:$0xff] }
 0x15d   :  { %3123 = vmatpush1.bf16.msra.mxu1 %v6640_v1  ;;  %v271_v1 = vld [vmem:[#allocation5 + $0x390] sm:$0xff]  ;;  %v6713_v6 = vcombine.high %v462_v63, %v466_v0  ;;  %v6712_v13 = vcombine.low %v462_v63, %v466_v0 }
 0x15e   :  { %3124 = vmatprep.subr.bf16.mxu1 %v6649_v3  ;;  %v275_v3 = vld [vmem:[#allocation5 + $0x3b0] sm:$0xff] }
 0x15f   :  { %3236 = vmatpush1.bf16.msra.mxu0 %v6450_v2  ;;  %v6515_v2 = vcombine.high %v263_v55, %v267_v58  ;;  %v6522_v14 = vcombine.low %v271_v1, %v275_v3  ;;  %v327_v63 = vld [vmem:[#allocation5 + $0x550] sm:$0xff] }
 0x160   :  { %3237 = vmatprep.subr.bf16.mxu0 %v6459_v7  ;;  %v470_v7 = vld [vmem:[#allocation5 + $0x9c8] sm:$0xff]  ;;  %v331_v0 = vld [vmem:[#allocation5 + $0x570] sm:$0xff] }
 0x161   :  { %3125 = vmatpush1.bf16.msra.mxu1 %v6648_v9  ;;  %v279_v9 = vld [vmem:[#allocation5 + $0x3d0] sm:$0xff]  ;;  %v6721_v15 = vcombine.high %v470_v7, %v474_v8  ;;  %v6720_v21 = vcombine.low %v470_v7, %v474_v8  ;;  %v6579_v7 = vcombine.high %v327_v63, %v331_v0 }
 0x162   :  { %3126 = vmatprep.subr.bf16.mxu1 %v6657_v11  ;;  %v283_v11 = vld [vmem:[#allocation5 + $0x3f0] sm:$0xff] }
 0x163   :  { %3238 = vmatpush1.bf16.msra.mxu0 %v6458_v10  ;;  %v6523_v10 = vcombine.high %v271_v1, %v275_v3  ;;  %v6530_v22 = vcombine.low %v279_v9, %v283_v11  ;;  %v339_v8 = vld [vmem:[#allocation5 + $0x5b0] sm:$0xff] }
 0x164   :  { %3239 = vmatprep.subr.bf16.mxu0 %v6467_v16  ;;  %v478_v16 = vld [vmem:[#allocation5 + $0xa08] sm:$0xff] }
 0x165   :  { %3127 = vmatpush1.bf16.msra.mxu1 %v6656_v18  ;;  %v287_v18 = vld [vmem:[#allocation5 + $0x410] sm:$0xff]  ;;  %v6729_v23 = vcombine.high %v478_v16, %v482_v17  ;;  %v6728_v29 = vcombine.low %v478_v16, %v482_v17 }
 0x166   :  { %3139 = vmatprep.subr.bf16.mxu1 %v6665_v20  ;;  %v291_v20 = vld [vmem:[#allocation5 + $0x430] sm:$0xff] }
 0x167   :  { %3240 = vmatpush1.bf16.msra.mxu0 %v6466_v19  ;;  %v6531_v19 = vcombine.high %v279_v9, %v283_v11  ;;  %v6538_v30 = vcombine.low %v287_v18, %v291_v20  ;;  %v347_v17 = vld [vmem:[#allocation5 + $0x5f0] sm:$0xff] }
 0x168   :  { %3241 = vmatprep.subr.bf16.mxu0 %v6475_v24  ;;  %3129 = vmatmul.mubr.bf16.vlgmr.msra.gmra.mrb[4].mxu1 %v8272_v34  ;;  %v486_v24 = vld [vmem:[#allocation5 + $0xa48] sm:$0xff] }
 0x169   :  { %3140 = vmatpush1.bf16.msra.mxu1 %v6664_v26  ;;  %3171 = vmatprep.mubr.bf16.mxu1 %v8275_v36  ;;  %v295_v26 = vld [vmem:[#allocation5 + $0x450] sm:$0xff]  ;;  %v6737_v31 = vcombine.high %v486_v24, %v490_v25  ;;  %v6736_v40 = vcombine.low %v486_v24, %v490_v25 }
 0x16a   :  { %3141 = vmatprep.subr.bf16.mxu1 %v6673_v28  ;;  %v299_v28 = vld [vmem:[#allocation5 + $0x470] sm:$0xff] }
 0x16b   :  { %3242 = vmatpush1.bf16.msra.mxu0 %v6474_v27  ;;  %v6539_v27 = vcombine.high %v287_v18, %v291_v20  ;;  %v6546_v41 = vcombine.low %v295_v26, %v299_v28  ;;  %v351_v24 = vld [vmem:[#allocation5 + $0x610] sm:$0xff] }
 0x16c   :  { %3243 = vmatprep.subr.bf16.mxu0 %v6483_v32  ;;  %v494_v32 = vld [vmem:[#allocation5 + $0xa88] sm:$0xff]  ;;  %v355_v25 = vld [vmem:[#allocation5 + $0x630] sm:$0xff] }
 0x16d   :  { %3142 = vmatpush1.bf16.msra.mxu1 %v6672_v35  ;;  %v303_v35 = vld [vmem:[#allocation5 + $0x490] sm:$0xff]  ;;  %v6744_v48 = vcombine.low %v494_v32, %v498_v33 }
 0x16e   :  { %3143 = vmatprep.subr.bf16.mxu1 %v6681_v12  ;;  %v307_v12 = vld [vmem:[#allocation5 + $0x4b0] sm:$0xff] }
 0x16f   :  { %3244 = vmatpush1.bf16.msra.mxu0 %v6482_v37  ;;  %v6547_v37 = vcombine.high %v295_v26, %v299_v28 }
 0x170   :  { %3245 = vmatprep.subr.bf16.mxu0 %v6491_v42  ;;  %v6745_v42 = vcombine.high %v494_v32, %v498_v33  ;;  %v359_v32 = vld [vmem:[#allocation5 + $0x650] sm:$0xff] }
 0x171   :  { %3144 = vmatpush1.bf16.msra.mxu1 %v6680_v44  ;;  %v506_v44 = vld [vmem:[#allocation5 + $0xae8] sm:$0xff]  ;;  %v363_v33 = vld [vmem:[#allocation5 + $0x670] sm:$0xff] }
 0x172   :  { %3145 = vmatprep.subr.bf16.mxu1 %v6689_v45  ;;  %v6555_v45 = vcombine.high %v303_v35, %v307_v12  ;;  %v6753_v49 = vcombine.high %v502_v43, %v506_v44  ;;  %v6752_v55 = vcombine.low %v502_v43, %v506_v44  ;;  %v8284_v43 = vld [vmem:[#allocation2 + $0x10] ss:$28 sps:$4 sm:$0xff]  }
 0x173   :  { %3246 = vmatpush1.bf16.msra.mxu0 %v6490_v57  ;;  %v311_v57 = vld [vmem:[#allocation5 + $0x4d0] sm:$0xff] }
 0x174   :  { %3247 = vmatprep.subr.bf16.mxu0 %v6499_v59  ;;  %v6554_v59 = vcombine.low %v303_v35, %v307_v12  ;;  %v6563_v53 = vcombine.high %v311_v57, %v315_v46  ;;  %v367_v44 = vld [vmem:[#allocation5 + $0x690] sm:$0xff] }
 0x175   :  { %3146 = vmatpush1.bf16.msra.mxu1 %v6688_v50  ;;  %v510_v50 = vld [vmem:[#allocation5 + $0xb08] sm:$0xff] }
 0x176   :  { %3147 = vmatprep.subr.bf16.mxu1 %v6697_v52  ;;  %v319_v52 = vld [vmem:[#allocation5 + $0x510] sm:$0xff] }
 0x177   :  { %3248 = vmatpush1.bf16.msra.mxu0 %v6498_v51  ;;  %v514_v51 = vld [vmem:[#allocation5 + $0xb28] sm:$0xff] }
 0x178   :  { %3249 = vmatprep.subr.bf16.mxu0 %v6507_v56  ;;  %v6562_v56 = vcombine.low %v311_v57, %v315_v46  ;;  %v6761_v58 = vcombine.high %v510_v50, %v514_v51  ;;  %v6760_v1 = vcombine.low %v510_v50, %v514_v51  ;;  %v371_v57 = vld [vmem:[#allocation5 + $0x6b0] sm:$0xff]  ;;  %v6610_v46 = vcombine.low %v359_v32, %v363_v33  ;;  %v570_v50 = vld [vmem:[#allocation5 + $0xce8] sm:$0xff] }
 0x179   :  { %3148 = vmatpush1.bf16.msra.mxu1 %v6696_v60  ;;  %v518_v60 = vld [vmem:[#allocation5 + $0xb48] sm:$0xff]  ;;  %v375_v51 = vld [vmem:[#allocation5 + $0x6d0] sm:$0xff] }
 0x17a   :  { %3149 = vmatprep.subr.bf16.mxu1 %v6705_v62  ;;  %v6571_v62 = vcombine.high %v319_v52, %v323_v54 }
 0x17b   :  { %3250 = vmatpush1.bf16.msra.mxu0 %v6506_v61  ;;  %v522_v61 = vld [vmem:[#allocation5 + $0xb68] sm:$0xff] }
 0x17c   :  { %3251 = vmatprep.subr.bf16.mxu0 %v6515_v2  ;;  %v6570_v2 = vcombine.low %v319_v52, %v323_v54  ;;  %v6769_v3 = vcombine.high %v518_v60, %v522_v61  ;;  %v6768_v9 = vcombine.low %v518_v60, %v522_v61  ;;  %v379_v52 = vld [vmem:[#allocation5 + $0x6f0] sm:$0xff]  ;;  %v6618_v54 = vcombine.low %v367_v44, %v371_v57  ;;  %v578_v60 = vld [vmem:[#allocation5 + $0xd28] sm:$0xff] }
 0x17d   :  { %3150 = vmatpush1.bf16.msra.mxu1 %v6704_v4  ;;  %v526_v4 = vld [vmem:[#allocation5 + $0xb88] sm:$0xff]  ;;  %v383_v61 = vld [vmem:[#allocation5 + $0x710] sm:$0xff] }
 0x17e   :  { %3151 = vmatprep.subr.bf16.mxu1 %v6713_v6  ;;  %v335_v6 = vld [vmem:[#allocation5 + $0x590] sm:$0xff] }
 0x17f   :  { %3252 = vmatpush1.bf16.msra.mxu0 %v6514_v5  ;;  %v530_v5 = vld [vmem:[#allocation5 + $0xba8] sm:$0xff]  ;;  %v6587_v16 = vcombine.high %v335_v6, %v339_v8 }
 0x180   :  { %3253 = vmatprep.subr.bf16.mxu0 %v6523_v10  ;;  %v6578_v10 = vcombine.low %v327_v63, %v331_v0  ;;  %v6777_v11 = vcombine.high %v526_v4, %v530_v5  ;;  %v6776_v18 = vcombine.low %v526_v4, %v530_v5  ;;  %v6626_v0 = vcombine.low %v375_v51, %v379_v52  ;;  %v586_v4 = vld [vmem:[#allocation5 + $0xd68] sm:$0xff]  ;;  %v391_v5 = vld [vmem:[#allocation5 + $0x750] sm:$0xff] }
 0x181   :  { %3152 = vmatpush1.bf16.msra.mxu1 %v6712_v13  ;;  %v534_v13 = vld [vmem:[#allocation5 + $0xbc8] sm:$0xff] }
 0x182   :  { %3153 = vmatprep.subr.bf16.mxu1 %v6721_v15  ;;  %v343_v15 = vld [vmem:[#allocation5 + $0x5d0] sm:$0xff] }
 0x183   :  { %3254 = vmatpush1.bf16.msra.mxu0 %v6522_v14  ;;  %v538_v14 = vld [vmem:[#allocation5 + $0xbe8] sm:$0xff] }
 0x184   :  { %3255 = vmatprep.subr.bf16.mxu0 %v6531_v19  ;;  %v6586_v19 = vcombine.low %v335_v6, %v339_v8  ;;  %v6785_v20 = vcombine.high %v534_v13, %v538_v14  ;;  %v6784_v26 = vcombine.low %v534_v13, %v538_v14  ;;  %v395_v6 = vld [vmem:[#allocation5 + $0x770] sm:$0xff]  ;;  %v594_v13 = vld [vmem:[#allocation5 + $0xda8] sm:$0xff] }
 0x185   :  { %3154 = vmatpush1.bf16.msra.mxu1 %v6720_v21  ;;  %v6595_v21 = vcombine.high %v343_v15, %v347_v17  ;;  %v399_v14 = vld [vmem:[#allocation5 + $0x790] sm:$0xff] }
 0x186   :  { %3155 = vmatprep.subr.bf16.mxu1 %v6729_v23  ;;  %v546_v23 = vld [vmem:[#allocation5 + $0xc28] sm:$0xff] }
 0x187   :  { %3256 = vmatpush1.bf16.msra.mxu0 %v6530_v22  ;;  %v542_v22 = vld [vmem:[#allocation5 + $0xc08] sm:$0xff] }
 0x188   :  { %3268 = vmatprep.subr.bf16.mxu0 %v6539_v27  ;;  %v6594_v27 = vcombine.low %v343_v15, %v347_v17  ;;  %v6793_v28 = vcombine.high %v542_v22, %v546_v23  ;;  %v6792_v35 = vcombine.low %v542_v22, %v546_v23  ;;  %v403_v15 = vld [vmem:[#allocation5 + $0x7b0] sm:$0xff]  ;;  %v6642_v17 = vcombine.low %v391_v5, %v395_v6  ;;  %v602_v22 = vld [vmem:[#allocation5 + $0xde8] sm:$0xff] }
 0x189   :  { %3156 = vmatpush1.bf16.msra.mxu1 %v6728_v29  ;;  %v6603_v29 = vcombine.high %v351_v24, %v355_v25 }
 0x18a   :  { %3258 = vmatmul.mubr.bf16.vlgmr.msra.gmra.mrb[4].mxu0 %v8278_v39  ;;  %3157 = vmatprep.subr.bf16.mxu1 %v6737_v31  ;;  %v554_v31 = vld [vmem:[#allocation5 + $0xc68] sm:$0xff] }
 0x18b   :  { %3269 = vmatpush1.bf16.msra.mxu0 %v6538_v30  ;;  %3300 = vmatprep.mubr.bf16.mxu0 %v8281_v47  ;;  %v550_v30 = vld [vmem:[#allocation5 + $0xc48] sm:$0xff] }
 0x18c   :  { %3270 = vmatprep.subr.bf16.mxu0 %v6547_v37  ;;  %v6602_v37 = vcombine.low %v351_v24, %v355_v25  ;;  %v6801_v12 = vcombine.high %v550_v30, %v554_v31  ;;  %v407_v24 = vld [vmem:[#allocation5 + $0x7d0] sm:$0xff] }
 0x18d   :  { %3158 = vmatpush1.bf16.msra.mxu1 %v6736_v40  ;;  %v6611_v40 = vcombine.high %v359_v32, %v363_v33  ;;  %v411_v25 = vld [vmem:[#allocation5 + $0x7f0] sm:$0xff]  ;;  %v160_v32 = vld [vmem:[#allocation5 + $0x18] sm:$0xff] }
 0x18e   :  { %3159 = vmatprep.subr.bf16.mxu1 %v6745_v42  ;;  %v562_v42 = vld [vmem:[#allocation5 + $0xca8] sm:$0xff]  ;;  %v164_v33 = vld [vmem:[#allocation5 + $0x38] sm:$0xff] }
 0x18f   :  { %3271 = vmatpush1.bf16.msra.mxu0 %v6546_v41  ;;  %v558_v41 = vld [vmem:[#allocation5 + $0xc88] sm:$0xff] }
 0x190   :  { %3272 = vmatprep.subr.bf16.mxu0 %v6555_v45  ;;  %v6800_v45 = vcombine.low %v550_v30, %v554_v31  ;;  %v6659_v31 = vcombine.high %v407_v24, %v411_v25 }
 0x191   :  { %3160 = vmatpush1.bf16.msra.mxu1 %v6744_v48  ;;  %v6809_v48 = vcombine.high %v558_v41, %v562_v42 }
 0x192   :  { %3161 = vmatprep.subr.bf16.mxu1 %v6753_v49  ;;  %v566_v49 = vld [vmem:[#allocation5 + $0xcc8] sm:$0xff] }
 0x193   :  { %3273 = vmatpush1.bf16.msra.mxu0 %v6554_v59  ;;  %v6619_v59 = vcombine.high %v367_v44, %v371_v57  ;;  %v6816_v63 = vcombine.low %v566_v49, %v570_v50  ;;  %v168_v44 = vld [vmem:[#allocation5 + $0x58] sm:$0xff] }
 0x194   :  { %3274 = vmatprep.subr.bf16.mxu0 %v6563_v53  ;;  %v6808_v53 = vcombine.low %v558_v41, %v562_v42  ;;  %v6413_v41 = vcombine.high %v160_v32, %v164_v33  ;;  %v172_v57 = vld [vmem:[#allocation5 + $0x78] sm:$0xff] }
 0x195   :  { %3162 = vmatpush1.bf16.msra.mxu1 %v6752_v55  ;;  %v6817_v55 = vcombine.high %v566_v49, %v570_v50  ;;  %v6421_v49 = vcombine.high %v168_v44, %v172_v57 }
 0x196   :  { %3163 = vmatprep.subr.bf16.mxu1 %v6761_v58  ;;  %v574_v58 = vld [vmem:[#allocation5 + $0xd08] sm:$0xff] }
 0x197   :  { %3275 = vmatpush1.bf16.msra.mxu0 %v6562_v56  ;;  %v6627_v56 = vcombine.high %v375_v51, %v379_v52  ;;  %v176_v51 = vld [vmem:[#allocation5 + $0x98] sm:$0xff] }
 0x198   :  { %3276 = vmatprep.subr.bf16.mxu0 %v6571_v62  ;;  %v387_v62 = vld [vmem:[#allocation5 + $0x730] sm:$0xff]  ;;  %v180_v52 = vld [vmem:[#allocation5 + $0xb8] sm:$0xff] }
 0x199   :  { %3164 = vmatpush1.bf16.msra.mxu1 %v6760_v1  ;;  %v6825_v1 = vcombine.high %v574_v58, %v578_v60  ;;  %v6634_v8 = vcombine.low %v383_v61, %v387_v62 }
 0x19a   :  { %3165 = vmatprep.subr.bf16.mxu1 %v6769_v3  ;;  %v582_v3 = vld [vmem:[#allocation5 + $0xd48] sm:$0xff] }
 0x19b   :  { %3277 = vmatpush1.bf16.msra.mxu0 %v6570_v2  ;;  %v6635_v2 = vcombine.high %v383_v61, %v387_v62  ;;  %v184_v62 = vld [vmem:[#allocation5 + $0xd8] sm:$0xff] }
 0x19c   :  { %3278 = vmatprep.subr.bf16.mxu0 %v6579_v7  ;;  %v6824_v7 = vcombine.low %v574_v58, %v578_v60  ;;  %v6429_v60 = vcombine.high %v176_v51, %v180_v52 }
 0x19d   :  { %3166 = vmatpush1.bf16.msra.mxu1 %v6768_v9  ;;  %v6833_v9 = vcombine.high %v582_v3, %v586_v4 }
 0x19e   :  { %3167 = vmatprep.subr.bf16.mxu1 %v6777_v11  ;;  %v590_v11 = vld [vmem:[#allocation5 + $0xd88] sm:$0xff] }
 0x19f   :  { %3279 = vmatpush1.bf16.msra.mxu0 %v6578_v10  ;;  %v6643_v10 = vcombine.high %v391_v5, %v395_v6  ;;  %v192_v6 = vld [vmem:[#allocation5 + $0x118] sm:$0xff] }
 0x1a0   :  { %3280 = vmatprep.subr.bf16.mxu0 %v6587_v16  ;;  %v6832_v16 = vcombine.low %v582_v3, %v586_v4  ;;  %v6428_v3 = vcombine.low %v176_v51, %v180_v52 }
 0x1a1   :  { %3168 = vmatpush1.bf16.msra.mxu1 %v6776_v18  ;;  %v6841_v18 = vcombine.high %v590_v11, %v594_v13 }
 0x1a2   :  { %3169 = vmatprep.subr.bf16.mxu1 %v6785_v20  ;;  %v6651_v20 = vcombine.high %v399_v14, %v403_v15 }
 0x1a3   :  { %3281 = vmatpush1.bf16.msra.mxu0 %v6586_v19 }
 0x1a4   :  { %3282 = vmatprep.subr.bf16.mxu0 %v6595_v21  ;;  %v598_v21 = vld [vmem:[#allocation5 + $0xdc8] sm:$0xff] }
 0x1a5   :  { %3170 = vmatpush1.bf16.msra.mxu1 %v6784_v26  ;;  %v6849_v30 = vcombine.high %v598_v21, %v602_v22 }
 0x1a6   :  { %3182 = vmatprep.subr.bf16.mxu1 %v6793_v28 }
 0x1a7   :  { %3283 = vmatpush1.bf16.msra.mxu0 %v6594_v27  ;;  %v6840_v27 = vcombine.low %v590_v11, %v594_v13 }
 0x1a8   :  { %3284 = vmatprep.subr.bf16.mxu0 %v6603_v29  ;;  %3172 = vmatmul.mubr.bf16.vlgmr.msra.gmra.mrb[4].mxu1 %v8284_v43  ;;  %v6650_v29 = vcombine.low %v399_v14, %v403_v15  ;;  %v200_v14 = vld [vmem:[#allocation5 + $0x158] sm:$0xff] }
 0x1a9   :  { %3183 = vmatpush1.bf16.msra.mxu1 %v6792_v35  ;;  %3214 = vmatprep.mubr.bf16.mxu1 %v8095_v38  ;;  %v415_v35 = vld [vmem:[#allocation5 + $0x810] sm:$0xff]  ;;  %v204_v15 = vld [vmem:[#allocation5 + $0x178] sm:$0xff] }
 0x1aa   :  { %3184 = vmatprep.subr.bf16.mxu1 %v6801_v12  ;;  %v6848_v12 = vcombine.low %v598_v21, %v602_v22  ;;  %v6453_v21 = vcombine.high %v200_v14, %v204_v15 }
 0x1ab   :  { %3285 = vmatpush1.bf16.msra.mxu0 %v6602_v37  ;;  %v419_v37 = vld [vmem:[#allocation5 + $0x830] sm:$0xff] }
 0x1ac   :  { %3286 = vmatprep.subr.bf16.mxu0 %v6611_v40  ;;  %v6658_v40 = vcombine.low %v407_v24, %v411_v25  ;;  %v6667_v42 = vcombine.high %v415_v35, %v419_v37  ;;  %v208_v24 = vld [vmem:[#allocation5 + $0x198] sm:$0xff] }
 0x1ad   :  { %3185 = vmatpush1.bf16.msra.mxu1 %v6800_v45  ;;  %v423_v45 = vld [vmem:[#allocation5 + $0x850] sm:$0xff]  ;;  %v212_v25 = vld [vmem:[#allocation5 + $0x1b8] sm:$0xff] }
 0x1ae   :  { %3186 = vmatprep.subr.bf16.mxu1 %v6809_v48  ;;  %v6412_v48 = vcombine.low %v160_v32, %v164_v33  ;;  %v6461_v32 = vcombine.high %v208_v24, %v212_v25 }
 0x1af   :  { %3287 = vmatpush1.bf16.msra.mxu0 %v6610_v46  ;;  %v427_v46 = vld [vmem:[#allocation5 + $0x870] sm:$0xff] }
 0x1b0   :  { %3288 = vmatprep.subr.bf16.mxu0 %v6619_v59  ;;  %v6666_v59 = vcombine.low %v415_v35, %v419_v37  ;;  %v6675_v50 = vcombine.high %v423_v45, %v427_v46  ;;  %v6674_v58 = vcombine.low %v423_v45, %v427_v46  ;;  %v216_v35 = vld [vmem:[#allocation5 + $0x1d8] sm:$0xff] }
 0x1b1   :  { %3187 = vmatpush1.bf16.msra.mxu1 %v6808_v53  ;;  %v8296_v53 = vld [vmem:[#allocation2 + $0x18] ss:$28 sps:$4 sm:$0xff]  }
 0x1b2   :  { %3188 = vmatprep.subr.bf16.mxu1 %v6817_v55  ;;  %v435_v55 = vld [vmem:[#allocation5 + $0x8b0] sm:$0xff]  ;;  %v220_v37 = vld [vmem:[#allocation5 + $0x1f8] sm:$0xff] }
 0x1b3   :  { %3289 = vmatpush1.bf16.msra.mxu0 %v6618_v54  ;;  %v431_v54 = vld [vmem:[#allocation5 + $0x890] sm:$0xff]  ;;  %v224_v45 = vld [vmem:[#allocation5 + $0x218] sm:$0xff] }
 0x1b4   :  { %3290 = vmatprep.subr.bf16.mxu0 %v6627_v56  ;;  %v6420_v56 = vcombine.low %v168_v44, %v172_v57  ;;  %v6683_v61 = vcombine.high %v431_v54, %v435_v55  ;;  %v6469_v44 = vcombine.high %v216_v35, %v220_v37  ;;  %v228_v46 = vld [vmem:[#allocation5 + $0x238] sm:$0xff] }
 0x1b5   :  { %3189 = vmatpush1.bf16.msra.mxu1 %v6816_v63  ;;  %v188_v63 = vld [vmem:[#allocation5 + $0xf8] sm:$0xff]  ;;  %v6477_v51 = vcombine.high %v224_v45, %v228_v46 }
 0x1b6   :  { %3190 = vmatprep.subr.bf16.mxu1 %v6825_v1  ;;  %v443_v1 = vld [vmem:[#allocation5 + $0x8f0] sm:$0xff]  ;;  %v6437_v4 = vcombine.high %v184_v62, %v188_v63 }
 0x1b7   :  { %3291 = vmatpush1.bf16.msra.mxu0 %v6626_v0  ;;  %v439_v0 = vld [vmem:[#allocation5 + $0x8d0] sm:$0xff] }
 0x1b8   :  { %3292 = vmatprep.subr.bf16.mxu0 %v6635_v2  ;;  %v7837_v2 = vld [vmem:[#allocation2 + $0x4] ss:$28 sps:$4 sm:$0xff]   ;;  %v6691_v5 = vcombine.high %v439_v0, %v443_v1 }
 0x1b9   :  { %3191 = vmatpush1.bf16.msra.mxu1 %v6824_v7  ;;  %v196_v7 = vld [vmem:[#allocation5 + $0x138] sm:$0xff] }
 0x1ba   :  { %3192 = vmatprep.subr.bf16.mxu1 %v6833_v9  ;;  %v451_v9 = vld [vmem:[#allocation5 + $0x930] sm:$0xff]  ;;  %v6445_v11 = vcombine.high %v192_v6, %v196_v7 }
 0x1bb   :  { %3293 = vmatpush1.bf16.msra.mxu0 %v6634_v8  ;;  %v8288_v19 = vpop.f32.mrb[0].mxu1  ;;  %v447_v8 = vld [vmem:[#allocation5 + $0x910] sm:$0xff] }
 0x1bc   :  { %3294 = vmatprep.subr.bf16.mxu0 %v6643_v10  ;;  %v8290_v23 = vpop.f32.mrb[1].mxu1  ;;  %v6436_v10 = vcombine.low %v184_v62, %v188_v63  ;;  %v6699_v13 = vcombine.high %v447_v8, %v451_v9 }
 0x1bd   :  { %v8292_v26 = vpop.f32.mrb[2].mxu1  ;;  %3193 = vmatpush1.bf16.msra.mxu1 %v6832_v16  ;;  %v455_v16 = vld [vmem:[#allocation5 + $0x950] sm:$0xff] }
 0x1be   :  { %v8294_v28 = vpop.f32.mrb[3].mxu1  ;;  %3194 = vmatprep.subr.bf16.mxu1 %v6841_v18  ;;  %v6444_v18 = vcombine.low %v192_v6, %v196_v7  ;;  %v248_v7 = vld [vmem:[#allocation5 + $0x2d8] sm:$0xff] }
 0x1bf   :  { %3295 = vmatpush1.bf16.msra.mxu0 %v6642_v17  ;;  %v459_v17 = vld [vmem:[#allocation5 + $0x970] sm:$0xff] }
 0x1c0   :  { %3296 = vmatprep.subr.bf16.mxu0 %v6651_v20  ;;  %v6698_v20 = vcombine.low %v447_v8, %v451_v9  ;;  %v6707_v22 = vcombine.high %v455_v16, %v459_v17  ;;  %v252_v8 = vld [vmem:[#allocation5 + $0x2f8] sm:$0xff]  ;;  %v503_v9 = vld [vmem:[#allocation5 + $0xad0] sm:$0xff] }
 0x1c1   :  { %3195 = vmatpush1.bf16.msra.mxu1 %v6840_v27  ;;  %v463_v27 = vld [vmem:[#allocation5 + $0x990] sm:$0xff] }
 0x1c2   :  { %3196 = vmatprep.subr.bf16.mxu1 %v6849_v30  ;;  %v6452_v30 = vcombine.low %v200_v14, %v204_v15  ;;  %v256_v15 = vld [vmem:[#allocation5 + $0x318] sm:$0xff] }
 0x1c3   :  { %3297 = vmatpush1.bf16.msra.mxu0 %v6650_v29  ;;  %v467_v29 = vld [vmem:[#allocation5 + $0x9b0] sm:$0xff] }
 0x1c4   :  { %3298 = vmatprep.subr.bf16.mxu0 %v6659_v31  ;;  %v6706_v31 = vcombine.low %v455_v16, %v459_v17  ;;  %v6715_v33 = vcombine.high %v463_v27, %v467_v29  ;;  %v260_v16 = vld [vmem:[#allocation5 + $0x338] sm:$0xff]  ;;  %v511_v17 = vld [vmem:[#allocation5 + $0xb10] sm:$0xff] }
 0x1c5   :  { %3197 = vmatpush1.bf16.msra.mxu1 %v6848_v12  ;;  %v471_v12 = vld [vmem:[#allocation5 + $0x9d0] sm:$0xff] }
 0x1c6   :  { %3397 = vmatprep.subr.bf16.mxu1 %v6413_v41  ;;  %v6460_v41 = vcombine.low %v208_v24, %v212_v25  ;;  %v264_v25 = vld [vmem:[#allocation5 + $0x358] sm:$0xff] }
 0x1c7   :  { %3299 = vmatpush1.bf16.msra.mxu0 %v6658_v40  ;;  %v475_v40 = vld [vmem:[#allocation5 + $0x9f0] sm:$0xff] }
 0x1c8   :  { %3311 = vmatprep.subr.bf16.mxu0 %v6667_v42  ;;  %3215 = vmatmul.mubr.bf16.vlgmr.msra.gmra.mrb[4].mxu1 %v8296_v53  ;;  %v6714_v42 = vcombine.low %v463_v27, %v467_v29  ;;  %v6723_v57 = vcombine.high %v471_v12, %v475_v40  ;;  %v268_v27 = vld [vmem:[#allocation5 + $0x378] sm:$0xff]  ;;  %v519_v29 = vld [vmem:[#allocation5 + $0xb50] sm:$0xff] }
 0x1c9   :  { %3398 = vmatpush1.bf16.msra.mxu1 %v6412_v48  ;;  %3429 = vmatprep.mubr.bf16.mxu1 %v7837_v2  ;;  %v479_v48 = vld [vmem:[#allocation5 + $0xa10] sm:$0xff] }
 0x1ca   :  { %3301 = vmatmul.mubr.bf16.vlgmr.msra.gmra.mrb[4].mxu0 %v8272_v34  ;;  %3399 = vmatprep.subr.bf16.mxu1 %v6421_v49  ;;  %v6682_v34 = vcombine.low %v431_v54, %v435_v55  ;;  %v6468_v49 = vcombine.low %v216_v35, %v220_v37  ;;  %v232_v54 = vld [vmem:[#allocation5 + $0x258] sm:$0xff]  ;;  %v495_v2 = vld [vmem:[#allocation5 + $0xa90] sm:$0xff] }
 0x1cb   :  { %3312 = vmatpush1.bf16.msra.mxu0 %v6666_v59  ;;  %3343 = vmatprep.mubr.bf16.mxu0 %v8275_v36  ;;  %v6690_v36 = vcombine.low %v439_v0, %v443_v1  ;;  %v483_v59 = vld [vmem:[#allocation5 + $0xa30] sm:$0xff]  ;;  %v236_v55 = vld [vmem:[#allocation5 + $0x278] sm:$0xff] }
 0x1cc   :  { %3313 = vmatprep.subr.bf16.mxu0 %v6675_v50  ;;  %v6722_v50 = vcombine.low %v471_v12, %v475_v40  ;;  %v6731_v52 = vcombine.high %v479_v48, %v483_v59  ;;  %v6485_v62 = vcombine.high %v232_v54, %v236_v55  ;;  %v240_v0 = vld [vmem:[#allocation5 + $0x298] sm:$0xff]  ;;  %v527_v40 = vld [vmem:[#allocation5 + $0xb90] sm:$0xff] }
 0x1cd   :  { %3400 = vmatpush1.bf16.msra.mxu1 %v6420_v56  ;;  %v487_v56 = vld [vmem:[#allocation5 + $0xa50] sm:$0xff]  ;;  %v244_v1 = vld [vmem:[#allocation5 + $0x2b8] sm:$0xff] }
 0x1ce   :  { %3401 = vmatprep.subr.bf16.mxu1 %v6429_v60  ;;  %v6476_v60 = vcombine.low %v224_v45, %v228_v46  ;;  %v272_v37 = vld [vmem:[#allocation5 + $0x398] sm:$0xff] }
 0x1cf   :  { %3314 = vmatpush1.bf16.msra.mxu0 %v6674_v58  ;;  %v491_v58 = vld [vmem:[#allocation5 + $0xa70] sm:$0xff]  ;;  %v276_v12 = vld [vmem:[#allocation5 + $0x3b8] sm:$0xff] }
 0x1d0   :  { %3315 = vmatprep.subr.bf16.mxu0 %v6683_v61  ;;  %v6730_v61 = vcombine.low %v479_v48, %v483_v59  ;;  %v6739_v63 = vcombine.high %v487_v56, %v491_v58  ;;  %v280_v46 = vld [vmem:[#allocation5 + $0x3d8] sm:$0xff]  ;;  %v535_v59 = vld [vmem:[#allocation5 + $0xbd0] sm:$0xff] }
 0x1d1   :  { %3402 = vmatpush1.bf16.msra.mxu1 %v6428_v3  ;;  %v499_v3 = vld [vmem:[#allocation5 + $0xab0] sm:$0xff]  ;;  %v284_v48 = vld [vmem:[#allocation5 + $0x3f8] sm:$0xff] }
 0x1d2   :  { %3403 = vmatprep.subr.bf16.mxu1 %v6437_v4  ;;  %v6738_v4 = vcombine.low %v487_v56, %v491_v58  ;;  %v6747_v6 = vcombine.high %v495_v2, %v499_v3  ;;  %v292_v56 = vld [vmem:[#allocation5 + $0x438] sm:$0xff]  ;;  %v543_v58 = vld [vmem:[#allocation5 + $0xc10] sm:$0xff] }
 0x1d3   :  { %3316 = vmatpush1.bf16.msra.mxu0 %v6682_v34  ;;  %v6484_v34 = vcombine.low %v232_v54, %v236_v55  ;;  %v288_v55 = vld [vmem:[#allocation5 + $0x418] sm:$0xff] }
 0x1d4   :  { %3317 = vmatprep.subr.bf16.mxu0 %v6691_v5  ;;  %v6493_v5 = vcombine.high %v240_v0, %v244_v1 }
 0x1d5   :  { %3404 = vmatpush1.bf16.msra.mxu1 %v6436_v10  ;;  %v507_v10 = vld [vmem:[#allocation5 + $0xaf0] sm:$0xff] }
 0x1d6   :  { %3405 = vmatprep.subr.bf16.mxu1 %v6445_v11  ;;  %v6746_v11 = vcombine.low %v495_v2, %v499_v3  ;;  %v6755_v14 = vcombine.high %v503_v9, %v507_v10  ;;  %v300_v2 = vld [vmem:[#allocation5 + $0x478] sm:$0xff]  ;;  %v551_v3 = vld [vmem:[#allocation5 + $0xc50] sm:$0xff] }
 0x1d7   :  { %3318 = vmatpush1.bf16.msra.mxu0 %v6690_v36  ;;  %v6492_v36 = vcombine.low %v240_v0, %v244_v1  ;;  %v296_v1 = vld [vmem:[#allocation5 + $0x458] sm:$0xff] }
 0x1d8   :  { %3319 = vmatprep.subr.bf16.mxu0 %v6699_v13  ;;  %v6501_v13 = vcombine.high %v248_v7, %v252_v8 }
 0x1d9   :  { %3406 = vmatpush1.bf16.msra.mxu1 %v6444_v18  ;;  %v515_v18 = vld [vmem:[#allocation5 + $0xb30] sm:$0xff] }
 0x1da   :  { %3407 = vmatprep.subr.bf16.mxu1 %v6453_v21  ;;  %v6754_v21 = vcombine.low %v503_v9, %v507_v10  ;;  %v6763_v24 = vcombine.high %v511_v17, %v515_v18  ;;  %v6549_v9 = vcombine.high %v296_v1, %v300_v2 }
 0x1db   :  { %3320 = vmatpush1.bf16.msra.mxu0 %v6698_v20  ;;  %v6500_v20 = vcombine.low %v248_v7, %v252_v8  ;;  %v6540_v7 = vcombine.low %v288_v55, %v292_v56 }
 0x1dc   :  { %3321 = vmatprep.subr.bf16.mxu0 %v6707_v22  ;;  %v6509_v22 = vcombine.high %v256_v15, %v260_v16 }
 0x1dd   :  { %3408 = vmatpush1.bf16.msra.mxu1 %v6452_v30  ;;  %v523_v30 = vld [vmem:[#allocation5 + $0xb70] sm:$0xff] }
 0x1de   :  { %3409 = vmatprep.subr.bf16.mxu1 %v6461_v32  ;;  %v6762_v32 = vcombine.low %v511_v17, %v515_v18  ;;  %v6771_v35 = vcombine.high %v519_v29, %v523_v30  ;;  %v6548_v17 = vcombine.low %v296_v1, %v300_v2 }
 0x1df   :  { %3322 = vmatpush1.bf16.msra.mxu0 %v6706_v31  ;;  %v6508_v31 = vcombine.low %v256_v15, %v260_v16 }
 0x1e0   :  { %3323 = vmatprep.subr.bf16.mxu0 %v6715_v33  ;;  %v6517_v33 = vcombine.high %v264_v25, %v268_v27 }
 0x1e1   :  { %3410 = vmatpush1.bf16.msra.mxu1 %v6460_v41  ;;  %v531_v41 = vld [vmem:[#allocation5 + $0xbb0] sm:$0xff] }
 0x1e2   :  { %3411 = vmatprep.subr.bf16.mxu1 %v6469_v44  ;;  %v6770_v44 = vcombine.low %v519_v29, %v523_v30  ;;  %v6779_v45 = vcombine.high %v527_v40, %v531_v41  ;;  %v7843_v29 = vld.sshfl [vmem:[#allocation7] sm:$0xff pattern:$0x75316420] }
 0x1e3   :  { %3324 = vmatpush1.bf16.msra.mxu0 %v6714_v42  ;;  %v6516_v42 = vcombine.low %v264_v25, %v268_v27  ;;  %v571_v25 = vld [vmem:[#allocation5 + $0xcf0] sm:$0xff] }
 0x1e4   :  { %3325 = vmatprep.subr.bf16.mxu0 %v6723_v57  ;;  %v6525_v57 = vcombine.high %v272_v37, %v276_v12 }
 0x1e5   :  { %3412 = vmatpush1.bf16.msra.mxu1 %v6468_v49  ;;  %v539_v49 = vld [vmem:[#allocation5 + $0xbf0] sm:$0xff] }
 0x1e6   :  { %3413 = vmatprep.subr.bf16.mxu1 %v6477_v51  ;;  %v6778_v51 = vcombine.low %v527_v40, %v531_v41  ;;  %v6787_v54 = vcombine.high %v535_v59, %v539_v49 }
 0x1e7   :  { %3326 = vmatpush1.bf16.msra.mxu0 %v6722_v50  ;;  %v6524_v50 = vcombine.low %v272_v37, %v276_v12  ;;  %v575_v37 = vld [vmem:[#allocation5 + $0xd10] sm:$0xff] }
 0x1e8   :  { %3327 = vmatprep.subr.bf16.mxu0 %v6731_v52  ;;  %v6533_v52 = vcombine.high %v280_v46, %v284_v48  ;;  %v579_v12 = vld [vmem:[#allocation5 + $0xd30] sm:$0xff] }
 0x1e9   :  { %3414 = vmatpush1.bf16.msra.mxu1 %v6476_v60  ;;  %v547_v60 = vld [vmem:[#allocation5 + $0xc30] sm:$0xff] }
 0x1ea   :  { %3415 = vmatprep.subr.bf16.mxu1 %v6485_v62  ;;  %v6786_v62 = vcombine.low %v535_v59, %v539_v49  ;;  %v6795_v0 = vcombine.high %v543_v58, %v547_v60  ;;  %v6794_v8 = vcombine.low %v543_v58, %v547_v60  ;;  %v6826_v49 = vcombine.low %v575_v37, %v579_v12  ;;  %v591_v58 = vld [vmem:[#allocation5 + $0xd90] sm:$0xff] }
 0x1eb   :  { %3328 = vmatpush1.bf16.msra.mxu0 %v6730_v61  ;;  %v6532_v61 = vcombine.low %v280_v46, %v284_v48  ;;  %v587_v46 = vld [vmem:[#allocation5 + $0xd70] sm:$0xff]  ;;  %v3594_v48 = vcombine.high %v7843_v29, %v7843_v29 }
 0x1ec   :  { %3329 = vmatprep.subr.bf16.mxu0 %v6739_v63  ;;  %v6541_v63 = vcombine.high %v288_v55, %v292_v56  ;;  %v340_v55 = vld [vmem:[#allocation5 + $0x5b8] sm:$0xff]  ;;  %v595_v60 = vld [vmem:[#allocation5 + $0xdb0] sm:$0xff] }
 0x1ed   :  { %3416 = vmatpush1.bf16.msra.mxu1 %v6484_v34  ;;  %v555_v34 = vld [vmem:[#allocation5 + $0xc70] sm:$0xff]  ;;  %v6843_v2 = vcombine.high %v591_v58, %v595_v60 }
 0x1ee   :  { %3417 = vmatprep.subr.bf16.mxu1 %v6493_v5  ;;  %v6803_v10 = vcombine.high %v551_v3, %v555_v34  ;;  %v6802_v18 = vcombine.low %v551_v3, %v555_v34  ;;  %v344_v3 = vld [vmem:[#allocation5 + $0x5d8] sm:$0xff] }
 0x1ef   :  { %3330 = vmatpush1.bf16.msra.mxu0 %v6738_v4  ;;  %v8096_v4 = vmov 1966171168   ;;  %v348_v34 = vld [vmem:[#allocation5 + $0x5f8] sm:$0xff] }
 0x1f0   :  { %3331 = vmatprep.subr.bf16.mxu0 %v6747_v6  ;;  %v3581_v5 = vunpack.c.l.s4 %v8096_v4  ;;  %v3583_v6 = vlaneseq }
 0x1f1   :  { %3418 = vmatpush1.bf16.msra.mxu1 %v6492_v36  ;;  %v304_v36 = vld [vmem:[#allocation5 + $0x498] sm:$0xff] }
 0x1f2   :  { %3419 = vmatprep.subr.bf16.mxu1 %v6501_v13  ;;  %v559_v13 = vld [vmem:[#allocation5 + $0xc90] sm:$0xff]  ;;  %v3582_v15 = vunpack.c.0.s8 %v3581_v5  ;;  %v8302_v16 = vshrl.u32 %v3583_v6, 7 }
 0x1f3   :  { %3332 = vmatpush1.bf16.msra.mxu0 %v6746_v11  ;;  %v308_v11 = vld [vmem:[#allocation5 + $0x4b8] sm:$0xff]  ;;  %v599_v6 = vld [vmem:[#allocation5 + $0xdd0] sm:$0xff] }
 0x1f4   :  { %3333 = vmatprep.subr.bf16.mxu0 %v6755_v14  ;;  %v563_v14 = vld [vmem:[#allocation5 + $0xcb0] sm:$0xff]  ;;  %v8307_v27 = vsub.s32 %v3582_v15, %v8302_v16  ;;  %v8319_v1 = vsub.s32 0, %v8302_v16 }
 0x1f5   :  { %3420 = vmatpush1.bf16.msra.mxu1 %v6500_v20  ;;  %v6557_v20 = vcombine.high %v304_v36, %v308_v11  ;;  %v6810_v30 = vcombine.low %v559_v13, %v563_v14 }
 0x1f6   :  { %3421 = vmatprep.subr.bf16.mxu1 %v6509_v22  ;;  %v312_v22 = vld [vmem:[#allocation5 + $0x4d8] sm:$0xff]  ;;  %v8314_v56 = vrot.slane %v3594_v48, %v8307_v27 }
 0x1f7   :  { %3334 = vmatpush1.bf16.msra.mxu0 %v6754_v21  ;;  %v6811_v21 = vcombine.high %v559_v13, %v563_v14  ;;  %v6842_v13 = vcombine.low %v591_v58, %v595_v60  ;;  %v6597_v14 = vcombine.high %v344_v3, %v348_v34  ;;  %v380_v48 = vld [vmem:[#allocation5 + $0x6f8] sm:$0xff] }
 0x1f8   :  { %3335 = vmatprep.subr.bf16.mxu0 %v6763_v24  ;;  %v316_v24 = vld [vmem:[#allocation5 + $0x4f8] sm:$0xff]  ;;  %v3636_v5 = vpack.i.b16 %v8314_v56, %v8314_v56 }
 0x1f9   :  { %3422 = vmatpush1.bf16.msra.mxu1 %v6508_v31  ;;  %v6565_v31 = vcombine.high %v312_v22, %v316_v24  ;;  %v6564_v40 = vcombine.low %v312_v22, %v316_v24  ;;  %v7334_v58 = vld [vmem:[#allocation8 + $0x60] ss:$16 sps:$4 sm:$0xff]  }
 0x1fa   :  { %3423 = vmatprep.subr.bf16.mxu1 %v6517_v33  ;;  %v320_v33 = vld [vmem:[#allocation5 + $0x518] sm:$0xff]  ;;  %v3641_v22 = vrot.slane %v3636_v5, %v8319_v1 }
 0x1fb   :  { %3336 = vmatpush1.bf16.msra.mxu0 %v6762_v32  ;;  %v404_v5 = vld [vmem:[#allocation5 + $0x7b8] sm:$0xff] }
 0x1fc   :  { %3337 = vmatprep.subr.bf16.mxu0 %v6771_v35  ;;  %v324_v35 = vld [vmem:[#allocation5 + $0x538] sm:$0xff] }
 0x1fd   :  { %3424 = vmatpush1.bf16.msra.mxu1 %v6516_v42  ;;  %v6573_v42 = vcombine.high %v320_v33, %v324_v35  ;;  %v6572_v59 = vcombine.low %v320_v33, %v324_v35 }
 0x1fe   :  { %3425 = vmatprep.subr.bf16.mxu1 %v6525_v57  ;;  %v332_v57 = vld [vmem:[#allocation5 + $0x578] sm:$0xff] }
 0x1ff   :  { %3338 = vmatpush1.bf16.msra.mxu0 %v6770_v44  ;;  %v328_v44 = vld [vmem:[#allocation5 + $0x558] sm:$0xff] }
 0x200   :  { %3339 = vmatprep.subr.bf16.mxu0 %v6779_v45  ;;  %v583_v45 = vld [vmem:[#allocation5 + $0xd50] sm:$0xff] }
 0x201   :  { %3426 = vmatpush1.bf16.msra.mxu1 %v6524_v50  ;;  %v6581_v50 = vcombine.high %v328_v44, %v332_v57 }
 0x202   :  { %3427 = vmatprep.subr.bf16.mxu1 %v6533_v52  ;;  %v8311_v52 = vrot.slane %v7843_v29, %v8307_v27  ;;  %v7327_v29 = vld [vmem:[#allocation8 + $0x4] ss:$16 sps:$4 sm:$0xff]  }
 0x203   :  { %3340 = vmatpush1.bf16.msra.mxu0 %v6778_v51  ;;  %v6835_v51 = vcombine.high %v583_v45, %v587_v46 }
 0x204   :  { %3341 = vmatprep.subr.bf16.mxu0 %v6787_v54  ;;  %v336_v54 = vld [vmem:[#allocation5 + $0x598] sm:$0xff] }
 0x205   :  { %3428 = vmatpush1.bf16.msra.mxu1 %v6532_v61  ;;  %v6580_v61 = vcombine.low %v328_v44, %v332_v57  ;;  %v7328_v44 = vld [vmem:[#allocation8 + $0x20] ss:$16 sps:$4 sm:$0xff]  }
 0x206   :  { %3440 = vmatprep.subr.bf16.mxu1 %v6541_v63  ;;  %v6589_v63 = vcombine.high %v336_v54, %v340_v55 }
 0x207   :  { %3342 = vmatpush1.bf16.msra.mxu0 %v6786_v62  ;;  %v6834_v62 = vcombine.low %v583_v45, %v587_v46  ;;  %v7333_v45 = vld [vmem:[#allocation8 + $0x44] ss:$16 sps:$4 sm:$0xff]  }
 0x208   :  { %3354 = vmatprep.subr.bf16.mxu0 %v6795_v0  ;;  %3430 = vmatmul.mubr.bf16.vlgmr.msra.gmra.mrb[8].mxu1 %v8278_v39  ;;  %v567_v39 = vld [vmem:[#allocation5 + $0xcd0] sm:$0xff]  ;;  %v3629_v0 = vpack.i.b16 %v8311_v52, %v8311_v52  ;;  %v376_v46 = vld [vmem:[#allocation5 + $0x6d8] sm:$0xff] }
 0x209   :  { %3441 = vmatpush1.bf16.msra.mxu1 %v6540_v7  ;;  %3472 = vmatprep.mubr.bf16.mxu1 %v8281_v47  ;;  %v6819_v32 = vcombine.high %v567_v39, %v571_v25  ;;  %v6818_v41 = vcombine.low %v567_v39, %v571_v25  ;;  %v6827_v47 = vcombine.high %v575_v37, %v579_v12  ;;  %v603_v7 = vld [vmem:[#allocation5 + $0xdf0] sm:$0xff]  ;;  %v7330_v12 = vld [vmem:[#allocation8 + $0x24] ss:$16 sps:$4 sm:$0xff]  }
 0x20a   :  { %3344 = vmatmul.mubr.bf16.vlgmr.msra.gmra.mrb[4].mxu0 %v8284_v43  ;;  %3442 = vmatprep.subr.bf16.mxu1 %v6549_v9  ;;  %v6556_v43 = vcombine.low %v304_v36, %v308_v11  ;;  %v3634_v16 = vrot.slane %v3629_v0, %v8319_v1  ;;  %v6850_v25 = vcombine.low %v599_v6, %v603_v7 }
 0x20b   :  { %3355 = vmatpush1.bf16.msra.mxu0 %v6794_v8  ;;  %3386 = vmatprep.mubr.bf16.mxu0 %v8095_v38 }
 0x20c   :  { %3356 = vmatprep.subr.bf16.mxu0 %v6803_v10  ;;  %v6588_v10 = vcombine.low %v336_v54, %v340_v55  ;;  %v388_v54 = vld [vmem:[#allocation5 + $0x738] sm:$0xff]  ;;  %v6628_v55 = vcombine.low %v376_v46, %v380_v48 }
 0x20d   :  { %3443 = vmatpush1.bf16.msra.mxu1 %v6548_v17 }
 0x20e   :  { %3444 = vmatprep.subr.bf16.mxu1 %v6557_v20  ;;  %v352_v20 = vld [vmem:[#allocation5 + $0x618] sm:$0xff] }
 0x20f   :  { %3357 = vmatpush1.bf16.msra.mxu0 %v6802_v18  ;;  %v6851_v18 = vcombine.high %v599_v6, %v603_v7  ;;  %v7340_v7 = vld [vmem:[#allocation8 + $0xa0] ss:$16 sps:$4 sm:$0xff]  }
 0x210   :  { %3358 = vmatprep.subr.bf16.mxu0 %v6811_v21  ;;  %v356_v21 = vld [vmem:[#allocation5 + $0x638] sm:$0xff] }
 0x211   :  { %3445 = vmatpush1.bf16.msra.mxu1 %v6556_v43  ;;  %v6605_v43 = vcombine.high %v352_v20, %v356_v21  ;;  %v6604_v33 = vcombine.low %v352_v20, %v356_v21  ;;  %v7346_v20 = vld [vmem:[#allocation8 + $0xe0] ss:$16 sps:$4 sm:$0xff]  }
 0x212   :  { %3446 = vmatprep.subr.bf16.mxu1 %v6565_v31  ;;  %v360_v31 = vld [vmem:[#allocation5 + $0x658] sm:$0xff] }
 0x213   :  { %3359 = vmatpush1.bf16.msra.mxu0 %v6810_v30 }
 0x214   :  { %3360 = vmatprep.subr.bf16.mxu0 %v6819_v32  ;;  %v364_v32 = vld [vmem:[#allocation5 + $0x678] sm:$0xff] }
 0x215   :  { %3447 = vmatpush1.bf16.msra.mxu1 %v6564_v40  ;;  %v6613_v37 = vcombine.high %v360_v31, %v364_v32  ;;  %v368_v40 = vld [vmem:[#allocation5 + $0x698] sm:$0xff] }
 0x216   :  { %3448 = vmatprep.subr.bf16.mxu1 %v6573_v42 }
 0x217   :  { %3361 = vmatpush1.bf16.msra.mxu0 %v6818_v41  ;;  %v372_v41 = vld [vmem:[#allocation5 + $0x6b8] sm:$0xff] }
 0x218   :  { %3362 = vmatprep.subr.bf16.mxu0 %v6827_v47  ;;  %v6612_v47 = vcombine.low %v360_v31, %v364_v32  ;;  %v6621_v57 = vcombine.high %v368_v40, %v372_v41  ;;  %v7838_v31 = vld [vmem:[#allocation2 + $0x8] ss:$28 sps:$4 sm:$0xff]  }
 0x219   :  { %3449 = vmatpush1.bf16.msra.mxu1 %v6572_v59  ;;  %v6620_v59 = vcombine.low %v368_v40, %v372_v41  ;;  %v444_v40 = vld [vmem:[#allocation5 + $0x8f8] sm:$0xff] }
 0x21a   :  { %3450 = vmatprep.subr.bf16.mxu1 %v6581_v50  ;;  %v6629_v50 = vcombine.high %v376_v46, %v380_v48  ;;  %v452_v46 = vld [vmem:[#allocation5 + $0x938] sm:$0xff] }
 0x21b   :  { %3363 = vmatpush1.bf16.msra.mxu0 %v6826_v49  ;;  %v7331_v49 = vld [vmem:[#allocation8 + $0x40] ss:$16 sps:$4 sm:$0xff]  }
 0x21c   :  { %3364 = vmatprep.subr.bf16.mxu0 %v6835_v51  ;;  %v384_v51 = vld [vmem:[#allocation5 + $0x718] sm:$0xff] }
 0x21d   :  { %v3044_v4 = vpop.f32.mrb[0].mxu0  ;;  %3451 = vmatpush1.bf16.msra.mxu1 %v6580_v61  ;;  %v6637_v60 = vcombine.high %v384_v51, %v388_v54  ;;  %v7339_v61 = vld [vmem:[#allocation8 + $0x84] ss:$16 sps:$4 sm:$0xff]   ;;  %v6636_v0 = vcombine.low %v384_v51, %v388_v54 }
 0x21e   :  { %v7217_v8 = vadd.f32 %v3044_v4, %v8288_v19  ;;  %v3046_v9 = vpop.f32.mrb[1].mxu0  ;;  %3452 = vmatprep.subr.bf16.mxu1 %v6589_v63  ;;  %v396_v63 = vld [vmem:[#allocation5 + $0x778] sm:$0xff] }
 0x21f   :  { %v7218_v36 = vadd.f32 %v3046_v9, %v8290_v23  ;;  %v3048_v11 = vpop.f32.mrb[2].mxu0  ;;  %3365 = vmatpush1.bf16.msra.mxu0 %v6834_v62  ;;  %v6596_v23 = vcombine.low %v344_v3, %v348_v34  ;;  %v392_v62 = vld [vmem:[#allocation5 + $0x758] sm:$0xff] }
 0x220   :  { %v7219_v15 = vadd.f32 %v3048_v11, %v8292_v26  ;;  %v3050_v17 = vpop.f32.mrb[3].mxu0  ;;  %3366 = vmatprep.subr.bf16.mxu0 %v6843_v2  ;;  %v7337_v2 = vld [vmem:[#allocation8 + $0x80] ss:$16 sps:$4 sm:$0xff]   ;;  %v6645_v3 = vcombine.high %v392_v62, %v396_v63  ;;  %v7342_v34 = vld [vmem:[#allocation8 + $0xa4] ss:$16 sps:$4 sm:$0xff]   ;;  %v6644_v6 = vcombine.low %v392_v62, %v396_v63 }
 0x221   :  { %v7220_v19 = vadd.f32 %v3050_v17, %v8294_v28  ;;  %3453 = vmatpush1.bf16.msra.mxu1 %v6588_v10  ;;  %v7325_v28 = vld [vmem:[#allocation8] ss:$16 sps:$4 sm:$0xff]   ;;  %v7345_v9 = vld [vmem:[#allocation8 + $0xc4] ss:$16 sps:$4 sm:$0xff]  }
 0x222   :  { %v3569_v24 = vpack.c.bf16 %v7219_v15, %v7217_v8  ;;  %3454 = vmatprep.subr.bf16.mxu1 %v6597_v14  ;;  %v400_v4 = vld [vmem:[#allocation5 + $0x798] sm:$0xff] }
 0x223   :  { %v3570_v39 = vpack.c.bf16 %v7220_v19, %v7218_v36  ;;  %3367 = vmatpush1.bf16.msra.mxu0 %v6842_v13  ;;  %v6653_v8 = vcombine.high %v400_v4, %v404_v5  ;;  %v408_v10 = vld [vmem:[#allocation5 + $0x7d8] sm:$0xff]  ;;  %v6652_v11 = vcombine.low %v400_v4, %v404_v5 }
 0x224   :  { %v8329_v26 = vadd.bf16 %v3634_v16, %v3569_v24  ;;  %3368 = vmatprep.subr.bf16.mxu0 %v6851_v18  ;;  %v412_v36 = vld [vmem:[#allocation5 + $0x7f8] sm:$0xff] }
 0x225   :  { %v3685_v30 = vadd.bf16 %v3641_v22, %v3570_v39  ;;  %3455 = vmatpush1.bf16.msra.mxu1 %v6596_v23  ;;  %v7343_v13 = vld [vmem:[#allocation8 + $0xc0] ss:$16 sps:$4 sm:$0xff]   ;;  %v6661_v14 = vcombine.high %v408_v10, %v412_v36  ;;  %v7348_v15 = vld [vmem:[#allocation8 + $0xe4] ss:$16 sps:$4 sm:$0xff]   ;;  %v6660_v18 = vcombine.low %v408_v10, %v412_v36 }
 0x226   :  { %3456 = vmatprep.subr.bf16.mxu1 %v6605_v43  ;;  %v416_v16 = vld [vmem:[#allocation5 + $0x818] sm:$0xff]  ;;  %vm3692_vm1 = vcmp.gt.bf16.partialorder %v8329_v26, 0 }
 0x227   :  { %3369 = vmatpush1.bf16.msra.mxu0 %v6850_v25  ;;  %vm3693_vm0 = vcmp.gt.bf16.partialorder %v3685_v30, 0  ;;  %v3701_v35 = vmul.bf16 1045249613, %v3685_v30  ;;  %v420_v17 = vld [vmem:[#allocation5 + $0x838] sm:$0xff] }
 0x228   :  { %5252 = vmatprep.subr.bf16.mxu0 %v7327_v29  ;;  %v6669_v21 = vcombine.high %v416_v16, %v420_v17  ;;  %v7351_v19 = vld [vmem:[#allocation8 + $0x104] ss:$16 sps:$4 sm:$0xff]   ;;  %v6668_v23 = vcombine.low %v416_v16, %v420_v17  ;;  %v7349_v39 = vld [vmem:[#allocation8 + $0x100] ss:$16 sps:$4 sm:$0xff]   ;;  %v3700_v17 = vmul.bf16 1045249613, %v8329_v26 }
 0x229   :  { %v8331_v42 = vsel %vm3693_vm0, %v3685_v30, %v3701_v35  ;;  %3457 = vmatpush1.bf16.msra.mxu1 %v6604_v33  ;;  %v424_v22 = vld [vmem:[#allocation5 + $0x858] sm:$0xff] }
 0x22a   :  { %3387 = vmatmul.mubr.bf16.vlgmr.msra.gmra.mrb[4].mxu0 %v8296_v53  ;;  %3458 = vmatprep.subr.bf16.mxu1 %v6613_v37  ;;  %v7336_v53 = vld [vmem:[#allocation8 + $0x64] ss:$16 sps:$4 sm:$0xff]  }
 0x22b   :  { %5253 = vmatpush1.bf16.msra.mxu0 %v7325_v28  ;;  %5284 = vmatprep.mubr.bf16.mxu0 %v8331_v42  ;;  %v428_v24 = vld [vmem:[#allocation5 + $0x878] sm:$0xff] }
 0x22c   :  { %5254 = vmatprep.subr.bf16.mxu0 %v7330_v12  ;;  %v6677_v25 = vcombine.high %v424_v22, %v428_v24  ;;  %v7354_v43 = vld [vmem:[#allocation8 + $0x124] ss:$16 sps:$4 sm:$0xff]   ;;  %v6676_v32 = vcombine.low %v424_v22, %v428_v24  ;;  %v7352_v28 = vld [vmem:[#allocation8 + $0x120] ss:$16 sps:$4 sm:$0xff]  }
 0x22d   :  { %3459 = vmatpush1.bf16.msra.mxu1 %v6612_v47  ;;  %v432_v29 = vld [vmem:[#allocation5 + $0x898] sm:$0xff] }
 0x22e   :  { %3460 = vmatprep.subr.bf16.mxu1 %v6621_v57  ;;  %v436_v30 = vld [vmem:[#allocation5 + $0x8b8] sm:$0xff] }
 0x22f   :  { %5255 = vmatpush1.bf16.msra.mxu0 %v7328_v44  ;;  %v7839_v33 = vld [vmem:[#allocation2 + $0x14] ss:$28 sps:$4 sm:$0xff]   ;;  %v6685_v35 = vcombine.high %v432_v29, %v436_v30  ;;  %v6684_v41 = vcombine.low %v432_v29, %v436_v30 }
 0x230   :  { %5256 = vmatprep.subr.bf16.mxu0 %v7333_v45  ;;  %v7357_v37 = vld [vmem:[#allocation8 + $0x144] ss:$16 sps:$4 sm:$0xff]   ;;  %v7355_v47 = vld [vmem:[#allocation8 + $0x140] ss:$16 sps:$4 sm:$0xff]  }
 0x231   :  { %3461 = vmatpush1.bf16.msra.mxu1 %v6620_v59  ;;  %v440_v12 = vld [vmem:[#allocation5 + $0x8d8] sm:$0xff] }
 0x232   :  { %3462 = vmatprep.subr.bf16.mxu1 %v6629_v50  ;;  %v6693_v44 = vcombine.high %v440_v12, %v444_v40  ;;  %v7360_v57 = vld [vmem:[#allocation8 + $0x164] ss:$16 sps:$4 sm:$0xff]   ;;  %v6692_v48 = vcombine.low %v440_v12, %v444_v40  ;;  %v7358_v59 = vld [vmem:[#allocation8 + $0x160] ss:$16 sps:$4 sm:$0xff]  }
 0x233   :  { %5257 = vmatpush1.bf16.msra.mxu0 %v7331_v49  ;;  %v448_v45 = vld [vmem:[#allocation5 + $0x918] sm:$0xff] }
 0x234   :  { %5258 = vmatprep.subr.bf16.mxu0 %v7336_v53  ;;  %v6701_v49 = vcombine.high %v448_v45, %v452_v46  ;;  %v7363_v50 = vld [vmem:[#allocation8 + $0x184] ss:$16 sps:$4 sm:$0xff]   ;;  %v6700_v54 = vcombine.low %v448_v45, %v452_v46  ;;  %v7382_v40 = vld [vmem:[#allocation8 + $0x260] ss:$16 sps:$4 sm:$0xff]  }
 0x235   :  { %3463 = vmatpush1.bf16.msra.mxu1 %v6628_v55  ;;  %v456_v53 = vld [vmem:[#allocation5 + $0x958] sm:$0xff] }
 0x236   :  { %3464 = vmatprep.subr.bf16.mxu1 %v6637_v60  ;;  %v460_v51 = vld [vmem:[#allocation5 + $0x978] sm:$0xff] }
 0x237   :  { %5259 = vmatpush1.bf16.msra.mxu0 %v7334_v58  ;;  %v7361_v55 = vld [vmem:[#allocation8 + $0x180] ss:$16 sps:$4 sm:$0xff]   ;;  %v6709_v58 = vcombine.high %v456_v53, %v460_v51  ;;  %v7366_v60 = vld [vmem:[#allocation8 + $0x1a4] ss:$16 sps:$4 sm:$0xff]   ;;  %v6708_v63 = vcombine.low %v456_v53, %v460_v51 }
 0x238   :  { %5260 = vmatprep.subr.bf16.mxu0 %v7339_v61  ;;  %v464_v61 = vld [vmem:[#allocation5 + $0x998] sm:$0xff] }
 0x239   :  { %3465 = vmatpush1.bf16.msra.mxu1 %v6636_v0  ;;  %v468_v62 = vld [vmem:[#allocation5 + $0x9b8] sm:$0xff] }
 0x23a   :  { %3466 = vmatprep.subr.bf16.mxu1 %v6645_v3  ;;  %v7364_v0 = vld [vmem:[#allocation8 + $0x1a0] ss:$16 sps:$4 sm:$0xff]   ;;  %v7369_v3 = vld [vmem:[#allocation8 + $0x1c4] ss:$16 sps:$4 sm:$0xff]   ;;  %v6716_v5 = vcombine.low %v464_v61, %v468_v62 }
 0x23b   :  { %5261 = vmatpush1.bf16.msra.mxu0 %v7337_v2  ;;  %v6717_v2 = vcombine.high %v464_v61, %v468_v62  ;;  %v476_v4 = vld [vmem:[#allocation5 + $0x9f8] sm:$0xff] }
 0x23c   :  { %5262 = vmatprep.subr.bf16.mxu0 %v7342_v34  ;;  %v472_v34 = vld [vmem:[#allocation5 + $0x9d8] sm:$0xff] }
 0x23d   :  { %3467 = vmatpush1.bf16.msra.mxu1 %v6644_v6  ;;  %v7367_v6 = vld [vmem:[#allocation8 + $0x1c0] ss:$16 sps:$4 sm:$0xff]   ;;  %v6724_v36 = vcombine.low %v472_v34, %v476_v4  ;;  %v7381_v29 = vld [vmem:[#allocation8 + $0x244] ss:$16 sps:$4 sm:$0xff]  }
 0x23e   :  { %3468 = vmatprep.subr.bf16.mxu1 %v6653_v8  ;;  %v7372_v8 = vld [vmem:[#allocation8 + $0x1e4] ss:$16 sps:$4 sm:$0xff]   ;;  %v7385_v46 = vld [vmem:[#allocation8 + $0x280] ss:$16 sps:$4 sm:$0xff]  }
 0x23f   :  { %5263 = vmatpush1.bf16.msra.mxu0 %v7340_v7  ;;  %v6725_v7 = vcombine.high %v472_v34, %v476_v4  ;;  %v484_v10 = vld [vmem:[#allocation5 + $0xa38] sm:$0xff] }
 0x240   :  { %5264 = vmatprep.subr.bf16.mxu0 %v7345_v9  ;;  %v480_v9 = vld [vmem:[#allocation5 + $0xa18] sm:$0xff] }
 0x241   :  { %3469 = vmatpush1.bf16.msra.mxu1 %v6652_v11  ;;  %v7370_v11 = vld [vmem:[#allocation8 + $0x1e0] ss:$16 sps:$4 sm:$0xff]  }
 0x242   :  { %3470 = vmatprep.subr.bf16.mxu1 %v6661_v14  ;;  %v7375_v14 = vld [vmem:[#allocation8 + $0x204] ss:$16 sps:$4 sm:$0xff]   ;;  %v7388_v51 = vld [vmem:[#allocation8 + $0x2a0] ss:$16 sps:$4 sm:$0xff]  }
 0x243   :  { %5265 = vmatpush1.bf16.msra.mxu0 %v7343_v13  ;;  %v6733_v13 = vcombine.high %v480_v9, %v484_v10  ;;  %v492_v16 = vld [vmem:[#allocation5 + $0xa78] sm:$0xff] }
 0x244   :  { %5266 = vmatprep.subr.bf16.mxu0 %v7348_v15  ;;  %v488_v15 = vld [vmem:[#allocation5 + $0xa58] sm:$0xff] }
 0x245   :  { %3471 = vmatpush1.bf16.msra.mxu1 %v6660_v18  ;;  %v6732_v18 = vcombine.low %v480_v9, %v484_v10  ;;  %v496_v22 = vld [vmem:[#allocation5 + $0xa98] sm:$0xff] }
 0x246   :  { %3483 = vmatprep.subr.bf16.mxu1 %v6669_v21  ;;  %v6741_v21 = vcombine.high %v488_v15, %v492_v16  ;;  %v500_v24 = vld [vmem:[#allocation5 + $0xab8] sm:$0xff] }
 0x247   :  { %5267 = vmatpush1.bf16.msra.mxu0 %v7346_v20  ;;  %v7373_v20 = vld [vmem:[#allocation8 + $0x200] ss:$16 sps:$4 sm:$0xff]  }
 0x248   :  { %5268 = vmatprep.subr.bf16.mxu0 %v7351_v19  ;;  %3473 = vmatmul.mubr.bf16.vlgmr.msra.gmra.mrb[8].mxu1 %v7838_v31  ;;  %v7378_v19 = vld [vmem:[#allocation8 + $0x224] ss:$16 sps:$4 sm:$0xff]   ;;  %v7391_v62 = vld [vmem:[#allocation8 + $0x2c0] ss:$16 sps:$4 sm:$0xff]  }
 0x249   :  { %3484 = vmatpush1.bf16.msra.mxu1 %v6668_v23  ;;  %3515 = vmatprep.mubr.bf16.mxu1 %v7839_v33  ;;  %v8338_v23 = vsel %vm3692_vm1, %v8329_v26, %v3700_v17  ;;  %v504_v30 = vld [vmem:[#allocation5 + $0xad8] sm:$0xff] }
 0x24a   :  { %3485 = vmatprep.subr.bf16.mxu1 %v6677_v25  ;;  %v7376_v25 = vld [vmem:[#allocation8 + $0x220] ss:$16 sps:$4 sm:$0xff]   ;;  %v7384_v26 = vld [vmem:[#allocation8 + $0x264] ss:$16 sps:$4 sm:$0xff]  }
 0x24b   :  { %5269 = vmatpush1.bf16.msra.mxu0 %v7349_v39  ;;  %v6740_v39 = vcombine.low %v488_v15, %v492_v16  ;;  %v508_v31 = vld [vmem:[#allocation5 + $0xaf8] sm:$0xff] }
 0x24c   :  { %5270 = vmatprep.subr.bf16.mxu0 %v7354_v43  ;;  %v6749_v43 = vcombine.high %v496_v22, %v500_v24  ;;  %v7379_v33 = vld [vmem:[#allocation8 + $0x240] ss:$16 sps:$4 sm:$0xff]   ;;  %v6756_v12 = vcombine.low %v504_v30, %v508_v31 }
 0x24d   :  { %3486 = vmatpush1.bf16.msra.mxu1 %v6676_v32  ;;  %v6748_v32 = vcombine.low %v496_v22, %v500_v24  ;;  %v7394_v4 = vld [vmem:[#allocation8 + $0x2e0] ss:$16 sps:$4 sm:$0xff]  }
 0x24e   :  { %3487 = vmatprep.subr.bf16.mxu1 %v6685_v35  ;;  %v512_v35 = vld [vmem:[#allocation5 + $0xb18] sm:$0xff] }
 0x24f   :  { %5271 = vmatpush1.bf16.msra.mxu0 %v7352_v28  ;;  %v6757_v28 = vcombine.high %v504_v30, %v508_v31  ;;  %v7397_v10 = vld [vmem:[#allocation8 + $0x300] ss:$16 sps:$4 sm:$0xff]  }
 0x250   :  { %5272 = vmatprep.subr.bf16.mxu0 %v7357_v37  ;;  %v516_v37 = vld [vmem:[#allocation5 + $0xb38] sm:$0xff] }
 0x251   :  { %3488 = vmatpush1.bf16.msra.mxu1 %v6684_v41  ;;  %v6765_v41 = vcombine.high %v512_v35, %v516_v37  ;;  %v6764_v45 = vcombine.low %v512_v35, %v516_v37  ;;  %v7840_v15 = vld [vmem:[#allocation2 + $0x10] ss:$28 sps:$4 sm:$0xff]   ;;  %v3626_v37 = vcombine.high %v8314_v56, %v8314_v56 }
 0x252   :  { %3489 = vmatprep.subr.bf16.mxu1 %v6693_v44  ;;  %v520_v44 = vld [vmem:[#allocation5 + $0xb58] sm:$0xff] }
 0x253   :  { %5273 = vmatpush1.bf16.msra.mxu0 %v7355_v47  ;;  %v7387_v47 = vld [vmem:[#allocation8 + $0x284] ss:$16 sps:$4 sm:$0xff]   ;;  %v7400_v17 = vld [vmem:[#allocation8 + $0x320] ss:$16 sps:$4 sm:$0xff]  }
 0x254   :  { %5274 = vmatprep.subr.bf16.mxu0 %v7360_v57  ;;  %v524_v57 = vld [vmem:[#allocation5 + $0xb78] sm:$0xff] }
 0x255   :  { %3490 = vmatpush1.bf16.msra.mxu1 %v6692_v48  ;;  %v6773_v48 = vcombine.high %v520_v44, %v524_v57  ;;  %v6772_v53 = vcombine.low %v520_v44, %v524_v57  ;;  %v7403_v24 = vld [vmem:[#allocation8 + $0x340] ss:$16 sps:$4 sm:$0xff]  }
 0x256   :  { %3491 = vmatprep.subr.bf16.mxu1 %v6701_v49  ;;  %v528_v49 = vld [vmem:[#allocation5 + $0xb98] sm:$0xff] }
 0x257   :  { %5275 = vmatpush1.bf16.msra.mxu0 %v7358_v59  ;;  %v7390_v59 = vld [vmem:[#allocation8 + $0x2a4] ss:$16 sps:$4 sm:$0xff]   ;;  %v7406_v30 = vld [vmem:[#allocation8 + $0x360] ss:$16 sps:$4 sm:$0xff]  }
 0x258   :  { %5276 = vmatprep.subr.bf16.mxu0 %v7363_v50  ;;  %v532_v50 = vld [vmem:[#allocation5 + $0xbb8] sm:$0xff] }
 0x259   :  { %3492 = vmatpush1.bf16.msra.mxu1 %v6700_v54  ;;  %v6781_v54 = vcombine.high %v528_v49, %v532_v50  ;;  %v6780_v61 = vcombine.low %v528_v49, %v532_v50  ;;  %v596_v44 = vld [vmem:[#allocation5 + $0xdb8] sm:$0xff] }
 0x25a   :  { %3493 = vmatprep.subr.bf16.mxu1 %v6709_v58  ;;  %v536_v58 = vld [vmem:[#allocation5 + $0xbd8] sm:$0xff] }
 0x25b   :  { %5277 = vmatpush1.bf16.msra.mxu0 %v7361_v55  ;;  %v7393_v55 = vld [vmem:[#allocation8 + $0x2c4] ss:$16 sps:$4 sm:$0xff]  }
 0x25c   :  { %5278 = vmatprep.subr.bf16.mxu0 %v7366_v60  ;;  %v540_v60 = vld [vmem:[#allocation5 + $0xbf8] sm:$0xff] }
 0x25d   :  { %3494 = vmatpush1.bf16.msra.mxu1 %v6708_v63  ;;  %v6789_v63 = vcombine.high %v536_v58, %v540_v60  ;;  %v6788_v34 = vcombine.low %v536_v58, %v540_v60  ;;  %v7417_v49 = vld [vmem:[#allocation8 + $0x3c4] ss:$16 sps:$4 sm:$0xff]  }
 0x25e   :  { %3495 = vmatprep.subr.bf16.mxu1 %v6717_v2  ;;  %v544_v2 = vld [vmem:[#allocation5 + $0xc18] sm:$0xff] }
 0x25f   :  { %5279 = vmatpush1.bf16.msra.mxu0 %v7364_v0  ;;  %v7396_v0 = vld [vmem:[#allocation8 + $0x2e4] ss:$16 sps:$4 sm:$0xff]  }
 0x260   :  { %5280 = vmatprep.subr.bf16.mxu0 %v7369_v3  ;;  %v548_v3 = vld [vmem:[#allocation5 + $0xc38] sm:$0xff] }
 0x261   :  { %3496 = vmatpush1.bf16.msra.mxu1 %v6716_v5  ;;  %v6797_v5 = vcombine.high %v544_v2, %v548_v3  ;;  %v6796_v9 = vcombine.low %v544_v2, %v548_v3  ;;  %v600_v56 = vld [vmem:[#allocation5 + $0xdd8] sm:$0xff] }
 0x262   :  { %3497 = vmatprep.subr.bf16.mxu1 %v6725_v7  ;;  %v552_v7 = vld [vmem:[#allocation5 + $0xc58] sm:$0xff] }
 0x263   :  { %5281 = vmatpush1.bf16.msra.mxu0 %v7367_v6  ;;  %v7399_v6 = vld [vmem:[#allocation8 + $0x304] ss:$16 sps:$4 sm:$0xff]  }
 0x264   :  { %5282 = vmatprep.subr.bf16.mxu0 %v7372_v8  ;;  %v556_v8 = vld [vmem:[#allocation5 + $0xc78] sm:$0xff] }
 0x265   :  { %3498 = vmatpush1.bf16.msra.mxu1 %v6724_v36  ;;  %v6805_v36 = vcombine.high %v552_v7, %v556_v8  ;;  %v6804_v16 = vcombine.low %v552_v7, %v556_v8  ;;  %v604_v50 = vld [vmem:[#allocation5 + $0xdf8] sm:$0xff] }
 0x266   :  { %3499 = vmatprep.subr.bf16.mxu1 %v6733_v13  ;;  %v560_v13 = vld [vmem:[#allocation5 + $0xc98] sm:$0xff] }
 0x267   :  { %5283 = vmatpush1.bf16.msra.mxu0 %v7370_v11  ;;  %v7402_v11 = vld [vmem:[#allocation8 + $0x324] ss:$16 sps:$4 sm:$0xff]  }
 0x268   :  { %5295 = vmatprep.subr.bf16.mxu0 %v7375_v14  ;;  %v564_v14 = vld [vmem:[#allocation5 + $0xcb8] sm:$0xff] }
 0x269   :  { %3500 = vmatpush1.bf16.msra.mxu1 %v6732_v18  ;;  %v6813_v18 = vcombine.high %v560_v13, %v564_v14  ;;  %v6812_v22 = vcombine.low %v560_v13, %v564_v14  ;;  %v7420_v2 = vld [vmem:[#allocation8 + $0x3e4] ss:$16 sps:$4 sm:$0xff]   ;;  %v7445_v13 = vld [vmem:[#allocation8 + $0x400] ss:$16 sps:$4 sm:$0xff]  }
 0x26a   :  { %5285 = vmatmul.mubr.bf16.vlgmr.msra.gmra.mrb[8].mxu0 %v8338_v23  ;;  %3501 = vmatprep.subr.bf16.mxu1 %v6741_v21  ;;  %v568_v21 = vld [vmem:[#allocation5 + $0xcd8] sm:$0xff] }
 0x26b   :  { %5296 = vmatpush1.bf16.msra.mxu0 %v7373_v20  ;;  %v7405_v20 = vld [vmem:[#allocation8 + $0x344] ss:$16 sps:$4 sm:$0xff]  }
 0x26c   :  { %5297 = vmatprep.subr.bf16.mxu0 %v7378_v19  ;;  %v572_v19 = vld [vmem:[#allocation5 + $0xcf8] sm:$0xff] }
 0x26d   :  { %3502 = vmatpush1.bf16.msra.mxu1 %v6740_v39  ;;  %v6821_v39 = vcombine.high %v568_v21, %v572_v19  ;;  %v7447_v8 = vld [vmem:[#allocation8 + $0x404] ss:$16 sps:$4 sm:$0xff]  }
 0x26e   :  { %3503 = vmatprep.subr.bf16.mxu1 %v6749_v43  ;;  %v576_v43 = vld [vmem:[#allocation5 + $0xd18] sm:$0xff] }
 0x26f   :  { %5298 = vmatpush1.bf16.msra.mxu0 %v7376_v25  ;;  %v7408_v25 = vld [vmem:[#allocation8 + $0x364] ss:$16 sps:$4 sm:$0xff]  }
 0x270   :  { %5299 = vmatprep.subr.bf16.mxu0 %v7381_v29  ;;  %v580_v29 = vld [vmem:[#allocation5 + $0xd38] sm:$0xff] }
 0x271   :  { %3504 = vmatpush1.bf16.msra.mxu1 %v6748_v32  ;;  %v6829_v31 = vcombine.high %v576_v43, %v580_v29  ;;  %v7411_v32 = vld [vmem:[#allocation8 + $0x384] ss:$16 sps:$4 sm:$0xff]   ;;  %v6828_v35 = vcombine.low %v576_v43, %v580_v29  ;;  %v7435_v43 = vld [vmem:[#allocation8 + $0x8c] ss:$16 sps:$4 sm:$0xff]  }
 0x272   :  { %3505 = vmatprep.subr.bf16.mxu1 %v6757_v28  ;;  %v588_v28 = vld [vmem:[#allocation5 + $0xd78] sm:$0xff] }
 0x273   :  { %5300 = vmatpush1.bf16.msra.mxu0 %v7379_v33  ;;  %v584_v33 = vld [vmem:[#allocation5 + $0xd58] sm:$0xff] }
 0x274   :  { %5301 = vmatprep.subr.bf16.mxu0 %v7384_v26  ;;  %v3624_v26 = vcombine.high %v8311_v52, %v8311_v52  ;;  %v7412_v52 = vld [vmem:[#allocation8 + $0x3a0] ss:$16 sps:$4 sm:$0xff]   ;;  %v7841_v14 = vld [vmem:[#allocation2 + $0x18] ss:$28 sps:$4 sm:$0xff]  }
 0x275   :  { %3506 = vmatpush1.bf16.msra.mxu1 %v6756_v12  ;;  %v7409_v12 = vld [vmem:[#allocation8 + $0x380] ss:$16 sps:$4 sm:$0xff]   ;;  %v7471_v29 = vld [vmem:[#allocation8 + $0x484] ss:$16 sps:$4 sm:$0xff]  }
 0x276   :  { %3507 = vmatprep.subr.bf16.mxu1 %v6765_v41  ;;  %v7414_v41 = vld [vmem:[#allocation8 + $0x3a4] ss:$16 sps:$4 sm:$0xff]   ;;  %v3643_v57 = vpack.i.b16 %v3624_v26, %v3624_v26  ;;  %v7475_v26 = vld [vmem:[#allocation8 + $0x4a0] ss:$16 sps:$4 sm:$0xff]  }
 0x277   :  { %5302 = vmatpush1.bf16.msra.mxu0 %v7382_v40  ;;  %v6837_v40 = vcombine.high %v584_v33, %v588_v28 }
 0x278   :  { %5303 = vmatprep.subr.bf16.mxu0 %v7387_v47  ;;  %v592_v47 = vld [vmem:[#allocation5 + $0xd98] sm:$0xff] }
 0x279   :  { %3508 = vmatpush1.bf16.msra.mxu1 %v6764_v45  ;;  %v6836_v45 = vcombine.low %v584_v33, %v588_v28  ;;  %v6844_v58 = vcombine.low %v592_v47, %v596_v44  ;;  %v7436_v33 = vld [vmem:[#allocation8 + $0xa8] ss:$16 sps:$4 sm:$0xff]   ;;  %v7441_v28 = vld [vmem:[#allocation8 + $0xcc] ss:$16 sps:$4 sm:$0xff]  }
 0x27a   :  { %3509 = vmatprep.subr.bf16.mxu1 %v6773_v48  ;;  %v6845_v48 = vcombine.high %v592_v47, %v596_v44  ;;  %v7442_v47 = vld [vmem:[#allocation8 + $0xe8] ss:$16 sps:$4 sm:$0xff]   ;;  %v7450_v44 = vld [vmem:[#allocation8 + $0x10c] ss:$16 sps:$4 sm:$0xff]  }
 0x27b   :  { %5304 = vmatpush1.bf16.msra.mxu0 %v7385_v46  ;;  %v3650_v46 = vpack.i.b16 %v3626_v37, %v3626_v37  ;;  %v7439_v37 = vld [vmem:[#allocation8 + $0xc8] ss:$16 sps:$4 sm:$0xff]  }
 0x27c   :  { %5305 = vmatprep.subr.bf16.mxu0 %v7390_v59 }
 0x27d   :  { %3510 = vmatpush1.bf16.msra.mxu1 %v6772_v53 }
 0x27e   :  { %3511 = vmatprep.subr.bf16.mxu1 %v6781_v54 }
 0x27f   :  { %5306 = vmatpush1.bf16.msra.mxu0 %v7388_v51  ;;  %v3648_v51 = vrot.slane %v3643_v57, %v8319_v1  ;;  %v7487_v57 = vld [vmem:[#allocation8 + $0x4e0] ss:$16 sps:$4 sm:$0xff]  }
 0x280   :  { %5307 = vmatprep.subr.bf16.mxu0 %v7393_v55  ;;  %v3655_v55 = vrot.slane %v3650_v46, %v8319_v1  ;;  %v7448_v46 = vld [vmem:[#allocation8 + $0x108] ss:$16 sps:$4 sm:$0xff]  }
 0x281   :  { %3512 = vmatpush1.bf16.msra.mxu1 %v6780_v61 }
 0x282   :  { %3513 = vmatprep.subr.bf16.mxu1 %v6789_v63  ;;  %v6853_v63 = vcombine.high %v600_v56, %v604_v50 }
 0x283   :  { %5308 = vmatpush1.bf16.msra.mxu0 %v7391_v62  ;;  %v7415_v62 = vld [vmem:[#allocation8 + $0x3c0] ss:$16 sps:$4 sm:$0xff]  }
 0x284   :  { %5309 = vmatprep.subr.bf16.mxu0 %v7396_v0 }
 0x285   :  { %3514 = vmatpush1.bf16.msra.mxu1 %v6788_v34 }
 0x286   :  { %3526 = vmatprep.subr.bf16.mxu1 %v6797_v5  ;;  %v7418_v5 = vld [vmem:[#allocation8 + $0x3e0] ss:$16 sps:$4 sm:$0xff]  }
 0x287   :  { %5310 = vmatpush1.bf16.msra.mxu0 %v7394_v4  ;;  %v6852_v4 = vcombine.low %v600_v56, %v604_v50  ;;  %v7462_v56 = vld [vmem:[#allocation8 + $0x14c] ss:$16 sps:$4 sm:$0xff]   ;;  %v7499_v50 = vld [vmem:[#allocation8 + $0x520] ss:$16 sps:$4 sm:$0xff]  }
 0x288   :  { %5311 = vmatprep.subr.bf16.mxu0 %v7399_v6  ;;  %3516 = vmatmul.mubr.bf16.vlgmr.msra.gmra.mrb[8].mxu1 %v7840_v15  ;;  %v7423_v6 = vld [vmem:[#allocation8 + $0xc] ss:$16 sps:$4 sm:$0xff]  }
 0x289   :  { %3527 = vmatpush1.bf16.msra.mxu1 %v6796_v9  ;;  %3558 = vmatprep.mubr.bf16.mxu1 %v8095_v38  ;;  %v6820_v38 = vcombine.low %v568_v21, %v572_v19  ;;  %v7459_v21 = vld [vmem:[#allocation8 + $0x444] ss:$16 sps:$4 sm:$0xff]   ;;  %v7427_v19 = vld [vmem:[#allocation8 + $0x48] ss:$16 sps:$4 sm:$0xff]  }
 0x28a   :  { %3528 = vmatprep.subr.bf16.mxu1 %v6805_v36  ;;  %v7421_v36 = vld [vmem:[#allocation8 + $0x8] ss:$16 sps:$4 sm:$0xff]  }
 0x28b   :  { %5312 = vmatpush1.bf16.msra.mxu0 %v7397_v10 }
 0x28c   :  { %5313 = vmatprep.subr.bf16.mxu0 %v7402_v11  ;;  %v7426_v11 = vld [vmem:[#allocation8 + $0x2c] ss:$16 sps:$4 sm:$0xff]  }
 0x28d   :  { %3529 = vmatpush1.bf16.msra.mxu1 %v6804_v16  ;;  %v7453_v16 = vld [vmem:[#allocation8 + $0x424] ss:$16 sps:$4 sm:$0xff]  }
 0x28e   :  { %3530 = vmatprep.subr.bf16.mxu1 %v6813_v18  ;;  %v7429_v18 = vld [vmem:[#allocation8 + $0x4c] ss:$16 sps:$4 sm:$0xff]  }
 0x28f   :  { %5314 = vmatpush1.bf16.msra.mxu0 %v7400_v17  ;;  %v7424_v17 = vld [vmem:[#allocation8 + $0x28] ss:$16 sps:$4 sm:$0xff]  }
 0x290   :  { %5315 = vmatprep.subr.bf16.mxu0 %v7405_v20  ;;  %v7451_v20 = vld [vmem:[#allocation8 + $0x420] ss:$16 sps:$4 sm:$0xff]  }
 0x291   :  { %3531 = vmatpush1.bf16.msra.mxu1 %v6812_v22  ;;  %v7432_v22 = vld [vmem:[#allocation8 + $0x6c] ss:$16 sps:$4 sm:$0xff]  }
 0x292   :  { %3532 = vmatprep.subr.bf16.mxu1 %v6821_v39  ;;  %v7465_v39 = vld [vmem:[#allocation8 + $0x464] ss:$16 sps:$4 sm:$0xff]  }
 0x293   :  { %5316 = vmatpush1.bf16.msra.mxu0 %v7403_v24  ;;  %v7457_v24 = vld [vmem:[#allocation8 + $0x440] ss:$16 sps:$4 sm:$0xff]  }
 0x294   :  { %5317 = vmatprep.subr.bf16.mxu0 %v7408_v25  ;;  %v7430_v25 = vld [vmem:[#allocation8 + $0x68] ss:$16 sps:$4 sm:$0xff]  }
 0x295   :  { %3533 = vmatpush1.bf16.msra.mxu1 %v6820_v38  ;;  %v7433_v38 = vld [vmem:[#allocation8 + $0x88] ss:$16 sps:$4 sm:$0xff]  }
 0x296   :  { %3534 = vmatprep.subr.bf16.mxu1 %v6829_v31  ;;  %v7469_v31 = vld [vmem:[#allocation8 + $0x480] ss:$16 sps:$4 sm:$0xff]  }
 0x297   :  { %5318 = vmatpush1.bf16.msra.mxu0 %v7406_v30  ;;  %v7438_v30 = vld [vmem:[#allocation8 + $0xac] ss:$16 sps:$4 sm:$0xff]  }
 0x298   :  { %5319 = vmatprep.subr.bf16.mxu0 %v7411_v32  ;;  %v7477_v32 = vld [vmem:[#allocation8 + $0x4a4] ss:$16 sps:$4 sm:$0xff]  }
 0x299   :  { %3535 = vmatpush1.bf16.msra.mxu1 %v6828_v35  ;;  %v7483_v35 = vld [vmem:[#allocation8 + $0x4c4] ss:$16 sps:$4 sm:$0xff]  }
 0x29a   :  { %3536 = vmatprep.subr.bf16.mxu1 %v6837_v40  ;;  %v7481_v40 = vld [vmem:[#allocation8 + $0x4c0] ss:$16 sps:$4 sm:$0xff]  }
 0x29b   :  { %5320 = vmatpush1.bf16.msra.mxu0 %v7409_v12  ;;  %v3216_v59 = vpop.f32.mrb[4].mxu1  ;;  %v7444_v12 = vld [vmem:[#allocation8 + $0xec] ss:$16 sps:$4 sm:$0xff]  }
 0x29c   :  { %5321 = vmatprep.subr.bf16.mxu0 %v7414_v41  ;;  %v3218_v53 = vpop.f32.mrb[5].mxu1  ;;  %v7489_v41 = vld [vmem:[#allocation8 + $0x4e4] ss:$16 sps:$4 sm:$0xff]  }
 0x29d   :  { %v3220_v54 = vpop.f32.mrb[6].mxu1  ;;  %3537 = vmatpush1.bf16.msra.mxu1 %v6836_v45  ;;  %v7495_v45 = vld [vmem:[#allocation8 + $0x504] ss:$16 sps:$4 sm:$0xff]  }
 0x29e   :  { %v3571_v60 = vpack.c.bf16 %v3220_v54, %v3216_v59  ;;  %v3222_v61 = vpop.f32.mrb[7].mxu1  ;;  %3538 = vmatprep.subr.bf16.mxu1 %v6845_v48  ;;  %v7493_v48 = vld [vmem:[#allocation8 + $0x500] ss:$16 sps:$4 sm:$0xff]   ;;  %v7501_v59 = vld [vmem:[#allocation8 + $0x524] ss:$16 sps:$4 sm:$0xff]  }
 0x29f   :  { %5322 = vmatpush1.bf16.msra.mxu0 %v7412_v52  ;;  %v3572_v0 = vpack.c.bf16 %v3222_v61, %v3218_v53  ;;  %v7456_v52 = vld [vmem:[#allocation8 + $0x12c] ss:$16 sps:$4 sm:$0xff]   ;;  %v7507_v53 = vld [vmem:[#allocation8 + $0x544] ss:$16 sps:$4 sm:$0xff]  }
 0x2a0   :  { %5323 = vmatprep.subr.bf16.mxu0 %v7417_v49  ;;  %v3686_v3 = vadd.bf16 %v3648_v51, %v3571_v60  ;;  %v7454_v49 = vld [vmem:[#allocation8 + $0x128] ss:$16 sps:$4 sm:$0xff]   ;;  %v7468_v54 = vld [vmem:[#allocation8 + $0x16c] ss:$16 sps:$4 sm:$0xff]  }
 0x2a1   :  { %v3687_v34 = vadd.bf16 %v3655_v55, %v3572_v0  ;;  %3539 = vmatpush1.bf16.msra.mxu1 %v6844_v58  ;;  %v7460_v51 = vld [vmem:[#allocation8 + $0x148] ss:$16 sps:$4 sm:$0xff]   ;;  %v7505_v55 = vld [vmem:[#allocation8 + $0x540] ss:$16 sps:$4 sm:$0xff]   ;;  %v7513_v58 = vld [vmem:[#allocation8 + $0x564] ss:$16 sps:$4 sm:$0xff]  }
 0x2a2   :  { %3540 = vmatprep.subr.bf16.mxu1 %v6853_v63  ;;  %v3702_v9 = vmul.bf16 1045249613, %v3686_v3  ;;  %vm3694_vm3 = vcmp.gt.bf16.partialorder %v3686_v3, 0  ;;  %v7466_v60 = vld [vmem:[#allocation8 + $0x168] ss:$16 sps:$4 sm:$0xff]  }
 0x2a3   :  { %5324 = vmatpush1.bf16.msra.mxu0 %v7415_v62  ;;  %vm3695_vm2 = vcmp.gt.bf16.partialorder %v3687_v34, 0  ;;  %v3703_v7 = vmul.bf16 1045249613, %v3687_v34  ;;  %v7474_v61 = vld [vmem:[#allocation8 + $0x18c] ss:$16 sps:$4 sm:$0xff]  }
 0x2a4   :  { %5325 = vmatprep.subr.bf16.mxu0 %v7420_v2  ;;  %v8351_v15 = vsel %vm3694_vm3, %v3686_v3, %v3702_v9  ;;  %v7511_v62 = vld [vmem:[#allocation8 + $0x560] ss:$16 sps:$4 sm:$0xff]   ;;  %v7519_v63 = vld [vmem:[#allocation8 + $0x584] ss:$16 sps:$4 sm:$0xff]   ;;  %v7472_v0 = vld [vmem:[#allocation8 + $0x188] ss:$16 sps:$4 sm:$0xff]  }
 0x2a5   :  { %3541 = vmatpush1.bf16.msra.mxu1 %v6852_v4  ;;  %v8348_v10 = vsel %vm3695_vm2, %v3687_v34, %v3703_v7  ;;  %v7480_v2 = vld [vmem:[#allocation8 + $0x1ac] ss:$16 sps:$4 sm:$0xff]   ;;  %v7517_v3 = vld [vmem:[#allocation8 + $0x580] ss:$16 sps:$4 sm:$0xff]   ;;  %v7525_v34 = vld [vmem:[#allocation8 + $0x5a4] ss:$16 sps:$4 sm:$0xff]  }
 0x2a6   :  { %5327 = vmatprep.mubr.bf16.mxu0 %v8348_v10  ;;  %5424 = vmatprep.subr.bf16.mxu1 %v7423_v6  ;;  %v7478_v4 = vld [vmem:[#allocation8 + $0x1a8] ss:$16 sps:$4 sm:$0xff]   ;;  %v7523_v6 = vld [vmem:[#allocation8 + $0x5a0] ss:$16 sps:$4 sm:$0xff]   ;;  %v7532_v7 = vld [vmem:[#allocation8 + $0x5c4] ss:$16 sps:$4 sm:$0xff]  }
 0x2a7   :  { %5326 = vmatpush1.bf16.msra.mxu0 %v7418_v5  ;;  %v7486_v5 = vld [vmem:[#allocation8 + $0x1cc] ss:$16 sps:$4 sm:$0xff]  }
 0x2a8   :  { %5338 = vmatprep.subr.bf16.mxu0 %v7447_v8  ;;  %3559 = vmatmul.mubr.bf16.vlgmr.msra.gmra.mrb[8].mxu1 %v7841_v14  ;;  %v7484_v8 = vld [vmem:[#allocation8 + $0x1c8] ss:$16 sps:$4 sm:$0xff]   ;;  %v7492_v9 = vld [vmem:[#allocation8 + $0x1ec] ss:$16 sps:$4 sm:$0xff]  }
 0x2a9   :  { %5425 = vmatpush1.bf16.msra.mxu1 %v7421_v36  ;;  %5456 = vmatprep.mubr.bf16.mxu1 %v8331_v42  ;;  %v7463_v42 = vld [vmem:[#allocation8 + $0x460] ss:$16 sps:$4 sm:$0xff]   ;;  %v7498_v14 = vld [vmem:[#allocation8 + $0x20c] ss:$16 sps:$4 sm:$0xff]  }
 0x2aa   :  { %5328 = vmatmul.mubr.bf16.vlgmr.msra.gmra.mrb[8].mxu0 %v8351_v15  ;;  %5426 = vmatprep.subr.bf16.mxu1 %v7426_v11  ;;  %v7530_v36 = vld [vmem:[#allocation8 + $0x5c0] ss:$16 sps:$4 sm:$0xff]   ;;  %v7538_v11 = vld [vmem:[#allocation8 + $0x5e4] ss:$16 sps:$4 sm:$0xff]  }
 0x2ab   :  { %5339 = vmatpush1.bf16.msra.mxu0 %v7445_v13  ;;  %v7490_v13 = vld [vmem:[#allocation8 + $0x1e8] ss:$16 sps:$4 sm:$0xff]  }
 0x2ac   :  { %5340 = vmatprep.subr.bf16.mxu0 %v7453_v16  ;;  %v7536_v16 = vld [vmem:[#allocation8 + $0x5e0] ss:$16 sps:$4 sm:$0xff]  }
 0x2ad   :  { %5427 = vmatpush1.bf16.msra.mxu1 %v7424_v17  ;;  %v7592_v17 = vld [vmem:[#allocation8 + $0x604] ss:$16 sps:$4 sm:$0xff]  }
 0x2ae   :  { %5428 = vmatprep.subr.bf16.mxu1 %v7429_v18  ;;  %v7496_v18 = vld [vmem:[#allocation8 + $0x208] ss:$16 sps:$4 sm:$0xff]  }
 0x2af   :  { %5341 = vmatpush1.bf16.msra.mxu0 %v7451_v20  ;;  %v7504_v20 = vld [vmem:[#allocation8 + $0x22c] ss:$16 sps:$4 sm:$0xff]  }
 0x2b0   :  { %5342 = vmatprep.subr.bf16.mxu0 %v7459_v21  ;;  %v7502_v21 = vld [vmem:[#allocation8 + $0x228] ss:$16 sps:$4 sm:$0xff]  }
 0x2b1   :  { %5429 = vmatpush1.bf16.msra.mxu1 %v7427_v19  ;;  %v7510_v19 = vld [vmem:[#allocation8 + $0x24c] ss:$16 sps:$4 sm:$0xff]  }
 0x2b2   :  { %5430 = vmatprep.subr.bf16.mxu1 %v7432_v22  ;;  %v7842_v22 = vld [vmem:[#allocation7] sm:$0xff] }
 0x2b3   :  { %5343 = vmatpush1.bf16.msra.mxu0 %v7457_v24  ;;  %v3579_v24 = vcombine.high %v7842_v22, %v7842_v22  ;;  %v7634_v22 = vld [vmem:[#allocation8 + $0x6e4] ss:$16 sps:$4 sm:$0xff]  }
 0x2b4   :  { %5344 = vmatprep.subr.bf16.mxu0 %v7465_v39  ;;  %v7508_v39 = vld [vmem:[#allocation8 + $0x248] ss:$16 sps:$4 sm:$0xff]  }
 0x2b5   :  { %5431 = vmatpush1.bf16.msra.mxu1 %v7430_v25  ;;  %v7516_v25 = vld [vmem:[#allocation8 + $0x26c] ss:$16 sps:$4 sm:$0xff]  }
 0x2b6   :  { %5432 = vmatprep.subr.bf16.mxu1 %v7435_v43  ;;  %v3593_v43 = vrot.slane %v3579_v24, %v8307_v27  ;;  %v7563_v24 = vld [vmem:[#allocation8 + $0x3e8] ss:$16 sps:$4 sm:$0xff]  }
 0x2b7   :  { %5345 = vmatpush1.bf16.msra.mxu0 %v7463_v42  ;;  %v7514_v42 = vld [vmem:[#allocation8 + $0x268] ss:$16 sps:$4 sm:$0xff]  }
 0x2b8   :  { %5346 = vmatprep.subr.bf16.mxu0 %v7471_v29  ;;  %v7522_v29 = vld [vmem:[#allocation8 + $0x28c] ss:$16 sps:$4 sm:$0xff]  }
 0x2b9   :  { %5433 = vmatpush1.bf16.msra.mxu1 %v7433_v38  ;;  %v7520_v38 = vld [vmem:[#allocation8 + $0x288] ss:$16 sps:$4 sm:$0xff]  }
 0x2ba   :  { %5434 = vmatprep.subr.bf16.mxu1 %v7438_v30  ;;  %v7528_v30 = vld [vmem:[#allocation8 + $0x2ac] ss:$16 sps:$4 sm:$0xff]  }
 0x2bb   :  { %5347 = vmatpush1.bf16.msra.mxu0 %v7469_v31 }
 0x2bc   :  { %5348 = vmatprep.subr.bf16.mxu0 %v7477_v32  ;;  %v7526_v32 = vld [vmem:[#allocation8 + $0x2a8] ss:$16 sps:$4 sm:$0xff]  }
 0x2bd   :  { %5435 = vmatpush1.bf16.msra.mxu1 %v7436_v33 }
 0x2be   :  { %5436 = vmatprep.subr.bf16.mxu1 %v7441_v28 }
 0x2bf   :  { %5349 = vmatpush1.bf16.msra.mxu0 %v7475_v26  ;;  %v7535_v26 = vld [vmem:[#allocation8 + $0x2cc] ss:$16 sps:$4 sm:$0xff]  }
 0x2c0   :  { %5350 = vmatprep.subr.bf16.mxu0 %v7483_v35 }
 0x2c1   :  { %5437 = vmatpush1.bf16.msra.mxu1 %v7439_v37 }
 0x2c2   :  { %5438 = vmatprep.subr.bf16.mxu1 %v7444_v12 }
 0x2c3   :  { %5351 = vmatpush1.bf16.msra.mxu0 %v7481_v40  ;;  %v7533_v40 = vld [vmem:[#allocation8 + $0x2c8] ss:$16 sps:$4 sm:$0xff]  }
 0x2c4   :  { %5352 = vmatprep.subr.bf16.mxu0 %v7489_v41 }
 0x2c5   :  { %5439 = vmatpush1.bf16.msra.mxu1 %v7442_v47 }
 0x2c6   :  { %5440 = vmatprep.subr.bf16.mxu1 %v7450_v44  ;;  %v7541_v44 = vld [vmem:[#allocation8 + $0x2ec] ss:$16 sps:$4 sm:$0xff]  }
 0x2c7   :  { %5353 = vmatpush1.bf16.msra.mxu0 %v7487_v57 }
 0x2c8   :  { %5354 = vmatprep.subr.bf16.mxu0 %v7495_v45 }
 0x2c9   :  { %5441 = vmatpush1.bf16.msra.mxu1 %v7448_v46 }
 0x2ca   :  { %5442 = vmatprep.subr.bf16.mxu1 %v7456_v52 }
 0x2cb   :  { %5355 = vmatpush1.bf16.msra.mxu0 %v7493_v48  ;;  %v7539_v48 = vld [vmem:[#allocation8 + $0x2e8] ss:$16 sps:$4 sm:$0xff]  }
 0x2cc   :  { %5356 = vmatprep.subr.bf16.mxu0 %v7501_v59 }
 0x2cd   :  { %5443 = vmatpush1.bf16.msra.mxu1 %v7454_v49  ;;  %v7544_v49 = vld [vmem:[#allocation8 + $0x30c] ss:$16 sps:$4 sm:$0xff]  }
 0x2ce   :  { %5444 = vmatprep.subr.bf16.mxu1 %v7462_v56 }
 0x2cf   :  { %5357 = vmatpush1.bf16.msra.mxu0 %v7499_v50 }
 0x2d0   :  { %5358 = vmatprep.subr.bf16.mxu0 %v7507_v53  ;;  %v7542_v53 = vld [vmem:[#allocation8 + $0x308] ss:$16 sps:$4 sm:$0xff]  }
 0x2d1   :  { %5445 = vmatpush1.bf16.msra.mxu1 %v7460_v51  ;;  %v7590_v51 = vld [vmem:[#allocation8 + $0x600] ss:$16 sps:$4 sm:$0xff]  }
 0x2d2   :  { %5446 = vmatprep.subr.bf16.mxu1 %v7468_v54 }
 0x2d3   :  { %5359 = vmatpush1.bf16.msra.mxu0 %v7505_v55  ;;  %v7547_v55 = vld [vmem:[#allocation8 + $0x32c] ss:$16 sps:$4 sm:$0xff]  }
 0x2d4   :  { %5360 = vmatprep.subr.bf16.mxu0 %v7513_v58  ;;  %v7598_v58 = vld [vmem:[#allocation8 + $0x624] ss:$16 sps:$4 sm:$0xff]  }
 0x2d5   :  { %5447 = vmatpush1.bf16.msra.mxu1 %v7466_v60 }
 0x2d6   :  { %5448 = vmatprep.subr.bf16.mxu1 %v7474_v61  ;;  %v7545_v61 = vld [vmem:[#allocation8 + $0x328] ss:$16 sps:$4 sm:$0xff]  }
 0x2d7   :  { %5361 = vmatpush1.bf16.msra.mxu0 %v7511_v62  ;;  %v7596_v62 = vld [vmem:[#allocation8 + $0x620] ss:$16 sps:$4 sm:$0xff]  }
 0x2d8   :  { %5362 = vmatprep.subr.bf16.mxu0 %v7519_v63  ;;  %v7550_v63 = vld [vmem:[#allocation8 + $0x34c] ss:$16 sps:$4 sm:$0xff]  }
 0x2d9   :  { %5449 = vmatpush1.bf16.msra.mxu1 %v7472_v0  ;;  %v7604_v0 = vld [vmem:[#allocation8 + $0x644] ss:$16 sps:$4 sm:$0xff]  }
 0x2da   :  { %5450 = vmatprep.subr.bf16.mxu1 %v7480_v2  ;;  %v7548_v2 = vld [vmem:[#allocation8 + $0x348] ss:$16 sps:$4 sm:$0xff]  }
 0x2db   :  { %5363 = vmatpush1.bf16.msra.mxu0 %v7517_v3  ;;  %v7602_v3 = vld [vmem:[#allocation8 + $0x640] ss:$16 sps:$4 sm:$0xff]  }
 0x2dc   :  { %5364 = vmatprep.subr.bf16.mxu0 %v7525_v34  ;;  %v7553_v34 = vld [vmem:[#allocation8 + $0x36c] ss:$16 sps:$4 sm:$0xff]  }
 0x2dd   :  { %5451 = vmatpush1.bf16.msra.mxu1 %v7478_v4  ;;  %v7610_v4 = vld [vmem:[#allocation8 + $0x664] ss:$16 sps:$4 sm:$0xff]  }
 0x2de   :  { %5452 = vmatprep.subr.bf16.mxu1 %v7486_v5  ;;  %v7551_v5 = vld [vmem:[#allocation8 + $0x368] ss:$16 sps:$4 sm:$0xff]  }
 0x2df   :  { %5365 = vmatpush1.bf16.msra.mxu0 %v7523_v6  ;;  %v7608_v6 = vld [vmem:[#allocation8 + $0x660] ss:$16 sps:$4 sm:$0xff]  }
 0x2e0   :  { %5366 = vmatprep.subr.bf16.mxu0 %v7532_v7  ;;  %v7556_v7 = vld [vmem:[#allocation8 + $0x38c] ss:$16 sps:$4 sm:$0xff]  }
 0x2e1   :  { %5453 = vmatpush1.bf16.msra.mxu1 %v7484_v8  ;;  %v7616_v8 = vld [vmem:[#allocation8 + $0x684] ss:$16 sps:$4 sm:$0xff]  }
 0x2e2   :  { %5454 = vmatprep.subr.bf16.mxu1 %v7492_v9  ;;  %v7554_v9 = vld [vmem:[#allocation8 + $0x388] ss:$16 sps:$4 sm:$0xff]  }
 0x2e3   :  { %5367 = vmatpush1.bf16.msra.mxu0 %v7530_v36  ;;  %v7614_v36 = vld [vmem:[#allocation8 + $0x680] ss:$16 sps:$4 sm:$0xff]  }
 0x2e4   :  { %5368 = vmatprep.subr.bf16.mxu0 %v7538_v11  ;;  %v7559_v11 = vld [vmem:[#allocation8 + $0x3ac] ss:$16 sps:$4 sm:$0xff]  }
 0x2e5   :  { %5455 = vmatpush1.bf16.msra.mxu1 %v7490_v13  ;;  %v7622_v13 = vld [vmem:[#allocation8 + $0x6a4] ss:$16 sps:$4 sm:$0xff]  }
 0x2e6   :  { %5467 = vmatprep.subr.bf16.mxu1 %v7498_v14  ;;  %v7557_v14 = vld [vmem:[#allocation8 + $0x3a8] ss:$16 sps:$4 sm:$0xff]  }
 0x2e7   :  { %5369 = vmatpush1.bf16.msra.mxu0 %v7536_v16  ;;  %v7620_v16 = vld [vmem:[#allocation8 + $0x6a0] ss:$16 sps:$4 sm:$0xff]  }
 0x2e8   :  { %5457 = vmatmul.mubr.bf16.vlgmr.msra.gmra.mrb[12].mxu1 %v8338_v23  ;;  %5381 = vmatprep.subr.bf16.mxu0 %v7592_v17  ;;  %v3595_v23 = vcombine.high %v3593_v43, %v3593_v43  ;;  %v7562_v17 = vld [vmem:[#allocation8 + $0x3cc] ss:$16 sps:$4 sm:$0xff]  }
 0x2e9   :  { %5468 = vmatpush1.bf16.msra.mxu1 %v7496_v18  ;;  %5499 = vmatprep.mubr.bf16.mxu1 %v8348_v10  ;;  %v8359_v10 = vrot.slane %v3593_v43, %v8307_v27  ;;  %v7628_v18 = vld [vmem:[#allocation8 + $0x6c4] ss:$16 sps:$4 sm:$0xff]  }
 0x2ea   :  { %5469 = vmatprep.subr.bf16.mxu1 %v7504_v20  ;;  %v8362_v31 = vrot.slane %v3595_v23, %v8307_v27  ;;  %v7560_v20 = vld [vmem:[#allocation8 + $0x3c8] ss:$16 sps:$4 sm:$0xff]   ;;  %v7640_v43 = vld [vmem:[#allocation8 + $0x704] ss:$16 sps:$4 sm:$0xff]   ;;  %v7638_v23 = vld [vmem:[#allocation8 + $0x700] ss:$16 sps:$4 sm:$0xff]  }
 0x2eb   :  { %v3657_v33 = vpack.i.b16 %v8359_v10, %v8359_v10 }
 0x2ec   :  { %v3664_v28 = vpack.i.b16 %v8362_v31, %v8362_v31 }
 0x2ed   :  { %5470 = vmatpush1.bf16.msra.mxu1 %v7502_v21  ;;  %v3662_v12 = vrot.slane %v3657_v33, %v8319_v1  ;;  %v7626_v21 = vld [vmem:[#allocation8 + $0x6c0] ss:$16 sps:$4 sm:$0xff]  }
 0x2ee   :  { %5471 = vmatprep.subr.bf16.mxu1 %v7510_v19  ;;  %v3669_v47 = vrot.slane %v3664_v28, %v8319_v1  ;;  %v7565_v19 = vld [vmem:[#allocation8 + $0x3ec] ss:$16 sps:$4 sm:$0xff]   ;;  %v7644_v33 = vld [vmem:[#allocation8 + $0x720] ss:$16 sps:$4 sm:$0xff]   ;;  %v7652_v28 = vld [vmem:[#allocation8 + $0x744] ss:$16 sps:$4 sm:$0xff]  }
 0x2f1   :  { %5472 = vmatpush1.bf16.msra.mxu1 %v7508_v39  ;;  %v7632_v39 = vld [vmem:[#allocation8 + $0x6e0] ss:$16 sps:$4 sm:$0xff]  }
 0x2f2   :  { %5473 = vmatprep.subr.bf16.mxu1 %v7516_v25  ;;  %v7568_v25 = vld [vmem:[#allocation8 + $0x40c] ss:$16 sps:$4 sm:$0xff]  }
 0x2f5   :  { %5474 = vmatpush1.bf16.msra.mxu1 %v7514_v42  ;;  %v7566_v42 = vld [vmem:[#allocation8 + $0x408] ss:$16 sps:$4 sm:$0xff]  }
 0x2f6   :  { %5475 = vmatprep.subr.bf16.mxu1 %v7522_v29  ;;  %v7571_v29 = vld [vmem:[#allocation8 + $0x42c] ss:$16 sps:$4 sm:$0xff]  }
 0x2f9   :  { %5476 = vmatpush1.bf16.msra.mxu1 %v7520_v38  ;;  %v7646_v38 = vld [vmem:[#allocation8 + $0x724] ss:$16 sps:$4 sm:$0xff]  }
 0x2fa   :  { %5477 = vmatprep.subr.bf16.mxu1 %v7528_v30  ;;  %v7569_v30 = vld [vmem:[#allocation8 + $0x428] ss:$16 sps:$4 sm:$0xff]  }
 0x2fd   :  { %v3388_v35 = vpop.f32.mrb[4].mxu0  ;;  %5478 = vmatpush1.bf16.msra.mxu1 %v7526_v32  ;;  %v7574_v32 = vld [vmem:[#allocation8 + $0x44c] ss:$16 sps:$4 sm:$0xff]  }
 0x2fe   :  { %v3390_v37 = vpop.f32.mrb[5].mxu0  ;;  %5479 = vmatprep.subr.bf16.mxu1 %v7535_v26  ;;  %v7572_v26 = vld [vmem:[#allocation8 + $0x448] ss:$16 sps:$4 sm:$0xff]  }
 0x2ff   :  { %v3392_v41 = vpop.f32.mrb[6].mxu0 }
 0x300   :  { %v3573_v57 = vpack.c.bf16 %v3392_v41, %v3388_v35  ;;  %v3394_v45 = vpop.f32.mrb[7].mxu0  ;;  %v7577_v35 = vld [vmem:[#allocation8 + $0x46c] ss:$16 sps:$4 sm:$0xff]   ;;  %v7656_v41 = vld [vmem:[#allocation8 + $0x760] ss:$16 sps:$4 sm:$0xff]  }
 0x301   :  { %v3574_v46 = vpack.c.bf16 %v3394_v45, %v3390_v37  ;;  %5480 = vmatpush1.bf16.msra.mxu1 %v7533_v40  ;;  %v7650_v37 = vld [vmem:[#allocation8 + $0x740] ss:$16 sps:$4 sm:$0xff]   ;;  %v7580_v40 = vld [vmem:[#allocation8 + $0x48c] ss:$16 sps:$4 sm:$0xff]  }
 0x302   :  { %v3688_v52 = vadd.bf16 %v3662_v12, %v3573_v57  ;;  %5481 = vmatprep.subr.bf16.mxu1 %v7541_v44  ;;  %v7658_v12 = vld [vmem:[#allocation8 + $0x764] ss:$16 sps:$4 sm:$0xff]   ;;  %v7578_v44 = vld [vmem:[#allocation8 + $0x488] ss:$16 sps:$4 sm:$0xff]   ;;  %v7583_v57 = vld [vmem:[#allocation8 + $0x4ac] ss:$16 sps:$4 sm:$0xff]  }
 0x303   :  { %v3689_v59 = vadd.bf16 %v3669_v47, %v3574_v46  ;;  %v7664_v47 = vld [vmem:[#allocation8 + $0x784] ss:$16 sps:$4 sm:$0xff]   ;;  %v7662_v45 = vld [vmem:[#allocation8 + $0x780] ss:$16 sps:$4 sm:$0xff]  }
 0x304   :  { %v3704_v56 = vmul.bf16 1045249613, %v3688_v52  ;;  %vm3696_vm5 = vcmp.gt.bf16.partialorder %v3688_v52, 0  ;;  %v7670_v46 = vld [vmem:[#allocation8 + $0x7a4] ss:$16 sps:$4 sm:$0xff]  }
 0x305   :  { %vm3697_vm4 = vcmp.gt.bf16.partialorder %v3689_v59, 0  ;;  %v3705_v50 = vmul.bf16 1045249613, %v3689_v59  ;;  %5482 = vmatpush1.bf16.msra.mxu1 %v7539_v48  ;;  %v7586_v48 = vld [vmem:[#allocation8 + $0x4cc] ss:$16 sps:$4 sm:$0xff]  }
 0x306   :  { %5483 = vmatprep.subr.bf16.mxu1 %v7544_v49  ;;  %v8373_v60 = vsel %vm3696_vm5, %v3688_v52, %v3704_v56  ;;  %v7581_v52 = vld [vmem:[#allocation8 + $0x4a8] ss:$16 sps:$4 sm:$0xff]   ;;  %v7676_v49 = vld [vmem:[#allocation8 + $0x7c4] ss:$16 sps:$4 sm:$0xff]  }
 0x307   :  { %v8370_v54 = vsel %vm3697_vm4, %v3689_v59, %v3705_v50  ;;  %v7668_v59 = vld [vmem:[#allocation8 + $0x7a0] ss:$16 sps:$4 sm:$0xff]   ;;  %v7584_v56 = vld [vmem:[#allocation8 + $0x4c8] ss:$16 sps:$4 sm:$0xff]   ;;  %v7589_v50 = vld [vmem:[#allocation8 + $0x4ec] ss:$16 sps:$4 sm:$0xff]  }
 0x308   :  { %5370 = vmatprep.mubr.bf16.mxu0 %v8370_v54 }
 0x309   :  { %5371 = vmatmul.mubr.bf16.vlgmr.msra.gmra.mrb[8].mxu0 %v8373_v60  ;;  %5484 = vmatpush1.bf16.msra.mxu1 %v7542_v53  ;;  %v7674_v53 = vld [vmem:[#allocation8 + $0x7c0] ss:$16 sps:$4 sm:$0xff]  }
 0x30a   :  { %5382 = vmatpush1.bf16.msra.mxu0 %v7590_v51  ;;  %5485 = vmatprep.subr.bf16.mxu1 %v7547_v55  ;;  %v7682_v51 = vld [vmem:[#allocation8 + $0x7e4] ss:$16 sps:$4 sm:$0xff]   ;;  %v7595_v55 = vld [vmem:[#allocation8 + $0x50c] ss:$16 sps:$4 sm:$0xff]  }
 0x30b   :  { %5383 = vmatprep.subr.bf16.mxu0 %v7598_v58  ;;  %v7680_v58 = vld [vmem:[#allocation8 + $0x7e0] ss:$16 sps:$4 sm:$0xff]  }
 0x30d   :  { %5486 = vmatpush1.bf16.msra.mxu1 %v7545_v61  ;;  %v7712_v61 = vld [vmem:[#allocation11 + $0x4] ss:$8 sps:$4 sm:$0xff]  }
 0x30e   :  { %5384 = vmatpush1.bf16.msra.mxu0 %v7596_v62  ;;  %5487 = vmatprep.subr.bf16.mxu1 %v7550_v63  ;;  %v7593_v62 = vld [vmem:[#allocation8 + $0x508] ss:$16 sps:$4 sm:$0xff]   ;;  %v7601_v63 = vld [vmem:[#allocation8 + $0x52c] ss:$16 sps:$4 sm:$0xff]  }
 0x30f   :  { %5385 = vmatprep.subr.bf16.mxu0 %v7604_v0  ;;  %v7599_v0 = vld [vmem:[#allocation8 + $0x528] ss:$16 sps:$4 sm:$0xff]  }
 0x311   :  { %5488 = vmatpush1.bf16.msra.mxu1 %v7548_v2  ;;  %v7607_v2 = vld [vmem:[#allocation8 + $0x54c] ss:$16 sps:$4 sm:$0xff]  }
 0x312   :  { %5386 = vmatpush1.bf16.msra.mxu0 %v7602_v3  ;;  %5489 = vmatprep.subr.bf16.mxu1 %v7553_v34  ;;  %v7605_v3 = vld [vmem:[#allocation8 + $0x548] ss:$16 sps:$4 sm:$0xff]   ;;  %v7613_v34 = vld [vmem:[#allocation8 + $0x56c] ss:$16 sps:$4 sm:$0xff]  }
 0x313   :  { %5387 = vmatprep.subr.bf16.mxu0 %v7610_v4  ;;  %v7611_v4 = vld [vmem:[#allocation8 + $0x568] ss:$16 sps:$4 sm:$0xff]  }
 0x315   :  { %5490 = vmatpush1.bf16.msra.mxu1 %v7551_v5  ;;  %v7619_v5 = vld [vmem:[#allocation8 + $0x58c] ss:$16 sps:$4 sm:$0xff]  }
 0x316   :  { %5388 = vmatpush1.bf16.msra.mxu0 %v7608_v6  ;;  %5491 = vmatprep.subr.bf16.mxu1 %v7556_v7  ;;  %v7617_v6 = vld [vmem:[#allocation8 + $0x588] ss:$16 sps:$4 sm:$0xff]   ;;  %v7625_v7 = vld [vmem:[#allocation8 + $0x5ac] ss:$16 sps:$4 sm:$0xff]  }
 0x317   :  { %5389 = vmatprep.subr.bf16.mxu0 %v7616_v8  ;;  %v7623_v8 = vld [vmem:[#allocation8 + $0x5a8] ss:$16 sps:$4 sm:$0xff]  }
 0x319   :  { %5492 = vmatpush1.bf16.msra.mxu1 %v7554_v9  ;;  %v7631_v9 = vld [vmem:[#allocation8 + $0x5cc] ss:$16 sps:$4 sm:$0xff]  }
 0x31a   :  { %5390 = vmatpush1.bf16.msra.mxu0 %v7614_v36  ;;  %5493 = vmatprep.subr.bf16.mxu1 %v7559_v11  ;;  %v7629_v36 = vld [vmem:[#allocation8 + $0x5c8] ss:$16 sps:$4 sm:$0xff]   ;;  %v7637_v11 = vld [vmem:[#allocation8 + $0x5ec] ss:$16 sps:$4 sm:$0xff]  }
 0x31b   :  { %5391 = vmatprep.subr.bf16.mxu0 %v7622_v13  ;;  %v7635_v13 = vld [vmem:[#allocation8 + $0x5e8] ss:$16 sps:$4 sm:$0xff]  }
 0x31d   :  { %5494 = vmatpush1.bf16.msra.mxu1 %v7557_v14  ;;  %v7643_v14 = vld [vmem:[#allocation8 + $0x60c] ss:$16 sps:$4 sm:$0xff]  }
 0x31e   :  { %5392 = vmatpush1.bf16.msra.mxu0 %v7620_v16  ;;  %5495 = vmatprep.subr.bf16.mxu1 %v7562_v17  ;;  %v7641_v16 = vld [vmem:[#allocation8 + $0x608] ss:$16 sps:$4 sm:$0xff]   ;;  %v7649_v17 = vld [vmem:[#allocation8 + $0x62c] ss:$16 sps:$4 sm:$0xff]  }
 0x31f   :  { %5393 = vmatprep.subr.bf16.mxu0 %v7628_v18  ;;  %v7647_v18 = vld [vmem:[#allocation8 + $0x628] ss:$16 sps:$4 sm:$0xff]  }
 0x321   :  { %5496 = vmatpush1.bf16.msra.mxu1 %v7560_v20  ;;  %v7655_v20 = vld [vmem:[#allocation8 + $0x64c] ss:$16 sps:$4 sm:$0xff]  }
 0x322   :  { %5394 = vmatpush1.bf16.msra.mxu0 %v7626_v21  ;;  %5497 = vmatprep.subr.bf16.mxu1 %v7565_v19  ;;  %v7653_v21 = vld [vmem:[#allocation8 + $0x648] ss:$16 sps:$4 sm:$0xff]   ;;  %v7661_v19 = vld [vmem:[#allocation8 + $0x66c] ss:$16 sps:$4 sm:$0xff]  }
 0x323   :  { %5395 = vmatprep.subr.bf16.mxu0 %v7634_v22  ;;  %v7659_v22 = vld [vmem:[#allocation8 + $0x668] ss:$16 sps:$4 sm:$0xff]  }
 0x325   :  { %5498 = vmatpush1.bf16.msra.mxu1 %v7563_v24  ;;  %v7667_v24 = vld [vmem:[#allocation8 + $0x68c] ss:$16 sps:$4 sm:$0xff]  }
 0x326   :  { %5396 = vmatpush1.bf16.msra.mxu0 %v7632_v39  ;;  %5510 = vmatprep.subr.bf16.mxu1 %v7568_v25  ;;  %v3625_v39 = vcombine.high %v8359_v10, %v8359_v10  ;;  %v7665_v25 = vld [vmem:[#allocation8 + $0x688] ss:$16 sps:$4 sm:$0xff]  }
 0x327   :  { %5397 = vmatprep.subr.bf16.mxu0 %v7640_v43  ;;  %v7673_v43 = vld [vmem:[#allocation8 + $0x6ac] ss:$16 sps:$4 sm:$0xff]  }
 0x328   :  { %5500 = vmatmul.mubr.bf16.vlgmr.msra.gmra.mrb[12].mxu1 %v8351_v15  ;;  %v7575_v15 = vld [vmem:[#allocation8 + $0x468] ss:$16 sps:$4 sm:$0xff]  }
 0x329   :  { %5511 = vmatpush1.bf16.msra.mxu1 %v7566_v42  ;;  %5542 = vmatprep.mubr.bf16.mxu1 %v8370_v54  ;;  %v7587_v54 = vld [vmem:[#allocation8 + $0x4e8] ss:$16 sps:$4 sm:$0xff]   ;;  %v3671_v42 = vpack.i.b16 %v3625_v39, %v3625_v39 }
 0x32a   :  { %5512 = vmatprep.subr.bf16.mxu1 %v7571_v29  ;;  %5398 = vmatpush1.bf16.msra.mxu0 %v7638_v23  ;;  %v7671_v29 = vld [vmem:[#allocation8 + $0x6a8] ss:$16 sps:$4 sm:$0xff]  }
 0x32b   :  { %5399 = vmatprep.subr.bf16.mxu0 %v7646_v38  ;;  %v7679_v38 = vld [vmem:[#allocation8 + $0x6cc] ss:$16 sps:$4 sm:$0xff]   ;;  %v7745_v39 = vld [vmem:[#allocation11 + $0xb4] ss:$8 sps:$4 sm:$0xff]  }
 0x32d   :  { %5513 = vmatpush1.bf16.msra.mxu1 %v7569_v30 }
 0x32e   :  { %5514 = vmatprep.subr.bf16.mxu1 %v7574_v32  ;;  %5400 = vmatpush1.bf16.msra.mxu0 %v7644_v33  ;;  %v3676_v33 = vrot.slane %v3671_v42, %v8319_v1  ;;  %v7751_v42 = vld [vmem:[#allocation11 + $0xd4] ss:$8 sps:$4 sm:$0xff]  }
 0x32f   :  { %5401 = vmatprep.subr.bf16.mxu0 %v7652_v28 }
 0x331   :  { %5515 = vmatpush1.bf16.msra.mxu1 %v7572_v26  ;;  %v7677_v26 = vld [vmem:[#allocation8 + $0x6c8] ss:$16 sps:$4 sm:$0xff]  }
 0x332   :  { %5516 = vmatprep.subr.bf16.mxu1 %v7577_v35  ;;  %5402 = vmatpush1.bf16.msra.mxu0 %v7650_v37 }
 0x333   :  { %5403 = vmatprep.subr.bf16.mxu0 %v7658_v12 }
 0x335   :  { %5517 = vmatpush1.bf16.msra.mxu1 %v7575_v15 }
 0x336   :  { %5518 = vmatprep.subr.bf16.mxu1 %v7580_v40  ;;  %5404 = vmatpush1.bf16.msra.mxu0 %v7656_v41  ;;  %v7683_v41 = vld [vmem:[#allocation8 + $0x6e8] ss:$16 sps:$4 sm:$0xff]  }
 0x337   :  { %5405 = vmatprep.subr.bf16.mxu0 %v7664_v47 }
 0x339   :  { %5519 = vmatpush1.bf16.msra.mxu1 %v7578_v44 }
 0x33a   :  { %5520 = vmatprep.subr.bf16.mxu1 %v7583_v57  ;;  %5406 = vmatpush1.bf16.msra.mxu0 %v7662_v45  ;;  %v7688_v57 = vld [vmem:[#allocation8 + $0x70c] ss:$16 sps:$4 sm:$0xff]  }
 0x33b   :  { %5407 = vmatprep.subr.bf16.mxu0 %v7670_v46  ;;  %v7710_v45 = vld [vmem:[#allocation11] ss:$8 sps:$4 sm:$0xff]  }
 0x33d   :  { %5521 = vmatpush1.bf16.msra.mxu1 %v7581_v52  ;;  %v7686_v52 = vld [vmem:[#allocation8 + $0x708] ss:$16 sps:$4 sm:$0xff]  }
 0x33e   :  { %5522 = vmatprep.subr.bf16.mxu1 %v7586_v48  ;;  %5408 = vmatpush1.bf16.msra.mxu0 %v7668_v59  ;;  %v7715_v48 = vld [vmem:[#allocation11 + $0x14] ss:$8 sps:$4 sm:$0xff]  }
 0x33f   :  { %5409 = vmatprep.subr.bf16.mxu0 %v7676_v49  ;;  %v7691_v49 = vld [vmem:[#allocation8 + $0x72c] ss:$16 sps:$4 sm:$0xff]  }
 0x341   :  { %5523 = vmatpush1.bf16.msra.mxu1 %v7584_v56  ;;  %v7713_v56 = vld [vmem:[#allocation11 + $0x10] ss:$8 sps:$4 sm:$0xff]  }
 0x342   :  { %5524 = vmatprep.subr.bf16.mxu1 %v7589_v50  ;;  %5410 = vmatpush1.bf16.msra.mxu0 %v7674_v53  ;;  %v7689_v50 = vld [vmem:[#allocation8 + $0x728] ss:$16 sps:$4 sm:$0xff]  }
 0x343   :  { %5411 = vmatprep.subr.bf16.mxu0 %v7682_v51  ;;  %v7718_v53 = vld [vmem:[#allocation11 + $0x24] ss:$8 sps:$4 sm:$0xff]   ;;  %v7694_v51 = vld [vmem:[#allocation8 + $0x74c] ss:$16 sps:$4 sm:$0xff]  }
 0x345   :  { %5525 = vmatpush1.bf16.msra.mxu1 %v7587_v54  ;;  %v7716_v54 = vld [vmem:[#allocation11 + $0x20] ss:$8 sps:$4 sm:$0xff]  }
 0x346   :  { %5526 = vmatprep.subr.bf16.mxu1 %v7595_v55  ;;  %5412 = vmatpush1.bf16.msra.mxu0 %v7680_v58  ;;  %v7692_v55 = vld [vmem:[#allocation8 + $0x748] ss:$16 sps:$4 sm:$0xff]  }
 0x347   :  { %6054 = vmatprep.subr.bf16.mxu0 %v7712_v61  ;;  %v7721_v58 = vld [vmem:[#allocation11 + $0x34] ss:$8 sps:$4 sm:$0xff]   ;;  %v7697_v61 = vld [vmem:[#allocation8 + $0x76c] ss:$16 sps:$4 sm:$0xff]  }
 0x349   :  { %5527 = vmatpush1.bf16.msra.mxu1 %v7593_v62  ;;  %v7719_v62 = vld [vmem:[#allocation11 + $0x30] ss:$8 sps:$4 sm:$0xff]  }
 0x34a   :  { %5528 = vmatprep.subr.bf16.mxu1 %v7601_v63  ;;  %v7695_v63 = vld [vmem:[#allocation8 + $0x768] ss:$16 sps:$4 sm:$0xff]  }
 0x34d   :  { %5529 = vmatpush1.bf16.msra.mxu1 %v7599_v0  ;;  %v7724_v0 = vld [vmem:[#allocation11 + $0x44] ss:$8 sps:$4 sm:$0xff]  }
 0x34e   :  { %5530 = vmatprep.subr.bf16.mxu1 %v7607_v2  ;;  %v7700_v2 = vld [vmem:[#allocation8 + $0x78c] ss:$16 sps:$4 sm:$0xff]  }
 0x351   :  { %5531 = vmatpush1.bf16.msra.mxu1 %v7605_v3  ;;  %v7722_v3 = vld [vmem:[#allocation11 + $0x40] ss:$8 sps:$4 sm:$0xff]  }
 0x352   :  { %5532 = vmatprep.subr.bf16.mxu1 %v7613_v34  ;;  %v7698_v34 = vld [vmem:[#allocation8 + $0x788] ss:$16 sps:$4 sm:$0xff]  }
 0x355   :  { %5533 = vmatpush1.bf16.msra.mxu1 %v7611_v4  ;;  %v7727_v4 = vld [vmem:[#allocation11 + $0x54] ss:$8 sps:$4 sm:$0xff]  }
 0x356   :  { %5534 = vmatprep.subr.bf16.mxu1 %v7619_v5  ;;  %v7703_v5 = vld [vmem:[#allocation8 + $0x7ac] ss:$16 sps:$4 sm:$0xff]  }
 0x359   :  { %5535 = vmatpush1.bf16.msra.mxu1 %v7617_v6  ;;  %v7725_v6 = vld [vmem:[#allocation11 + $0x50] ss:$8 sps:$4 sm:$0xff]  }
 0x35a   :  { %5536 = vmatprep.subr.bf16.mxu1 %v7625_v7  ;;  %v7701_v7 = vld [vmem:[#allocation8 + $0x7a8] ss:$16 sps:$4 sm:$0xff]  }
 0x35d   :  { %5537 = vmatpush1.bf16.msra.mxu1 %v7623_v8  ;;  %v7730_v8 = vld [vmem:[#allocation11 + $0x64] ss:$8 sps:$4 sm:$0xff]  }
 0x35e   :  { %5538 = vmatprep.subr.bf16.mxu1 %v7631_v9  ;;  %v7706_v9 = vld [vmem:[#allocation8 + $0x7cc] ss:$16 sps:$4 sm:$0xff]  }
 0x361   :  { %5539 = vmatpush1.bf16.msra.mxu1 %v7629_v36  ;;  %v7728_v36 = vld [vmem:[#allocation11 + $0x60] ss:$8 sps:$4 sm:$0xff]  }
 0x362   :  { %5540 = vmatprep.subr.bf16.mxu1 %v7637_v11  ;;  %v7704_v11 = vld [vmem:[#allocation8 + $0x7c8] ss:$16 sps:$4 sm:$0xff]  }
 0x365   :  { %5541 = vmatpush1.bf16.msra.mxu1 %v7635_v13  ;;  %v7733_v13 = vld [vmem:[#allocation11 + $0x74] ss:$8 sps:$4 sm:$0xff]  }
 0x366   :  { %5553 = vmatprep.subr.bf16.mxu1 %v7643_v14  ;;  %v7709_v14 = vld [vmem:[#allocation8 + $0x7ec] ss:$16 sps:$4 sm:$0xff]  }
 0x368   :  { %5543 = vmatmul.mubr.bf16.vlgmr.msra.gmra.mrb[12].mxu1 %v8373_v60  ;;  %v3627_v60 = vcombine.high %v8362_v31, %v8362_v31  ;;  %v7685_v31 = vld [vmem:[#allocation8 + $0x6ec] ss:$16 sps:$4 sm:$0xff]  }
 0x369   :  { %5554 = vmatpush1.bf16.msra.mxu1 %v7641_v16  ;;  %v7731_v16 = vld [vmem:[#allocation11 + $0x70] ss:$8 sps:$4 sm:$0xff]  }
 0x36a   :  { %5555 = vmatprep.subr.bf16.mxu1 %v7649_v17  ;;  %v3678_v23 = vpack.i.b16 %v3627_v60, %v3627_v60  ;;  %v7707_v17 = vld [vmem:[#allocation8 + $0x7e8] ss:$16 sps:$4 sm:$0xff]  }
 0x36b   :  { %v7748_v60 = vld [vmem:[#allocation11 + $0xc4] ss:$8 sps:$4 sm:$0xff]  }
 0x36c   :  { %v3683_v10 = vrot.slane %v3678_v23, %v8319_v1  ;;  %v7754_v23 = vld [vmem:[#allocation11 + $0xe4] ss:$8 sps:$4 sm:$0xff]  }
 0x36d   :  { %5556 = vmatpush1.bf16.msra.mxu1 %v7647_v18  ;;  %v7736_v18 = vld [vmem:[#allocation11 + $0x84] ss:$8 sps:$4 sm:$0xff]  }
 0x36e   :  { %5557 = vmatprep.subr.bf16.mxu1 %v7655_v20  ;;  %v7734_v20 = vld [vmem:[#allocation11 + $0x80] ss:$8 sps:$4 sm:$0xff]  }
 0x371   :  { %5558 = vmatpush1.bf16.msra.mxu1 %v7653_v21  ;;  %v7739_v21 = vld [vmem:[#allocation11 + $0x94] ss:$8 sps:$4 sm:$0xff]  }
 0x372   :  { %5559 = vmatprep.subr.bf16.mxu1 %v7661_v19  ;;  %v7737_v19 = vld [vmem:[#allocation11 + $0x90] ss:$8 sps:$4 sm:$0xff]  }
 0x375   :  { %5560 = vmatpush1.bf16.msra.mxu1 %v7659_v22  ;;  %v7742_v22 = vld [vmem:[#allocation11 + $0xa4] ss:$8 sps:$4 sm:$0xff]  }
 0x376   :  { %5561 = vmatprep.subr.bf16.mxu1 %v7667_v24  ;;  %v7740_v24 = vld [vmem:[#allocation11 + $0xa0] ss:$8 sps:$4 sm:$0xff]  }
 0x379   :  { %5562 = vmatpush1.bf16.msra.mxu1 %v7665_v25  ;;  %v7743_v25 = vld [vmem:[#allocation11 + $0xb0] ss:$8 sps:$4 sm:$0xff]  }
 0x37a   :  { %5563 = vmatprep.subr.bf16.mxu1 %v7673_v43  ;;  %v7746_v43 = vld [vmem:[#allocation11 + $0xc0] ss:$8 sps:$4 sm:$0xff]  }
 0x37b   :  { %v3560_v30 = vpop.f32.mrb[8].mxu1 }
 0x37c   :  { %v3562_v32 = vpop.f32.mrb[9].mxu1 }
 0x37d   :  { %v3564_v28 = vpop.f32.mrb[10].mxu1  ;;  %5564 = vmatpush1.bf16.msra.mxu1 %v7671_v29  ;;  %v7749_v29 = vld [vmem:[#allocation11 + $0xd0] ss:$8 sps:$4 sm:$0xff]  }
 0x37e   :  { %v3575_v35 = vpack.c.bf16 %v3564_v28, %v3560_v30  ;;  %v3566_v37 = vpop.f32.mrb[11].mxu1  ;;  %5565 = vmatprep.subr.bf16.mxu1 %v7679_v38  ;;  %v7752_v38 = vld [vmem:[#allocation11 + $0xe0] ss:$8 sps:$4 sm:$0xff]   ;;  %v7757_v30 = vld [vmem:[#allocation11 + $0xf4] ss:$8 sps:$4 sm:$0xff]  }
 0x37f   :  { %v3576_v12 = vpack.c.bf16 %v3566_v37, %v3562_v32  ;;  %v7755_v32 = vld [vmem:[#allocation11 + $0xf0] ss:$8 sps:$4 sm:$0xff]   ;;  %v7806_v28 = vld [vmem:[#allocation14 + $0x40] sm:$0xff]  }
 0x380   :  { %v3690_v15 = vadd.bf16 %v3676_v33, %v3575_v35  ;;  %v7760_v33 = vld [vmem:[#allocation11 + $0x104] ss:$8 sps:$4 sm:$0xff]   ;;  %v7810_v37 = vld [vmem:[#allocation14 + $0x50] sm:$0xff]  }
 0x381   :  { %v3691_v40 = vadd.bf16 %v3683_v10, %v3576_v12  ;;  %5566 = vmatpush1.bf16.msra.mxu1 %v7677_v26  ;;  %v7807_v10 = vld [vmem:[#allocation14] sm:$0xff]   ;;  %v7808_v26 = vld [vmem:[#allocation14 + $0x48] sm:$0xff]   ;;  %v7812_v12 = vld [vmem:[#allocation14 + $0x58] sm:$0xff]  }
 0x382   :  { %v3706_v47 = vmul.bf16 1045249613, %v3690_v15  ;;  %5567 = vmatprep.subr.bf16.mxu1 %v7685_v31  ;;  %vm3698_vm7 = vcmp.gt.bf16.partialorder %v3690_v15, 0  ;;  %v7809_v35 = vld [vmem:[#allocation14 + $0x8] sm:$0xff]   ;;  %v7811_v31 = vld [vmem:[#allocation14 + $0x10] sm:$0xff]  }
 0x383   :  { %vm3699_vm6 = vcmp.gt.bf16.partialorder %v3691_v40, 0  ;;  %v3707_v44 = vmul.bf16 1045249613, %v3691_v40 }
 0x384   :  { %v8385_v59 = vsel %vm3698_vm7, %v3690_v15, %v3706_v47  ;;  %v7813_v15 = vld [vmem:[#allocation14 + $0x18] sm:$0xff]  }
 0x385   :  { %5568 = vmatpush1.bf16.msra.mxu1 %v7683_v41  ;;  %v3715_v46 = vsel %vm3699_vm6, %v3691_v40, %v3707_v44  ;;  %v7814_v40 = vld [vmem:[#allocation14 + $0x60] sm:$0xff]   ;;  %v7110_v47 = vld.sshfl [vmem:[#allocation10] sm:$0x33 pattern:$0x75316420] }
 0x386   :  { %5413 = vmatprep.mubr.bf16.mxu0 %v3715_v46  ;;  %5585 = vmatprep.mubr.bf16.mxu1 %v3715_v46  ;;  %v7815_v41 = vld [vmem:[#allocation14 + $0x20] sm:$0xff]   ;;  %v5609_v44 = vcombine.high %v7110_v47, %v7110_v47 }
 0x387   :  { %5414 = vmatmul.mubr.bf16.vlgmr.msra.gmra.mrb[8].mxu0 %v8385_v59  ;;  %5569 = vmatprep.subr.bf16.mxu1 %v7688_v57  ;;  %v8390_v57 = vrot.slane %v7110_v47, %v8307_v27 }
 0x388   :  { %6055 = vmatpush1.bf16.msra.mxu0 %v7710_v45  ;;  %v5623_v45 = vrot.slane %v5609_v44, %v8307_v27  ;;  %v7800_v44 = vld [vmem:[#allocation11 + $0x1e0] ss:$8 sps:$4 sm:$0xff]  }
 0x389   :  { %5570 = vmatpush1.bf16.msra.mxu1 %v7686_v52  ;;  %6056 = vmatprep.subr.bf16.mxu0 %v7715_v48  ;;  %v5627_v46 = vpack.i.b16 %v8390_v57, %v8390_v57 }
 0x38a   :  { %5571 = vmatprep.subr.bf16.mxu1 %v7691_v49  ;;  %v5634_v52 = vpack.i.b16 %v5623_v45, %v5623_v45 }
 0x38b   :  { %v5632_v49 = vrot.slane %v5627_v46, %v8319_v1 }
 0x38c   :  { %6057 = vmatpush1.bf16.msra.mxu0 %v7713_v56 }
 0x38d   :  { %5572 = vmatpush1.bf16.msra.mxu1 %v7689_v50  ;;  %6058 = vmatprep.subr.bf16.mxu0 %v7718_v53  ;;  %v5639_v50 = vrot.slane %v5634_v52, %v8319_v1  ;;  %v7803_v52 = vld [vmem:[#allocation11 + $0x1f0] ss:$8 sps:$4 sm:$0xff]  }
 0x38e   :  { %5573 = vmatprep.subr.bf16.mxu1 %v7694_v51 }
 0x390   :  { %6059 = vmatpush1.bf16.msra.mxu0 %v7716_v54 }
 0x391   :  { %5574 = vmatpush1.bf16.msra.mxu1 %v7692_v55  ;;  %6060 = vmatprep.subr.bf16.mxu0 %v7721_v58 }
 0x392   :  { %5575 = vmatprep.subr.bf16.mxu1 %v7697_v61 }
 0x394   :  { %6061 = vmatpush1.bf16.msra.mxu0 %v7719_v62 }
 0x395   :  { %5576 = vmatpush1.bf16.msra.mxu1 %v7695_v63  ;;  %6062 = vmatprep.subr.bf16.mxu0 %v7724_v0  ;;  %v7758_v63 = vld [vmem:[#allocation11 + $0x100] ss:$8 sps:$4 sm:$0xff]  }
 0x396   :  { %5577 = vmatprep.subr.bf16.mxu1 %v7700_v2  ;;  %v7763_v2 = vld [vmem:[#allocation11 + $0x114] ss:$8 sps:$4 sm:$0xff]  }
 0x398   :  { %6063 = vmatpush1.bf16.msra.mxu0 %v7722_v3 }
 0x399   :  { %5578 = vmatpush1.bf16.msra.mxu1 %v7698_v34  ;;  %6064 = vmatprep.subr.bf16.mxu0 %v7727_v4  ;;  %v7761_v34 = vld [vmem:[#allocation11 + $0x110] ss:$8 sps:$4 sm:$0xff]   ;;  %v7766_v4 = vld [vmem:[#allocation11 + $0x124] ss:$8 sps:$4 sm:$0xff]  }
 0x39a   :  { %5579 = vmatprep.subr.bf16.mxu1 %v7703_v5  ;;  %v7764_v5 = vld [vmem:[#allocation11 + $0x120] ss:$8 sps:$4 sm:$0xff]  }
 0x39c   :  { %6065 = vmatpush1.bf16.msra.mxu0 %v7725_v6  ;;  %v7769_v6 = vld [vmem:[#allocation11 + $0x134] ss:$8 sps:$4 sm:$0xff]  }
 0x39d   :  { %5580 = vmatpush1.bf16.msra.mxu1 %v7701_v7  ;;  %6066 = vmatprep.subr.bf16.mxu0 %v7730_v8  ;;  %v7767_v7 = vld [vmem:[#allocation11 + $0x130] ss:$8 sps:$4 sm:$0xff]   ;;  %v7772_v8 = vld [vmem:[#allocation11 + $0x144] ss:$8 sps:$4 sm:$0xff]  }
 0x39e   :  { %5581 = vmatprep.subr.bf16.mxu1 %v7706_v9  ;;  %v7770_v9 = vld [vmem:[#allocation11 + $0x140] ss:$8 sps:$4 sm:$0xff]  }
 0x3a0   :  { %6067 = vmatpush1.bf16.msra.mxu0 %v7728_v36  ;;  %v7775_v36 = vld [vmem:[#allocation11 + $0x154] ss:$8 sps:$4 sm:$0xff]  }
 0x3a1   :  { %5582 = vmatpush1.bf16.msra.mxu1 %v7704_v11  ;;  %6068 = vmatprep.subr.bf16.mxu0 %v7733_v13  ;;  %v5625_v11 = vcombine.high %v5623_v45, %v5623_v45  ;;  %v7773_v13 = vld [vmem:[#allocation11 + $0x150] ss:$8 sps:$4 sm:$0xff]   ;;  %v7805_v45 = vld [vmem:[#allocation11 + $0x1f4] ss:$8 sps:$4 sm:$0xff]  }
 0x3a2   :  { %5583 = vmatprep.subr.bf16.mxu1 %v7709_v14  ;;  %v7778_v14 = vld [vmem:[#allocation11 + $0x164] ss:$8 sps:$4 sm:$0xff]  }
 0x3a4   :  { %6069 = vmatpush1.bf16.msra.mxu0 %v7731_v16  ;;  %v5648_v16 = vpack.i.b16 %v5625_v11, %v5625_v11 }
 0x3a5   :  { %5584 = vmatpush1.bf16.msra.mxu1 %v7707_v17  ;;  %6070 = vmatprep.subr.bf16.mxu0 %v7736_v18  ;;  %v7776_v18 = vld [vmem:[#allocation11 + $0x160] ss:$8 sps:$4 sm:$0xff]  }
 0x3a6   :  { %7195 = vmatprep.subr.bf16.mxu1 %v7806_v28  ;;  %v7788_v28 = vld [vmem:[#allocation11 + $0x1a0] ss:$8 sps:$4 sm:$0xff]  }
 0x3a8   :  { %5586 = vmatmul.mubr.bf16.vlgmr.msra.gmra.mrb[12].mxu1 %v8385_v59  ;;  %6071 = vmatpush1.bf16.msra.mxu0 %v7734_v20 }
 0x3a9   :  { %6072 = vmatprep.subr.bf16.mxu0 %v7739_v21  ;;  %7196 = vmatpush3.bf16.msra.mxu1 %v7807_v10  ;;  %v7781_v21 = vld [vmem:[#allocation11 + $0x174] ss:$8 sps:$4 sm:$0xff]  }
 0x3aa   :  { %7197 = vmatprep.subr.bf16.mxu1 %v7808_v26  ;;  %v7793_v10 = vld [vmem:[#allocation11 + $0x1b4] ss:$8 sps:$4 sm:$0xff]   ;;  %v7791_v26 = vld [vmem:[#allocation11 + $0x1b0] ss:$8 sps:$4 sm:$0xff]  }
 0x3ac   :  { %6073 = vmatpush1.bf16.msra.mxu0 %v7737_v19 }
 0x3ad   :  { %6074 = vmatprep.subr.bf16.mxu0 %v7742_v22  ;;  %7198 = vmatpush3.bf16.msra.mxu1 %v7809_v35  ;;  %v5653_v22 = vrot.slane %v5648_v16, %v8319_v1  ;;  %v7796_v35 = vld [vmem:[#allocation11 + $0x1c4] ss:$8 sps:$4 sm:$0xff]   ;;  %v7176_v16 = vld [vmem:[#allocation16] ss:$0 sm:$0xff] }
 0x3ae   :  { %7199 = vmatprep.subr.bf16.mxu1 %v7810_v37  ;;  %v5624_v37 = vcombine.high %v8390_v57, %v8390_v57 }
 0x3b0   :  { %6075 = vmatpush1.bf16.msra.mxu0 %v7740_v24 }
 0x3b1   :  { %6076 = vmatprep.subr.bf16.mxu0 %v7745_v39  ;;  %7200 = vmatpush3.bf16.msra.mxu1 %v7811_v31  ;;  %v7794_v31 = vld [vmem:[#allocation11 + $0x1c0] ss:$8 sps:$4 sm:$0xff]  }
 0x3b2   :  { %7201 = vmatprep.subr.bf16.mxu1 %v7812_v12  ;;  %v7799_v12 = vld [vmem:[#allocation11 + $0x1d4] ss:$8 sps:$4 sm:$0xff]  }
 0x3b4   :  { %6077 = vmatpush1.bf16.msra.mxu0 %v7743_v25 }
 0x3b5   :  { %6078 = vmatprep.subr.bf16.mxu0 %v7748_v60  ;;  %7202 = vmatpush3.bf16.msra.mxu1 %v7813_v15  ;;  %v7779_v60 = vld [vmem:[#allocation11 + $0x170] ss:$8 sps:$4 sm:$0xff]   ;;  %v5641_v15 = vpack.i.b16 %v5624_v37, %v5624_v37 }
 0x3b6   :  { %7203 = vmatprep.subr.bf16.mxu1 %v7814_v40  ;;  %v7797_v40 = vld [vmem:[#allocation11 + $0x1d0] ss:$8 sps:$4 sm:$0xff]  }
 0x3b7   :  { %v5646_v47 = vrot.slane %v5641_v15, %v8319_v1 }
 0x3b8   :  { %6079 = vmatpush1.bf16.msra.mxu0 %v7746_v43  ;;  %v7784_v43 = vld [vmem:[#allocation11 + $0x184] ss:$8 sps:$4 sm:$0xff]  }
 0x3b9   :  { %6080 = vmatprep.subr.bf16.mxu0 %v7751_v42  ;;  %7204 = vmatpush3.bf16.msra.mxu1 %v7815_v41  ;;  %v7802_v41 = vld [vmem:[#allocation11 + $0x1e4] ss:$8 sps:$4 sm:$0xff]  }
 0x3bc   :  { %6081 = vmatpush1.bf16.msra.mxu0 %v7749_v29  ;;  %v7782_v29 = vld [vmem:[#allocation11 + $0x180] ss:$8 sps:$4 sm:$0xff]  }
 0x3bd   :  { %6082 = vmatprep.subr.bf16.mxu0 %v7754_v23 }
 0x3c0   :  { %6083 = vmatpush1.bf16.msra.mxu0 %v7752_v38  ;;  %v7787_v38 = vld [vmem:[#allocation11 + $0x194] ss:$8 sps:$4 sm:$0xff]  }
 0x3c1   :  { %6084 = vmatprep.subr.bf16.mxu0 %v7757_v30 }
 0x3c4   :  { %6085 = vmatpush1.bf16.msra.mxu0 %v7755_v32  ;;  %v7785_v32 = vld [vmem:[#allocation11 + $0x190] ss:$8 sps:$4 sm:$0xff]  }
 0x3c5   :  { %6097 = vmatprep.subr.bf16.mxu0 %v7760_v33  ;;  %v7790_v33 = vld [vmem:[#allocation11 + $0x1a4] ss:$8 sps:$4 sm:$0xff]  }
 0x45a   :  { %v5415_v48 = vpop.f32.mrb[8].mxu0 }
 0x45b   :  { %v5417_v59 = vpop.f32.mrb[9].mxu0 }
 0x45c   :  { %v5419_v56 = vpop.f32.mrb[10].mxu0 }
 0x45d   :  { %v5596_v53 = vpack.c.bf16 %v5419_v56, %v5415_v48  ;;  %v5421_v51 = vpop.f32.mrb[11].mxu0  ;;  %v7818_v56 = vld [vmem:[#allocation14 + $0x70] sm:$0xff]  }
 0x45e   :  { %v5597_v54 = vpack.c.bf16 %v5421_v51, %v5417_v59  ;;  %v7816_v59 = vld [vmem:[#allocation14 + $0x68] sm:$0xff]   ;;  %v7821_v51 = vld [vmem:[#allocation14 + $0x38] sm:$0xff]  }
 0x45f   :  { %v5654_v55 = vadd.bf16 %v5632_v49, %v5596_v53  ;;  %v7817_v49 = vld [vmem:[#allocation14 + $0x28] sm:$0xff]   ;;  %7205 = vmatprep.subr.bf16.mxu1 %v7816_v59  ;;  %v7820_v53 = vld [vmem:[#allocation14 + $0x78] sm:$0xff]  }
 0x460   :  { %v5655_v58 = vadd.bf16 %v5639_v50, %v5597_v54  ;;  %7206 = vmatpush3.bf16.msra.mxu1 %v7817_v49  ;;  %v7819_v50 = vld [vmem:[#allocation14 + $0x30] sm:$0xff]   ;;  %v7175_v54 = vld.sshfl [vmem:[#allocation13] sm:$0x11 pattern:$0x75316420] }
 0x461   :  { %v5662_v61 = vmul.bf16 1045249613, %v5654_v55  ;;  %vm5658_vm9 = vcmp.gt.bf16.partialorder %v5654_v55, 0  ;;  %7207 = vmatprep.subr.bf16.mxu1 %v7818_v56 }
 0x462   :  { %vm5659_vm8 = vcmp.gt.bf16.partialorder %v5655_v58, 0  ;;  %v5663_v62 = vmul.bf16 1045249613, %v5655_v58 }
 0x463   :  { %v5666_v3 = vsel %vm5658_vm9, %v5654_v55, %v5662_v61  ;;  %v6151_v55 = vcombine.high %v7175_v54, %v7175_v54 }
 0x464   :  { %v5667_v0 = vsel %vm5659_vm8, %v5655_v58, %v5663_v62  ;;  %7208 = vmatpush3.bf16.msra.mxu1 %v7819_v50  ;;  %v6158_v58 = vrot.slane %v7175_v54, %v8307_v27 }
 0x465   :  { %6086 = vmatprep.mubr.bf16.mxu0 %v5667_v0  ;;  %7209 = vmatprep.subr.bf16.mxu1 %v7820_v53  ;;  %v6165_v61 = vrot.slane %v6151_v55, %v8307_v27 }
 0x466   :  { %6087 = vmatmul.mubr.bf16.vlgmr.msra.gmra.mrb[12].mxu0 %v5666_v3  ;;  %v6167_v62 = vpack.i.b16 %v6158_v58, %v6158_v58 }
 0x467   :  { %6098 = vmatpush1.bf16.msra.mxu0 %v7758_v63  ;;  %v6174_v63 = vpack.i.b16 %v6165_v61, %v6165_v61 }
 0x468   :  { %6099 = vmatprep.subr.bf16.mxu0 %v7763_v2  ;;  %7210 = vmatpush3.bf16.msra.mxu1 %v7821_v51  ;;  %v6172_v3 = vrot.slane %v6167_v62, %v8319_v1 }
 0x46b   :  { %6100 = vmatpush1.bf16.msra.mxu0 %v7761_v34 }
 0x46c   :  { %6101 = vmatprep.subr.bf16.mxu0 %v7766_v4  ;;  %v6179_v4 = vrot.slane %v6174_v63, %v8319_v1 }
 0x46f   :  { %6102 = vmatpush1.bf16.msra.mxu0 %v7764_v5 }
 0x470   :  { %6103 = vmatprep.subr.bf16.mxu0 %v7769_v6 }
 0x473   :  { %6104 = vmatpush1.bf16.msra.mxu0 %v7767_v7 }
 0x474   :  { %6105 = vmatprep.subr.bf16.mxu0 %v7772_v8 }
 0x477   :  { %6106 = vmatpush1.bf16.msra.mxu0 %v7770_v9 }
 0x478   :  { %6107 = vmatprep.subr.bf16.mxu0 %v7775_v36 }
 0x47b   :  { %6108 = vmatpush1.bf16.msra.mxu0 %v7773_v13  ;;  %v5587_v17 = vpop.f32.mrb[12].mxu1 }
 0x47c   :  { %v5589_v20 = vpop.f32.mrb[13].mxu1  ;;  %6109 = vmatprep.subr.bf16.mxu0 %v7778_v14 }
 0x47d   :  { %v5591_v19 = vpop.f32.mrb[14].mxu1 }
 0x47e   :  { %v5598_v24 = vpack.c.bf16 %v5591_v19, %v5587_v17  ;;  %v5593_v39 = vpop.f32.mrb[15].mxu1 }
 0x47f   :  { %v5599_v25 = vpack.c.bf16 %v5593_v39, %v5589_v20  ;;  %6110 = vmatpush1.bf16.msra.mxu0 %v7776_v18 }
 0x480   :  { %6111 = vmatprep.subr.bf16.mxu0 %v7781_v21  ;;  %v5656_v46 = vadd.bf16 %v5646_v47, %v5598_v24 }
 0x481   :  { %v5657_v42 = vadd.bf16 %v5653_v22, %v5599_v25 }
 0x482   :  { %v5664_v57 = vmul.bf16 1045249613, %v5656_v46  ;;  %vm5660_vm11 = vcmp.gt.bf16.partialorder %v5656_v46, 0 }
 0x483   :  { %6112 = vmatpush1.bf16.msra.mxu0 %v7779_v60  ;;  %vm5661_vm10 = vcmp.gt.bf16.partialorder %v5657_v42, 0  ;;  %v5665_v23 = vmul.bf16 1045249613, %v5657_v42 }
 0x484   :  { %6113 = vmatprep.subr.bf16.mxu0 %v7784_v43  ;;  %v5668_v48 = vsel %vm5660_vm11, %v5656_v46, %v5664_v57 }
 0x485   :  { %v5669_v30 = vsel %vm5661_vm10, %v5657_v42, %v5665_v23 }
 0x486   :  { %6129 = vmatprep.mubr.bf16.mxu0 %v5669_v30 }
 0x487   :  { %6114 = vmatpush1.bf16.msra.mxu0 %v7782_v29 }
 0x488   :  { %6115 = vmatprep.subr.bf16.mxu0 %v7787_v38 }
 0x48b   :  { %6116 = vmatpush1.bf16.msra.mxu0 %v7785_v32 }
 0x48c   :  { %6117 = vmatprep.subr.bf16.mxu0 %v7790_v33 }
 0x48f   :  { %6118 = vmatpush1.bf16.msra.mxu0 %v7788_v28 }
 0x490   :  { %6119 = vmatprep.subr.bf16.mxu0 %v7793_v10 }
 0x493   :  { %6120 = vmatpush1.bf16.msra.mxu0 %v7791_v26 }
 0x494   :  { %6121 = vmatprep.subr.bf16.mxu0 %v7796_v35 }
 0x497   :  { %6122 = vmatpush1.bf16.msra.mxu0 %v7794_v31 }
 0x498   :  { %6123 = vmatprep.subr.bf16.mxu0 %v7799_v12 }
 0x49b   :  { %6124 = vmatpush1.bf16.msra.mxu0 %v7797_v40 }
 0x49c   :  { %6125 = vmatprep.subr.bf16.mxu0 %v7802_v41 }
 0x49f   :  { %6126 = vmatpush1.bf16.msra.mxu0 %v7800_v44 }
 0x4a0   :  { %6127 = vmatprep.subr.bf16.mxu0 %v7805_v45 }
 0x4a3   :  { %6128 = vmatpush1.bf16.msra.mxu0 %v7803_v52 }
 0x4a6   :  { %6130 = vmatmul.mubr.bf16.vlgmr.msra.gmra.mrb[12].mxu0 %v5668_v48 }
 0x579   :  { %v6131_v0 = vpop.f32.mrb[12].mxu0 }
 0x57a   :  { %v6133_v2 = vpop.f32.mrb[13].mxu0 }
 0x57b   :  { %v6135_v34 = vpop.f32.mrb[14].mxu0 }
 0x57c   :  { %v6140_v5 = vpack.c.bf16 %v6135_v34, %v6131_v0  ;;  %v6137_v6 = vpop.f32.mrb[15].mxu0 }
 0x57d   :  { %v6141_v7 = vpack.c.bf16 %v6137_v6, %v6133_v2 }
 0x57e   :  { %v6180_v8 = vadd.bf16 %v6172_v3, %v6140_v5 }
 0x57f   :  { %v6181_v9 = vadd.bf16 %v6179_v4, %v6141_v7 }
 0x580   :  { %v6184_v36 = vmul.bf16 1045249613, %v6180_v8  ;;  %vm6182_vm13 = vcmp.gt.bf16.partialorder %v6180_v8, 0 }
 0x581   :  { %vm6183_vm12 = vcmp.gt.bf16.partialorder %v6181_v9, 0  ;;  %v6185_v11 = vmul.bf16 1045249613, %v6181_v9 }
 0x582   :  { %v6186_v27 = vsel %vm6182_vm13, %v6180_v8, %v6184_v36 }
 0x583   :  { %v6187_v13 = vsel %vm6183_vm12, %v6181_v9, %v6185_v11 }
 0x584   :  { %6355 = vmatprep.mubr.bf16.mxu1 %v6187_v13 }
 0x585   :  { %6356 = vmatmul.mubr.bf16.vlgmr.msra.gmra.mrb[16].mxu1 %v6186_v27 }
 0x658   :  { %v7211_v14 = vpop.f32.mrb[16].mxu1 }
 0x659   :  { %v7212_v17 = vpop.f32.mrb[17].mxu1 }
 0x65a   :  { %v7213_v18 = vadd.f32 %v7212_v17, %v7211_v14  ;;  %v7214_v20 = vpop.f32.mrb[18].mxu1 }
 0x65b   :  { %v7215_v21 = vpop.f32.mrb[19].mxu1 }
 0x65c   :  { %v6358_v1 = vadd.f32 %v7213_v18, %v7176_v16  ;;  %v7216_v19 = vadd.f32 %v7215_v21, %v7214_v20 }
 0x65e   :  { %v7193_v22 = vmul.f32 -1.442695, %v6358_v1  ;;  %v6361_v24 = vadd.f32 %v7216_v19, %v7176_v16 }
 0x660   :  { %7822 = vpow2.f32 %v7193_v22  ;;  %v7194_v39 = vmul.f32 -1.442695, %v6361_v24 }
 0x662   :  { %7824 = vpow2.f32 %v7194_v39 }
 0x66a   :  { %v7823_v25 = vpop.eup %7822 }
 0x66b   :  { %v6370_v60 = vadd.f32 1.0, %v7823_v25 }
 0x66c   :  { %v7825_v43 = vpop.eup %7824 }
 0x66d   :  { %7826 = vrcp.f32 %v6370_v60  ;;  %v6371_v42 = vadd.f32 1.0, %v7825_v43 }
 0x66f   :  { %7828 = vrcp.f32 %v6371_v42 }
 0x677   :  { %v7827_v29 = vpop.eup %7826 }
 0x678   :  { %6376 = vst [vmem:[#allocation17] sm:$0xff] %v7827_v29 }
 0x679   :  { %v7829_v23 = vpop.eup %7828 }
 0x67a   :  { %6377 = vst [vmem:[#allocation17 + $0x8] sm:$0xff] %v7829_v23 }
 0x67b   :  { %8053 = shalt.err (!%p8050_p6)
}
 0x67c   :  { %s8054_s10 = scalar_lea.hbm %s8429_s9, 256 }
 0x67d   :  { %p8055_p7 = scmp.ne.s32.totalorder %s8429_s9, %s8054_s10  ;;  %p8058_p8 = scmp.lt.u32.totalorder %s8054_s10, %s8429_s9 }
 0x67f   :  { %p8060_p9 = pnand %p8058_p8, %p8055_p7 }
 0x681   :  { %8063 = shalt.err (!%p8060_p9)
}
 0x682   :  { %6389 = dma.vmem_to_hbm [thread:$0]  %s6384_s2, 256, %s8429_s9, [#allocation4], %s8083_s3, %s8083_s3, %s8084_s24  }
 0x683   :  { %8074 = dma.done.wait [#allocation4], 256  }
 0x684   :  { %8075 = vsyncadd [#allocation4], 4294967040 }
 0x685   :  { %6393 = vsyncpa [#allocation3], 1 }
 0x686   :  { %6394 = vsyncpa [#allocation6], 1 }
 0x687   :  { %6395 = vsyncpa [#allocation9], 1 }
 0x688   :  { %6396 = vsyncpa [#allocation12], 1 }
 0x689   :  { %6397 = vsyncpa [#allocation15], 1 }
 0x68a   :  { %6398 = vsyncpa [#allocation4], 1 }

</bundles_post_ra>
